<compile_context>
chip_gen: v6e
topology: v6e:2x2x1
jax: 0.10.0
libtpu: 0.0.40
codegen_flags: <defaults>
</compile_context>

<pallas_src>
import numpy as np

import jax
import jax.numpy as jnp
from jax.experimental import pallas as pl
from jax.experimental.pallas import tpu as pltpu

# ----------------------------- configuration --------------------------------
N_RESIDUE_TYPES = 20
HIDDEN = 32          # hidden_dim (reference default 128, shrunk for the demo)
TIME_EMBED = 16      # time_embed_dim
NUM_LAYERS = 2       # num_layers
RADIUS = 10.0
NUM_GRAPHS = 2
NODES_PER_GRAPH = 8
NUM_NODES = NUM_GRAPHS * NODES_PER_GRAPH          # N = 16
NUM_EDGES = NUM_NODES * NUM_NODES                 # E = N*N (dense pair grid)


def _silu(x):
    return x * jax.nn.sigmoid(x)


# ------------------------------- the kernel ---------------------------------
def score_network_kernel(
    # node / edge data
    h_emb_ref,    # [N, H]   residue embedding rows (f32)
    t_raw_ref,    # [N, TE]  sinusoidal time embedding gathered per node (f32)
    rel_ref,      # [E, 3]   pos_i - pos_j over the dense pair grid (f32)
    ritm_ref,     # [N, E]   masked scatter matrix (radius mask folded in, bf16)
    # time_mlp
    tw1_ref, tb1_ref, tw2_ref, tb2_ref,
    # initial_mlp  (fused Linear(2H -> H))
    iw1_ref, ib1_ref, iw2_ref, ib2_ref,
    # GNN layer weights, stacked on a leading L axis
    ew1ab_ref, ew1d_ref, eb1_ref, ew2_ref, eb2_ref,
    nw1_ref, nb1_ref, nw2_ref, nb2_ref,
    cw_ref, cb_ref,
    # LayerNorm(3)
    ln_g_ref, ln_b_ref,
    # output
    out_ref,      # [N, 3]
):
    f32 = jnp.float32
    bf16 = jnp.bfloat16

    def mxu(x, w):
        # bf16 MXU matmul with f32 accumulation; elementwise math stays f32
        # so the VPU/EUP path is f32-only (v5e-safe).
        return jnp.dot(x.astype(bf16), w, preferred_element_type=f32)

    # time_mlp(sin_emb)[batch] == time_mlp(sin_emb[batch])  (row-wise linear)
    t_raw = t_raw_ref[...]
    t_h = _silu(mxu(t_raw, tw1_ref[...]) + tb1_ref[...])
    t_emb = mxu(t_h, tw2_ref[...]) + tb2_ref[...]                   # [N, H]

    # initial_mlp(cat([h_emb, t_emb])) -- single fused K=2H matmul
    ht = jnp.concatenate([h_emb_ref[...], t_emb], axis=-1)          # [N, 2H]
    h = _silu(mxu(ht, iw1_ref[...]) + ib1_ref[...])
    h = mxu(h, iw2_ref[...]) + ib2_ref[...]                         # [N, H]

    rel = rel_ref[...]                                              # [E, 3]
    ritm = ritm_ref[...]                                            # [N, E] bf16
    dist2 = jnp.sum(rel * rel, axis=-1, keepdims=True)              # [E, 1]

    n = h.shape[0]
    hd = h.shape[1]
    e = rel.shape[0]
    dist2_g = dist2.reshape(n, n, 1)      # leading-dim split only (layout no-op)

    total = jnp.zeros((n, 3), f32)
    for l in range(NUM_LAYERS):                                     # static unroll (L == 2)
        # edge MLP on [h_i, h_j, |d|^2].  On the dense N x N pair grid the
        # h_i / h_j "gathers" are broadcasts: h_i is each row repeated N times,
        # h_j is the block tiled N times (no selector matmuls).
        ab = mxu(h, ew1ab_ref[l])                                   # [N, 2H] fused
        a = ab[:, :hd] + eb1_ref[l]                                 # h_i branch
        b = ab[:, hd:]                                              # h_j branch
        e_pre = (a[:, None, :] + b[None, :, :]
                 + dist2_g * ew1d_ref[l][None]).reshape(e, hd)      # [E, H]
        m = _silu(e_pre)
        m = _silu(mxu(m, ew2_ref[l]) + eb2_ref[l])                  # [E, H]

        # masked sum aggregation (radius mask already folded into ritm)
        agg = jnp.dot(ritm, m.astype(bf16),
                      preferred_element_type=f32)                   # [N, H]

        # per-edge scalar for the position update (pos_out_scalar_dim = 1)
        c = jnp.sum(m * cw_ref[l], axis=-1, keepdims=True) + cb_ref[l]   # [E, 1]
        pos_upd = jnp.dot(ritm, (rel * c).astype(bf16),
                          preferred_element_type=f32)               # [N, 3]
        total = total + pos_upd

        # node MLP with residual (fused [h | agg] @ nw1, K=2H)
        hn = jnp.concatenate([h, agg], axis=-1)                     # [N, 2H]
        upd = _silu(mxu(hn, nw1_ref[l]) + nb1_ref[l])
        h = h + mxu(upd, nw2_ref[l]) + nb2_ref[l]

    # TODO(synk): final_node_mlp / final_output_mlp are computed-then-discarded
    # in the reference forward (output is overwritten by norm_pos_update); not
    # computed here.

    # norm_pos_update = nn.LayerNorm(3), eps = 1e-5, biased variance
    mu = jnp.mean(total, axis=-1, keepdims=True)
    var = jnp.mean((total - mu) ** 2, axis=-1, keepdims=True)
    out_ref[...] = ((total - mu) * jax.lax.rsqrt(var + 1e-5)
                    * ln_g_ref[...] + ln_b_ref[...])


# ------------------------------ glue / wrapper -------------------------------
def sinusoidal_time_embedding(t, dim):
    half = dim // 2
    scale = np.log(10000.0) / (half - 1)
    freqs = jnp.exp(jnp.arange(half, dtype=jnp.float32) * -scale)
    emb = t[:, None] * freqs[None, :]
    emb = jnp.concatenate([jnp.sin(emb), jnp.cos(emb)], axis=-1)
    if dim % 2 == 1:
        emb = jnp.pad(emb, ((0, 0), (0, 1)))
    return emb


def make_params(key):
    H, TE, L = HIDDEN, TIME_EMBED, NUM_LAYERS

    def nrm(k, shape, scale=0.1):
        return scale * jax.random.normal(k, shape, dtype=jnp.float32)

    ks = iter(jax.random.split(key, 32))
    p = {}
    p["emb_table"] = nrm(next(ks), (N_RESIDUE_TYPES, H), 0.5)
    # time_mlp
    p["tw1"] = nrm(next(ks), (TE, H)); p["tb1"] = jnp.zeros((1, H), jnp.float32)
    p["tw2"] = nrm(next(ks), (H, H));  p["tb2"] = jnp.zeros((1, H), jnp.float32)
    # initial_mlp: Linear(2H -> H), K axis = [h | time] fused
    p["iw1"] = nrm(next(ks), (2 * H, H)); p["ib1"] = jnp.zeros((1, H), jnp.float32)
    p["iw2"] = nrm(next(ks), (H, H));     p["ib2"] = jnp.zeros((1, H), jnp.float32)
    # GNN layers (stacked); ew1ab fuses the h_i / h_j branches, nw1 fuses [h | agg]
    p["ew1ab"] = nrm(next(ks), (L, H, 2 * H))
    p["ew1d"]  = nrm(next(ks), (L, 1, H))
    p["eb1"]   = jnp.zeros((L, 1, H), jnp.float32)
    p["ew2"]   = nrm(next(ks), (L, H, H))
    p["eb2"]   = jnp.zeros((L, 1, H), jnp.float32)
    p["nw1"]   = nrm(next(ks), (L, 2 * H, H))
    p["nb1"]   = jnp.zeros((L, 1, H), jnp.float32)
    p["nw2"]   = nrm(next(ks), (L, H, H))
    p["nb2"]   = jnp.zeros((L, 1, H), jnp.float32)
    p["cw"]    = nrm(next(ks), (L, 1, H))
    p["cb"]    = jnp.zeros((L, 1, 1), jnp.float32)
    # LayerNorm(3) defaults
    p["ln_g"] = jnp.ones((1, 3), jnp.float32)
    p["ln_b"] = jnp.zeros((1, 3), jnp.float32)
    return p


@jax.jit
def score_network_forward(x, pos, batch, t, params):
    n = pos.shape[0]
    bf16 = jnp.bfloat16

    # --- radius_graph (loop=False, within-graph) as a dense-pair mask ---
    # TODO(synk): PyG radius_graph caps max_num_neighbors=32; not modeled (N small).
    diff = pos[:, None, :] - pos[None, :, :]              # [N, N, 3]  pos_i - pos_j
    d2 = jnp.sum(diff * diff, axis=-1)                    # [N, N]
    same = batch[:, None] == batch[None, :]
    noself = ~jnp.eye(n, dtype=bool)
    mask = ((d2 <= RADIUS ** 2) & same & noself).astype(jnp.float32)

    rel = diff.reshape(n * n, 3)                          # [E, 3], edge e = i*N + j

    # masked scatter-add matrix (edge e=(i,j) -> node i), radius mask folded in.
    e_idx = np.arange(n * n)
    rit_np = np.zeros((n, n * n), np.float32)
    rit_np[e_idx // n, e_idx] = 1.0
    ritm = (jnp.asarray(rit_np) * mask.reshape(1, n * n)).astype(bf16)

    # --- embedding / time-embedding glue (tiny gathers) ---
    h_emb = jnp.take(params["emb_table"], x, axis=0)      # [N, H]
    sin_emb = sinusoidal_time_embedding(t, TIME_EMBED)    # [G, TE]
    t_raw = jnp.take(sin_emb, batch, axis=0)              # [N, TE]

    cast = lambda w: w.astype(bf16)        # matmul weights go to the MXU in bf16
    operands = (
        h_emb, t_raw, rel, ritm,
        cast(params["tw1"]), params["tb1"], cast(params["tw2"]), params["tb2"],
        cast(params["iw1"]), params["ib1"], cast(params["iw2"]), params["ib2"],
        cast(params["ew1ab"]), params["ew1d"], params["eb1"],
        cast(params["ew2"]), params["eb2"],
        cast(params["nw1"]), params["nb1"], cast(params["nw2"]), params["nb2"],
        params["cw"], params["cb"],
        params["ln_g"], params["ln_b"],
    )

    # Single-shot VMEM-resident call: everything fits comfortably at demo size.
    # TODO(synk): at production sizes (H=128, N in the hundreds+) re-block with
    # an edge-tile grid axis ("arbitrary") + VMEM accumulators, and halve the
    # tile budget on v7x (64 MiB physical VMEM) vs v5e/v6e.
    vmem = pl.BlockSpec(memory_space=pltpu.MemorySpace.VMEM)
    return pl.pallas_call(
        score_network_kernel,
        out_shape=jax.ShapeDtypeStruct((n, 3), jnp.float32),
        in_specs=[vmem] * len(operands),
        out_specs=vmem,
    )(*operands)


# ----------------------------------- main ------------------------------------
if __name__ == "__main__":
    key = jax.random.PRNGKey(0)
    k_par, k_x, k_pos, k_t = jax.random.split(key, 4)

    params = make_params(k_par)

    x = jax.random.randint(k_x, (NUM_NODES,), 0, N_RESIDUE_TYPES, dtype=jnp.int32)
    pos = jax.random.normal(k_pos, (NUM_NODES, 3), dtype=jnp.float32) * 2.0
    batch = jnp.repeat(jnp.arange(NUM_GRAPHS, dtype=jnp.int32), NODES_PER_GRAPH)
    t = jax.random.uniform(k_t, (NUM_GRAPHS,), dtype=jnp.float32)

    out = score_network_forward(x, pos, batch, t, params)
    out = jax.block_until_ready(out)

    assert out.shape == (NUM_NODES, 3), out.shape
    assert bool(jnp.all(jnp.isfinite(out)))
    print("KERNEL_OK")
</pallas_src>

<mosaic_0001>
module attributes {stable_mosaic.version = 11 : i64} {
  func.func @score_network_kernel(%arg0: memref<16x32xf32, #tpu.memory_space<vmem>>, %arg1: memref<16x16xf32, #tpu.memory_space<vmem>>, %arg2: memref<256x3xf32, #tpu.memory_space<vmem>>, %arg3: memref<16x256xbf16, #tpu.memory_space<vmem>>, %arg4: memref<16x32xbf16, #tpu.memory_space<vmem>>, %arg5: memref<1x32xf32, #tpu.memory_space<vmem>>, %arg6: memref<32x32xbf16, #tpu.memory_space<vmem>>, %arg7: memref<1x32xf32, #tpu.memory_space<vmem>>, %arg8: memref<64x32xbf16, #tpu.memory_space<vmem>>, %arg9: memref<1x32xf32, #tpu.memory_space<vmem>>, %arg10: memref<32x32xbf16, #tpu.memory_space<vmem>>, %arg11: memref<1x32xf32, #tpu.memory_space<vmem>>, %arg12: memref<2x32x64xbf16, #tpu.memory_space<vmem>>, %arg13: memref<2x1x32xf32, #tpu.memory_space<vmem>>, %arg14: memref<2x1x32xf32, #tpu.memory_space<vmem>>, %arg15: memref<2x32x32xbf16, #tpu.memory_space<vmem>>, %arg16: memref<2x1x32xf32, #tpu.memory_space<vmem>>, %arg17: memref<2x64x32xbf16, #tpu.memory_space<vmem>>, %arg18: memref<2x1x32xf32, #tpu.memory_space<vmem>>, %arg19: memref<2x32x32xbf16, #tpu.memory_space<vmem>>, %arg20: memref<2x1x32xf32, #tpu.memory_space<vmem>>, %arg21: memref<2x1x32xf32, #tpu.memory_space<vmem>>, %arg22: memref<2x1x1xf32, #tpu.memory_space<vmem>>, %arg23: memref<1x3xf32, #tpu.memory_space<vmem>>, %arg24: memref<1x3xf32, #tpu.memory_space<vmem>>, %arg25: memref<16x3xf32, #tpu.memory_space<vmem>>) attributes {dimension_semantics = [], scalar_prefetch = 0 : i64, scratch_operands = 0 : i64, tpu.core_type = #tpu.core_type<tc>} {
    %c0 = arith.constant 0 : index
    %c0_0 = arith.constant 0 : index
    %0 = vector.load %arg1[%c0, %c0_0] : memref<16x16xf32, #tpu.memory_space<vmem>>, vector<16x16xf32>
    %c0_1 = arith.constant 0 : index
    %c0_2 = arith.constant 0 : index
    %1 = vector.load %arg4[%c0_1, %c0_2] : memref<16x32xbf16, #tpu.memory_space<vmem>>, vector<16x32xbf16>
    %2 = arith.truncf %0 : vector<16x16xf32> to vector<16x16xbf16>
    %cst = arith.constant dense<0.000000e+00> : vector<16x32xf32>
    %3 = tpu.matmul %2, %1, %cst {dimension_numbers = #tpu.dot_dimension_numbers<[1], [0], [0], [1], [0, 0, 1, 1], [], []>} : vector<16x16xbf16>, vector<16x32xbf16>, vector<16x32xf32> -> vector<16x32xf32>
    %c0_3 = arith.constant 0 : index
    %c0_4 = arith.constant 0 : index
    %4 = vector.load %arg5[%c0_3, %c0_4] : memref<1x32xf32, #tpu.memory_space<vmem>>, vector<1x32xf32>
    %5 = vector.broadcast %4 : vector<1x32xf32> to vector<16x32xf32>
    %6 = arith.addf %3, %5 : vector<16x32xf32>
    %7 = arith.negf %6 : vector<16x32xf32>
    %8 = math.exp %7 : vector<16x32xf32>
    %cst_5 = arith.constant 1.000000e+00 : f32
    %9 = vector.broadcast %cst_5 : f32 to vector<16x32xf32>
    %10 = arith.addf %9, %8 : vector<16x32xf32>
    %11 = arith.divf %9, %10 : vector<16x32xf32>
    %12 = arith.mulf %6, %11 : vector<16x32xf32>
    %c0_6 = arith.constant 0 : index
    %c0_7 = arith.constant 0 : index
    %13 = vector.load %arg6[%c0_6, %c0_7] : memref<32x32xbf16, #tpu.memory_space<vmem>>, vector<32x32xbf16>
    %14 = arith.truncf %12 : vector<16x32xf32> to vector<16x32xbf16>
    %cst_8 = arith.constant dense<0.000000e+00> : vector<16x32xf32>
    %15 = tpu.matmul %14, %13, %cst_8 {dimension_numbers = #tpu.dot_dimension_numbers<[1], [0], [0], [1], [0, 0, 1, 1], [], []>} : vector<16x32xbf16>, vector<32x32xbf16>, vector<16x32xf32> -> vector<16x32xf32>
    %c0_9 = arith.constant 0 : index
    %c0_10 = arith.constant 0 : index
    %16 = vector.load %arg7[%c0_9, %c0_10] : memref<1x32xf32, #tpu.memory_space<vmem>>, vector<1x32xf32>
    %17 = vector.broadcast %16 : vector<1x32xf32> to vector<16x32xf32>
    %18 = arith.addf %15, %17 : vector<16x32xf32>
    %c0_11 = arith.constant 0 : index
    %c0_12 = arith.constant 0 : index
    %19 = vector.load %arg0[%c0_11, %c0_12] : memref<16x32xf32, #tpu.memory_space<vmem>>, vector<16x32xf32>
    %20 = tpu.concatenate %19, %18 in 1 : vector<16x32xf32>, vector<16x32xf32> -> vector<16x64xf32>
    %c0_13 = arith.constant 0 : index
    %c0_14 = arith.constant 0 : index
    %21 = vector.load %arg8[%c0_13, %c0_14] : memref<64x32xbf16, #tpu.memory_space<vmem>>, vector<64x32xbf16>
    %22 = arith.truncf %20 : vector<16x64xf32> to vector<16x64xbf16>
    %cst_15 = arith.constant dense<0.000000e+00> : vector<16x32xf32>
    %23 = tpu.matmul %22, %21, %cst_15 {dimension_numbers = #tpu.dot_dimension_numbers<[1], [0], [0], [1], [0, 0, 1, 1], [], []>} : vector<16x64xbf16>, vector<64x32xbf16>, vector<16x32xf32> -> vector<16x32xf32>
    %c0_16 = arith.constant 0 : index
    %c0_17 = arith.constant 0 : index
    %24 = vector.load %arg9[%c0_16, %c0_17] : memref<1x32xf32, #tpu.memory_space<vmem>>, vector<1x32xf32>
    %25 = vector.broadcast %24 : vector<1x32xf32> to vector<16x32xf32>
    %26 = arith.addf %23, %25 : vector<16x32xf32>
    %27 = arith.negf %26 : vector<16x32xf32>
    %28 = math.exp %27 : vector<16x32xf32>
    %cst_18 = arith.constant 1.000000e+00 : f32
    %29 = vector.broadcast %cst_18 : f32 to vector<16x32xf32>
    %30 = arith.addf %29, %28 : vector<16x32xf32>
    %31 = arith.divf %29, %30 : vector<16x32xf32>
    %32 = arith.mulf %26, %31 : vector<16x32xf32>
    %c0_19 = arith.constant 0 : index
    %c0_20 = arith.constant 0 : index
    %33 = vector.load %arg10[%c0_19, %c0_20] : memref<32x32xbf16, #tpu.memory_space<vmem>>, vector<32x32xbf16>
    %34 = arith.truncf %32 : vector<16x32xf32> to vector<16x32xbf16>
    %cst_21 = arith.constant dense<0.000000e+00> : vector<16x32xf32>
    %35 = tpu.matmul %34, %33, %cst_21 {dimension_numbers = #tpu.dot_dimension_numbers<[1], [0], [0], [1], [0, 0, 1, 1], [], []>} : vector<16x32xbf16>, vector<32x32xbf16>, vector<16x32xf32> -> vector<16x32xf32>
    %c0_22 = arith.constant 0 : index
    %c0_23 = arith.constant 0 : index
    %36 = vector.load %arg11[%c0_22, %c0_23] : memref<1x32xf32, #tpu.memory_space<vmem>>, vector<1x32xf32>
    %37 = vector.broadcast %36 : vector<1x32xf32> to vector<16x32xf32>
    %38 = arith.addf %35, %37 : vector<16x32xf32>
    %c0_24 = arith.constant 0 : index
    %c0_25 = arith.constant 0 : index
    %39 = vector.load %arg2[%c0_24, %c0_25] : memref<256x3xf32, #tpu.memory_space<vmem>>, vector<256x3xf32>
    %c0_26 = arith.constant 0 : index
    %c0_27 = arith.constant 0 : index
    %40 = vector.load %arg3[%c0_26, %c0_27] : memref<16x256xbf16, #tpu.memory_space<vmem>>, vector<16x256xbf16>
    %41 = arith.mulf %39, %39 : vector<256x3xf32>
    %cst_28 = arith.constant dense<0.000000e+00> : vector<256xf32>
    %42 = vector.multi_reduction <add>, %41, %cst_28 [1] : vector<256x3xf32> to vector<256xf32>
    %43 = vector.shape_cast %42 : vector<256xf32> to vector<256x1xf32>
    %44 = vector.shape_cast %43 : vector<256x1xf32> to vector<16x16x1xf32>
    %cst_29 = arith.constant 0.000000e+00 : f32
    %45 = vector.broadcast %cst_29 : f32 to vector<16x3xf32>
    %c0_30 = arith.constant 0 : index
    %c0_31 = arith.constant 0 : index
    %c0_32 = arith.constant 0 : index
    %46 = vector.load %arg12[%c0_30, %c0_31, %c0_32] : memref<2x32x64xbf16, #tpu.memory_space<vmem>>, vector<1x32x64xbf16>
    %47 = vector.shape_cast %46 : vector<1x32x64xbf16> to vector<32x64xbf16>
    %48 = arith.truncf %38 : vector<16x32xf32> to vector<16x32xbf16>
    %cst_33 = arith.constant dense<0.000000e+00> : vector<16x64xf32>
    %49 = tpu.matmul %48, %47, %cst_33 {dimension_numbers = #tpu.dot_dimension_numbers<[1], [0], [0], [1], [0, 0, 1, 1], [], []>} : vector<16x32xbf16>, vector<32x64xbf16>, vector<16x64xf32> -> vector<16x64xf32>
    %50 = vector.extract_strided_slice %49 {offsets = [0, 0], sizes = [16, 32], strides = [1, 1]} : vector<16x64xf32> to vector<16x32xf32>
    %c0_34 = arith.constant 0 : index
    %c0_35 = arith.constant 0 : index
    %c0_36 = arith.constant 0 : index
    %51 = vector.load %arg14[%c0_34, %c0_35, %c0_36] : memref<2x1x32xf32, #tpu.memory_space<vmem>>, vector<1x1x32xf32>
    %52 = vector.shape_cast %51 : vector<1x1x32xf32> to vector<1x32xf32>
    %53 = vector.broadcast %52 : vector<1x32xf32> to vector<16x32xf32>
    %54 = arith.addf %50, %53 : vector<16x32xf32>
    %55 = vector.extract_strided_slice %49 {offsets = [0, 32], sizes = [16, 32], strides = [1, 1]} : vector<16x64xf32> to vector<16x32xf32>
    %56 = vector.shape_cast %54 : vector<16x32xf32> to vector<16x1x32xf32>
    %57 = vector.shape_cast %55 : vector<16x32xf32> to vector<1x16x32xf32>
    %58 = vector.broadcast %56 : vector<16x1x32xf32> to vector<16x16x32xf32>
    %59 = vector.broadcast %57 : vector<1x16x32xf32> to vector<16x16x32xf32>
    %60 = arith.addf %58, %59 : vector<16x16x32xf32>
    %c0_37 = arith.constant 0 : index
    %c0_38 = arith.constant 0 : index
    %c0_39 = arith.constant 0 : index
    %61 = vector.load %arg13[%c0_37, %c0_38, %c0_39] : memref<2x1x32xf32, #tpu.memory_space<vmem>>, vector<1x1x32xf32>
    %62 = vector.shape_cast %61 : vector<1x1x32xf32> to vector<1x32xf32>
    %63 = vector.shape_cast %62 : vector<1x32xf32> to vector<1x1x32xf32>
    %64 = vector.broadcast %44 : vector<16x16x1xf32> to vector<16x16x32xf32>
    %65 = vector.broadcast %63 : vector<1x1x32xf32> to vector<16x16x32xf32>
    %66 = arith.mulf %64, %65 : vector<16x16x32xf32>
    %67 = arith.addf %60, %66 : vector<16x16x32xf32>
    %68 = vector.shape_cast %67 : vector<16x16x32xf32> to vector<256x32xf32>
    %69 = arith.negf %68 : vector<256x32xf32>
    %70 = math.exp %69 : vector<256x32xf32>
    %cst_40 = arith.constant 1.000000e+00 : f32
    %71 = vector.broadcast %cst_40 : f32 to vector<256x32xf32>
    %72 = arith.addf %71, %70 : vector<256x32xf32>
    %73 = arith.divf %71, %72 : vector<256x32xf32>
    %74 = arith.mulf %68, %73 : vector<256x32xf32>
    %c0_41 = arith.constant 0 : index
    %c0_42 = arith.constant 0 : index
    %c0_43 = arith.constant 0 : index
    %75 = vector.load %arg15[%c0_41, %c0_42, %c0_43] : memref<2x32x32xbf16, #tpu.memory_space<vmem>>, vector<1x32x32xbf16>
    %76 = vector.shape_cast %75 : vector<1x32x32xbf16> to vector<32x32xbf16>
    %77 = arith.truncf %74 : vector<256x32xf32> to vector<256x32xbf16>
    %cst_44 = arith.constant dense<0.000000e+00> : vector<256x32xf32>
    %78 = tpu.matmul %77, %76, %cst_44 {dimension_numbers = #tpu.dot_dimension_numbers<[1], [0], [0], [1], [0, 0, 1, 1], [], []>} : vector<256x32xbf16>, vector<32x32xbf16>, vector<256x32xf32> -> vector<256x32xf32>
    %c0_45 = arith.constant 0 : index
    %c0_46 = arith.constant 0 : index
    %c0_47 = arith.constant 0 : index
    %79 = vector.load %arg16[%c0_45, %c0_46, %c0_47] : memref<2x1x32xf32, #tpu.memory_space<vmem>>, vector<1x1x32xf32>
    %80 = vector.shape_cast %79 : vector<1x1x32xf32> to vector<1x32xf32>
    %81 = vector.broadcast %80 : vector<1x32xf32> to vector<256x32xf32>
    %82 = arith.addf %78, %81 : vector<256x32xf32>
    %83 = arith.negf %82 : vector<256x32xf32>
    %84 = math.exp %83 : vector<256x32xf32>
    %cst_48 = arith.constant 1.000000e+00 : f32
    %85 = vector.broadcast %cst_48 : f32 to vector<256x32xf32>
    %86 = arith.addf %85, %84 : vector<256x32xf32>
    %87 = arith.divf %85, %86 : vector<256x32xf32>
    %88 = arith.mulf %82, %87 : vector<256x32xf32>
    %89 = arith.truncf %88 : vector<256x32xf32> to vector<256x32xbf16>
    %cst_49 = arith.constant dense<0.000000e+00> : vector<16x32xf32>
    %90 = tpu.matmul %40, %89, %cst_49 {dimension_numbers = #tpu.dot_dimension_numbers<[1], [0], [0], [1], [0, 0, 1, 1], [], []>} : vector<16x256xbf16>, vector<256x32xbf16>, vector<16x32xf32> -> vector<16x32xf32>
    %c0_50 = arith.constant 0 : index
    %c0_51 = arith.constant 0 : index
    %c0_52 = arith.constant 0 : index
    %91 = vector.load %arg21[%c0_50, %c0_51, %c0_52] : memref<2x1x32xf32, #tpu.memory_space<vmem>>, vector<1x1x32xf32>
    %92 = vector.shape_cast %91 : vector<1x1x32xf32> to vector<1x32xf32>
    %93 = vector.broadcast %92 : vector<1x32xf32> to vector<256x32xf32>
    %94 = arith.mulf %88, %93 : vector<256x32xf32>
    %cst_53 = arith.constant dense<0.000000e+00> : vector<256xf32>
    %95 = vector.multi_reduction <add>, %94, %cst_53 [1] : vector<256x32xf32> to vector<256xf32>
    %96 = vector.shape_cast %95 : vector<256xf32> to vector<256x1xf32>
    %c0_54 = arith.constant 0 : index
    %c0_55 = arith.constant 0 : index
    %c0_56 = arith.constant 0 : index
    %97 = vector.load %arg22[%c0_54, %c0_55, %c0_56] : memref<2x1x1xf32, #tpu.memory_space<vmem>>, vector<1x1x1xf32>
    %98 = vector.shape_cast %97 : vector<1x1x1xf32> to vector<1x1xf32>
    %99 = vector.broadcast %98 : vector<1x1xf32> to vector<256x1xf32>
    %100 = arith.addf %96, %99 : vector<256x1xf32>
    %101 = vector.broadcast %100 : vector<256x1xf32> to vector<256x3xf32>
    %102 = arith.mulf %39, %101 : vector<256x3xf32>
    %103 = arith.truncf %102 : vector<256x3xf32> to vector<256x3xbf16>
    %cst_57 = arith.constant dense<0.000000e+00> : vector<16x3xf32>
    %104 = tpu.matmul %40, %103, %cst_57 {dimension_numbers = #tpu.dot_dimension_numbers<[1], [0], [0], [1], [0, 0, 1, 1], [], []>} : vector<16x256xbf16>, vector<256x3xbf16>, vector<16x3xf32> -> vector<16x3xf32>
    %105 = arith.addf %45, %104 : vector<16x3xf32>
    %106 = tpu.concatenate %38, %90 in 1 : vector<16x32xf32>, vector<16x32xf32> -> vector<16x64xf32>
    %c0_58 = arith.constant 0 : index
    %c0_59 = arith.constant 0 : index
    %c0_60 = arith.constant 0 : index
    %107 = vector.load %arg17[%c0_58, %c0_59, %c0_60] : memref<2x64x32xbf16, #tpu.memory_space<vmem>>, vector<1x64x32xbf16>
    %108 = vector.shape_cast %107 : vector<1x64x32xbf16> to vector<64x32xbf16>
    %109 = arith.truncf %106 : vector<16x64xf32> to vector<16x64xbf16>
    %cst_61 = arith.constant dense<0.000000e+00> : vector<16x32xf32>
    %110 = tpu.matmul %109, %108, %cst_61 {dimension_numbers = #tpu.dot_dimension_numbers<[1], [0], [0], [1], [0, 0, 1, 1], [], []>} : vector<16x64xbf16>, vector<64x32xbf16>, vector<16x32xf32> -> vector<16x32xf32>
    %c0_62 = arith.constant 0 : index
    %c0_63 = arith.constant 0 : index
    %c0_64 = arith.constant 0 : index
    %111 = vector.load %arg18[%c0_62, %c0_63, %c0_64] : memref<2x1x32xf32, #tpu.memory_space<vmem>>, vector<1x1x32xf32>
    %112 = vector.shape_cast %111 : vector<1x1x32xf32> to vector<1x32xf32>
    %113 = vector.broadcast %112 : vector<1x32xf32> to vector<16x32xf32>
    %114 = arith.addf %110, %113 : vector<16x32xf32>
    %115 = arith.negf %114 : vector<16x32xf32>
    %116 = math.exp %115 : vector<16x32xf32>
    %cst_65 = arith.constant 1.000000e+00 : f32
    %117 = vector.broadcast %cst_65 : f32 to vector<16x32xf32>
    %118 = arith.addf %117, %116 : vector<16x32xf32>
    %119 = arith.divf %117, %118 : vector<16x32xf32>
    %120 = arith.mulf %114, %119 : vector<16x32xf32>
    %c0_66 = arith.constant 0 : index
    %c0_67 = arith.constant 0 : index
    %c0_68 = arith.constant 0 : index
    %121 = vector.load %arg19[%c0_66, %c0_67, %c0_68] : memref<2x32x32xbf16, #tpu.memory_space<vmem>>, vector<1x32x32xbf16>
    %122 = vector.shape_cast %121 : vector<1x32x32xbf16> to vector<32x32xbf16>
    %123 = arith.truncf %120 : vector<16x32xf32> to vector<16x32xbf16>
    %cst_69 = arith.constant dense<0.000000e+00> : vector<16x32xf32>
    %124 = tpu.matmul %123, %122, %cst_69 {dimension_numbers = #tpu.dot_dimension_numbers<[1], [0], [0], [1], [0, 0, 1, 1], [], []>} : vector<16x32xbf16>, vector<32x32xbf16>, vector<16x32xf32> -> vector<16x32xf32>
    %125 = arith.addf %38, %124 : vector<16x32xf32>
    %c0_70 = arith.constant 0 : index
    %c0_71 = arith.constant 0 : index
    %c0_72 = arith.constant 0 : index
    %126 = vector.load %arg20[%c0_70, %c0_71, %c0_72] : memref<2x1x32xf32, #tpu.memory_space<vmem>>, vector<1x1x32xf32>
    %127 = vector.shape_cast %126 : vector<1x1x32xf32> to vector<1x32xf32>
    %128 = vector.broadcast %127 : vector<1x32xf32> to vector<16x32xf32>
    %129 = arith.addf %125, %128 : vector<16x32xf32>
    %c1 = arith.constant 1 : index
    %c0_73 = arith.constant 0 : index
    %c0_74 = arith.constant 0 : index
    %130 = vector.load %arg12[%c1, %c0_73, %c0_74] : memref<2x32x64xbf16, #tpu.memory_space<vmem>>, vector<1x32x64xbf16>
    %131 = vector.shape_cast %130 : vector<1x32x64xbf16> to vector<32x64xbf16>
    %132 = arith.truncf %129 : vector<16x32xf32> to vector<16x32xbf16>
    %cst_75 = arith.constant dense<0.000000e+00> : vector<16x64xf32>
    %133 = tpu.matmul %132, %131, %cst_75 {dimension_numbers = #tpu.dot_dimension_numbers<[1], [0], [0], [1], [0, 0, 1, 1], [], []>} : vector<16x32xbf16>, vector<32x64xbf16>, vector<16x64xf32> -> vector<16x64xf32>
    %134 = vector.extract_strided_slice %133 {offsets = [0, 0], sizes = [16, 32], strides = [1, 1]} : vector<16x64xf32> to vector<16x32xf32>
    %c1_76 = arith.constant 1 : index
    %c0_77 = arith.constant 0 : index
    %c0_78 = arith.constant 0 : index
    %135 = vector.load %arg14[%c1_76, %c0_77, %c0_78] : memref<2x1x32xf32, #tpu.memory_space<vmem>>, vector<1x1x32xf32>
    %136 = vector.shape_cast %135 : vector<1x1x32xf32> to vector<1x32xf32>
    %137 = vector.broadcast %136 : vector<1x32xf32> to vector<16x32xf32>
    %138 = arith.addf %134, %137 : vector<16x32xf32>
    %139 = vector.extract_strided_slice %133 {offsets = [0, 32], sizes = [16, 32], strides = [1, 1]} : vector<16x64xf32> to vector<16x32xf32>
    %140 = vector.shape_cast %138 : vector<16x32xf32> to vector<16x1x32xf32>
    %141 = vector.shape_cast %139 : vector<16x32xf32> to vector<1x16x32xf32>
    %142 = vector.broadcast %140 : vector<16x1x32xf32> to vector<16x16x32xf32>
    %143 = vector.broadcast %141 : vector<1x16x32xf32> to vector<16x16x32xf32>
    %144 = arith.addf %142, %143 : vector<16x16x32xf32>
    %c1_79 = arith.constant 1 : index
    %c0_80 = arith.constant 0 : index
    %c0_81 = arith.constant 0 : index
    %145 = vector.load %arg13[%c1_79, %c0_80, %c0_81] : memref<2x1x32xf32, #tpu.memory_space<vmem>>, vector<1x1x32xf32>
    %146 = vector.shape_cast %145 : vector<1x1x32xf32> to vector<1x32xf32>
    %147 = vector.shape_cast %146 : vector<1x32xf32> to vector<1x1x32xf32>
    %148 = vector.broadcast %44 : vector<16x16x1xf32> to vector<16x16x32xf32>
    %149 = vector.broadcast %147 : vector<1x1x32xf32> to vector<16x16x32xf32>
    %150 = arith.mulf %148, %149 : vector<16x16x32xf32>
    %151 = arith.addf %144, %150 : vector<16x16x32xf32>
    %152 = vector.shape_cast %151 : vector<16x16x32xf32> to vector<256x32xf32>
    %153 = arith.negf %152 : vector<256x32xf32>
    %154 = math.exp %153 : vector<256x32xf32>
    %cst_82 = arith.constant 1.000000e+00 : f32
    %155 = vector.broadcast %cst_82 : f32 to vector<256x32xf32>
    %156 = arith.addf %155, %154 : vector<256x32xf32>
    %157 = arith.divf %155, %156 : vector<256x32xf32>
    %158 = arith.mulf %152, %157 : vector<256x32xf32>
    %c1_83 = arith.constant 1 : index
    %c0_84 = arith.constant 0 : index
    %c0_85 = arith.constant 0 : index
    %159 = vector.load %arg15[%c1_83, %c0_84, %c0_85] : memref<2x32x32xbf16, #tpu.memory_space<vmem>>, vector<1x32x32xbf16>
    %160 = vector.shape_cast %159 : vector<1x32x32xbf16> to vector<32x32xbf16>
    %161 = arith.truncf %158 : vector<256x32xf32> to vector<256x32xbf16>
    %cst_86 = arith.constant dense<0.000000e+00> : vector<256x32xf32>
    %162 = tpu.matmul %161, %160, %cst_86 {dimension_numbers = #tpu.dot_dimension_numbers<[1], [0], [0], [1], [0, 0, 1, 1], [], []>} : vector<256x32xbf16>, vector<32x32xbf16>, vector<256x32xf32> -> vector<256x32xf32>
    %c1_87 = arith.constant 1 : index
    %c0_88 = arith.constant 0 : index
    %c0_89 = arith.constant 0 : index
    %163 = vector.load %arg16[%c1_87, %c0_88, %c0_89] : memref<2x1x32xf32, #tpu.memory_space<vmem>>, vector<1x1x32xf32>
    %164 = vector.shape_cast %163 : vector<1x1x32xf32> to vector<1x32xf32>
    %165 = vector.broadcast %164 : vector<1x32xf32> to vector<256x32xf32>
    %166 = arith.addf %162, %165 : vector<256x32xf32>
    %167 = arith.negf %166 : vector<256x32xf32>
    %168 = math.exp %167 : vector<256x32xf32>
    %cst_90 = arith.constant 1.000000e+00 : f32
    %169 = vector.broadcast %cst_90 : f32 to vector<256x32xf32>
    %170 = arith.addf %169, %168 : vector<256x32xf32>
    %171 = arith.divf %169, %170 : vector<256x32xf32>
    %172 = arith.mulf %166, %171 : vector<256x32xf32>
    %c1_91 = arith.constant 1 : index
    %c0_92 = arith.constant 0 : index
    %c0_93 = arith.constant 0 : index
    %173 = vector.load %arg21[%c1_91, %c0_92, %c0_93] : memref<2x1x32xf32, #tpu.memory_space<vmem>>, vector<1x1x32xf32>
    %174 = vector.shape_cast %173 : vector<1x1x32xf32> to vector<1x32xf32>
    %175 = vector.broadcast %174 : vector<1x32xf32> to vector<256x32xf32>
    %176 = arith.mulf %172, %175 : vector<256x32xf32>
    %cst_94 = arith.constant dense<0.000000e+00> : vector<256xf32>
    %177 = vector.multi_reduction <add>, %176, %cst_94 [1] : vector<256x32xf32> to vector<256xf32>
    %178 = vector.shape_cast %177 : vector<256xf32> to vector<256x1xf32>
    %c1_95 = arith.constant 1 : index
    %c0_96 = arith.constant 0 : index
    %c0_97 = arith.constant 0 : index
    %179 = vector.load %arg22[%c1_95, %c0_96, %c0_97] : memref<2x1x1xf32, #tpu.memory_space<vmem>>, vector<1x1x1xf32>
    %180 = vector.shape_cast %179 : vector<1x1x1xf32> to vector<1x1xf32>
    %181 = vector.broadcast %180 : vector<1x1xf32> to vector<256x1xf32>
    %182 = arith.addf %178, %181 : vector<256x1xf32>
    %183 = vector.broadcast %182 : vector<256x1xf32> to vector<256x3xf32>
    %184 = arith.mulf %39, %183 : vector<256x3xf32>
    %185 = arith.truncf %184 : vector<256x3xf32> to vector<256x3xbf16>
    %cst_98 = arith.constant dense<0.000000e+00> : vector<16x3xf32>
    %186 = tpu.matmul %40, %185, %cst_98 {dimension_numbers = #tpu.dot_dimension_numbers<[1], [0], [0], [1], [0, 0, 1, 1], [], []>} : vector<16x256xbf16>, vector<256x3xbf16>, vector<16x3xf32> -> vector<16x3xf32>
    %187 = arith.addf %105, %186 : vector<16x3xf32>
    %cst_99 = arith.constant dense<0.000000e+00> : vector<16xf32>
    %188 = vector.multi_reduction <add>, %187, %cst_99 [1] : vector<16x3xf32> to vector<16xf32>
    %189 = vector.shape_cast %188 : vector<16xf32> to vector<16x1xf32>
    %cst_100 = arith.constant 3.000000e+00 : f32
    %190 = vector.broadcast %cst_100 : f32 to vector<16x1xf32>
    %191 = arith.divf %189, %190 : vector<16x1xf32>
    %192 = vector.broadcast %191 : vector<16x1xf32> to vector<16x3xf32>
    %193 = arith.subf %187, %192 : vector<16x3xf32>
    %194 = arith.mulf %193, %193 : vector<16x3xf32>
    %cst_101 = arith.constant dense<0.000000e+00> : vector<16xf32>
    %195 = vector.multi_reduction <add>, %194, %cst_101 [1] : vector<16x3xf32> to vector<16xf32>
    %196 = vector.shape_cast %195 : vector<16xf32> to vector<16x1xf32>
    %cst_102 = arith.constant 3.000000e+00 : f32
    %197 = vector.broadcast %cst_102 : f32 to vector<16x1xf32>
    %198 = arith.divf %196, %197 : vector<16x1xf32>
    %199 = vector.broadcast %191 : vector<16x1xf32> to vector<16x3xf32>
    %200 = arith.subf %187, %199 : vector<16x3xf32>
    %cst_103 = arith.constant 9.99999974E-6 : f32
    %201 = vector.broadcast %cst_103 : f32 to vector<16x1xf32>
    %202 = arith.addf %198, %201 : vector<16x1xf32>
    %203 = math.rsqrt %202 : vector<16x1xf32>
    %204 = vector.broadcast %203 : vector<16x1xf32> to vector<16x3xf32>
    %205 = arith.mulf %200, %204 : vector<16x3xf32>
    %c0_104 = arith.constant 0 : index
    %c0_105 = arith.constant 0 : index
    %206 = vector.load %arg23[%c0_104, %c0_105] : memref<1x3xf32, #tpu.memory_space<vmem>>, vector<1x3xf32>
    %207 = vector.broadcast %206 : vector<1x3xf32> to vector<16x3xf32>
    %208 = arith.mulf %205, %207 : vector<16x3xf32>
    %c0_106 = arith.constant 0 : index
    %c0_107 = arith.constant 0 : index
    %209 = vector.load %arg24[%c0_106, %c0_107] : memref<1x3xf32, #tpu.memory_space<vmem>>, vector<1x3xf32>
    %210 = vector.broadcast %209 : vector<1x3xf32> to vector<16x3xf32>
    %211 = arith.addf %208, %210 : vector<16x3xf32>
    %c0_108 = arith.constant 0 : index
    %c0_109 = arith.constant 0 : index
    %212 = vector.load %arg25[%c0_108, %c0_109] : memref<16x3xf32, #tpu.memory_space<vmem>>, vector<16x3xf32>
    tpu.vector_store %arg25[%c0_108, %c0_109], %211 {strides = array<i32>} : memref<16x3xf32, #tpu.memory_space<vmem>>, vector<16x3xf32>,
    return
  }
}

</mosaic_0001>

<bundles_post_ra>
// kernel: score_network_forward.1
= control target key start
LH: loop header
LB: loop body
LE: loop exit
PB: predicated region body
PF: predicated region fallthrough
CT: control target
= control target key end

     0   :  { %v7286_v0 = vmov 0.0   ;;  %vm4954_vm0 = vmmov 0   ;;  %vm99_vm1 = vcmask 130048   ;;  %vm182_vm2 = vcmask 261120   ;;  %s7254_s4 = inlined_call_operand.vmem [shape: bf16[16,32], index: 4, kind: input, shape index: {}]   ;;  %s7255_s1 = inlined_call_operand.vmem [shape: f32[16,16], index: 1, kind: input, shape index: {}]   ;;  %s7256_s6 = inlined_call_operand.vmem [shape: bf16[32,32], index: 6, kind: input, shape index: {}]   ;;  %s7257_s5 = inlined_call_operand.vmem [shape: f32[1,32], index: 5, kind: input, shape index: {}]   ;;  %s7258_s8 = inlined_call_operand.vmem [shape: bf16[64,32], index: 8, kind: input, shape index: {}]   ;;  %s7259_s7 = inlined_call_operand.vmem [shape: f32[1,32], index: 7, kind: input, shape index: {}]   ;;  %s7260_s0 = inlined_call_operand.vmem [shape: f32[16,32], index: 0, kind: input, shape index: {}]   ;;  %s7261_s10 = inlined_call_operand.vmem [shape: bf16[32,32], index: 10, kind: input, shape index: {}]   ;;  %s7262_s9 = inlined_call_operand.vmem [shape: f32[1,32], index: 9, kind: input, shape index: {}]   ;;  %s7263_s12 = inlined_call_operand.vmem [shape: bf16[2,32,64], index: 12, kind: input, shape index: {}]   ;;  %s7264_s2 = inlined_call_operand.vmem [shape: f32[256,3], index: 2, kind: input, shape index: {}]   ;;  %s7265_s11 = inlined_call_operand.vmem [shape: f32[1,32], index: 11, kind: input, shape index: {}]   ;;  %s7266_s15 = inlined_call_operand.vmem [shape: bf16[2,32,32], index: 15, kind: input, shape index: {}]   ;;  %s7267_s14 = inlined_call_operand.vmem [shape: f32[2,1,32], index: 14, kind: input, shape index: {}]   ;;  %s7268_s13 = inlined_call_operand.vmem [shape: f32[2,1,32], index: 13, kind: input, shape index: {}]   ;;  %s7269_s16 = inlined_call_operand.vmem [shape: f32[2,1,32], index: 16, kind: input, shape index: {}]   ;;  %s7270_s3 = inlined_call_operand.vmem [shape: bf16[16,256], index: 3, kind: input, shape index: {}]   ;;  %s7271_s17 = inlined_call_operand.vmem [shape: bf16[2,64,32], index: 17, kind: input, shape index: {}]   ;;  %s7272_s21 = inlined_call_operand.vmem [shape: f32[2,1,32], index: 21, kind: input, shape index: {}]   ;;  %s7273_s19 = inlined_call_operand.vmem [shape: bf16[2,32,32], index: 19, kind: input, shape index: {}]   ;;  %s7274_s18 = inlined_call_operand.vmem [shape: f32[2,1,32], index: 18, kind: input, shape index: {}]   ;;  %s7275_s20 = inlined_call_operand.vmem [shape: f32[2,1,32], index: 20, kind: input, shape index: {}]   ;;  %s7276_s22 = inlined_call_operand.vmem [shape: f32[2,1,1], index: 22, kind: input, shape index: {}]   ;;  %s7277_s23 = inlined_call_operand.vmem [shape: f32[1,3], index: 23, kind: input, shape index: {}]   ;;  %s7278_s24 = inlined_call_operand.vmem [shape: f32[1,3], index: 24, kind: input, shape index: {}]   ;;  %s7279_s25 = inlined_call_operand.vmem [shape: f32[16,3], index: 25, kind: output, shape index: {}]  }
   0x1   :  { %7319 = sst [smem:[#allocation32_spill]] %s7254_s4  ;;  %4193 = vmatprep.subr.bf16.mxu0 %v7286_v0  ;;  %4195 = vmatprep.mubr.msk.bf16.mxu0 %vm4954_vm0, %v7286_v0  ;;  %vm279_vm3 = vcmask 523264   ;;  %vm472_vm4 = vcmask 23552  }
   0x2   :  { %7320 = sst [smem:[#allocation33_spill]] %s7255_s1  ;;  %4199 = vmatprep.subr.bf16.mxu1 %v7286_v0  ;;  %4203 = vmatprep.mubr.msk.bf16.mxu1 %vm4954_vm0, %v7286_v0 }
   0x3   :  { %7321 = sst [smem:[#allocation34_spill]] %s7256_s6 }
   0x4   :  { %7322 = sst [smem:[#allocation35_spill]] %s7257_s5 }
   0x5   :  { %7323 = sst [smem:[#allocation36_spill]] %s7258_s8 }
   0x6   :  { %7324 = sst [smem:[#allocation37_spill]] %s7259_s7  ;;  %s4955_s7 = smov 32  }
   0x7   :  { %7325 = sst [smem:[#allocation38_spill]] %s7260_s0 }
   0x8   :  { %7326 = sst [smem:[#allocation39_spill]] %s7261_s10 }
   0x9   :  { %7327 = sst [smem:[#allocation40_spill]] %s7262_s9 }
   0xa   :  { %7328 = sst [smem:[#allocation41_spill]] %s7263_s12 }
   0xb   :  { %s7329_s6 = sld [smem:[#allocation32_spill]] }
   0xc   :  { %s7330_s5 = sld [smem:[#allocation33_spill]] }
   0xd   :  { %s7331_s8 = sld [smem:[#allocation34_spill]] }
   0xe   :  { %s7332_s0 = sld [smem:[#allocation35_spill]] }
   0xf   :  { %s7333_s30 = sld [smem:[#allocation36_spill]] }
  0x10   :  { %s7334_s12 = sld [smem:[#allocation37_spill]] }
  0x11   :  { %v4353_v1 = vld [vmem:[%s7329_s6] sm:$0xff]   ;;  %s7335_s29 = sld [smem:[#allocation38_spill]] }
  0x12   :  { %v81_v2 = vld [vmem:[%s7330_s5] sm:$0xff]  ;;  %v82_v3 = vld [vmem:[%s7330_s5 + $0x8] sm:$0xff]  ;;  %4194 = vmatpush3.bf16.msra.mxu0 %v4353_v1  ;;  %s7336_s26 = sld [smem:[#allocation39_spill]] }
  0x13   :  { %v85_v4 = vpack.c.bf16 %v82_v3, %v81_v2  ;;  %4207 = vmatprep.subr.bf16.mxu0 %v7286_v0  ;;  %v4354_v5 = vld [vmem:[%s7331_s8 + $0x8] sm:$0xff]   ;;  %v4355_v6 = vld [vmem:[%s7331_s8] sm:$0xff]   ;;  %s7337_s28 = sld [smem:[#allocation40_spill]] }
  0x14   :  { %4200 = vmatpush3.bf16.msra.mxu1 %v4354_v5  ;;  %v3834_v7 = vld [vmem:[%s7332_s0] ss:$0 sm:$0xff]  ;;  %s7338_s0 = sld [smem:[#allocation41_spill]]  ;;  %v408_v5 = vld [vmem:[%s7264_s2 + $0x10] sm:$0xff] }
  0x15   :  { %4196 = vmatmul.mubr.msk.bf16.vlgmr.msra.gmra.mxu0 %vm99_vm1, %v85_v4  ;;  %4201 = vmatprep.subr.bf16.mxu1 %v7286_v0  ;;  %v4356_v25 = vld [vmem:[%s7333_s30 + $0x18] sm:$0xff]   ;;  %v4357_v26 = vld [vmem:[%s7333_s30 + $0x10] sm:$0xff]   ;;  %v4358_v27 = vld [vmem:[%s7333_s30 + $0x8] sm:$0xff]  }
  0x16   :  { %4215 = vmatprep.mubr.msk.bf16.mxu0 %vm4954_vm0, %v7286_v0  ;;  %4208 = vmatpush3.bf16.msra.mxu0 %v4356_v25  ;;  %v4359_v28 = vld [vmem:[%s7333_s30] sm:$0xff]   ;;  %v407_v4 = vld [vmem:[%s7264_s2 + $0x8] sm:$0xff] }
  0x17   :  { %4209 = vmatprep.subr.bf16.mxu0 %v7286_v0  ;;  %v3839_v30 = vld [vmem:[%s7334_s12] ss:$0 sm:$0xff]  ;;  %v228_v39 = vld [vmem:[%s7335_s29 + $0x8] sm:$0xff] }
  0x18   :  { %4202 = vmatpush3.bf16.msra.mxu1 %v4355_v6  ;;  %v227_v38 = vld [vmem:[%s7335_s29] sm:$0xff]  ;;  %v4360_v45 = vld [vmem:[%s7336_s26 + $0x8] sm:$0xff]   ;;  %v441_v6 = vmul.f32 %v407_v4, %v407_v4 }
  0x19   :  { %4219 = vmatprep.subr.bf16.mxu1 %v7286_v0  ;;  %v4361_v46 = vld [vmem:[%s7336_s26] sm:$0xff]  }
  0x1a   :  { %4210 = vmatpush3.bf16.msra.mxu0 %v4357_v26  ;;  %v3843_v47 = vld [vmem:[%s7337_s28] ss:$0 sm:$0xff]  ;;  %v4362_v2 = vld [vmem:[%s7338_s0 + $0x8] sm:$0xff]  }
  0x1b   :  { %4211 = vmatprep.subr.bf16.mxu0 %v7286_v0  ;;  %v4363_v3 = vld [vmem:[%s7338_s0] sm:$0xff]  }
  0x1e   :  { %4212 = vmatpush3.bf16.msra.mxu0 %v4358_v27 }
  0x1f   :  { %4213 = vmatprep.subr.bf16.mxu0 %v7286_v0 }
  0x22   :  { %4214 = vmatpush3.bf16.msra.mxu0 %v4359_v28 }
  0xd5   :  { %v137_v8 = vpop.f32.mrf.mxu0 }
  0xd6   :  { %v138_v9 = vadd.f32 %v3834_v7, %v137_v8  ;;  %v409_v8 = vld [vmem:[%s7264_s2 + $0x18] sm:$0xff] }
  0xd7   :  { %v4197_v10 = vpop.f32.mrf.mxu0 }
  0xd8   :  { %v3837_v11 = vmul.f32 -1.442695, %v138_v9  ;;  %v406_v10 = vld [vmem:[%s7264_s2] sm:$0xff] }
  0xd9   :  { %v140_v12 = vpop.f32.mrf.mxu0 }
  0xda   :  { %4379 = vpow2.f32 %v3837_v11  ;;  %v141_v13 = vadd.f32 %v3834_v7, %v140_v12  ;;  %v442_v7 = vmul.f32 %v408_v5, %v408_v5  ;;  %v415_v11 = vld [vmem:[%s7264_s2 + $0x48] sm:$0xff] }
  0xdb   :  { %v4198_v14 = vpop.f32.mrf.mxu0 }
  0xdc   :  { %v3838_v15 = vmul.f32 -1.442695, %v141_v13  ;;  %v479_v12 = vsel %vm472_vm4, %v442_v7, 0.0  ;;  %v440_v14 = vmul.f32 %v406_v10, %v406_v10  ;;  %v423_v7 = vld [vmem:[%s7264_s2 + $0x88] sm:$0xff]  ;;  %v426_v10 = vld [vmem:[%s7264_s2 + $0xa0] sm:$0xff] }
  0xde   :  { %4381 = vpow2.f32 %v3838_v15  ;;  %v410_v15 = vld [vmem:[%s7264_s2 + $0x20] sm:$0xff] }
  0xe7   :  { %v4380_v16 = vpop.eup %4379 }
  0xe8   :  { %v150_v17 = vadd.f32 1.0, %v4380_v16  ;;  %v449_v16 = vmul.f32 %v415_v11, %v415_v11  ;;  %v425_v11 = vld [vmem:[%s7264_s2 + $0x98] sm:$0xff] }
  0xea   :  { %4383 = vrcp.f32 %v150_v17  ;;  %v418_v17 = vld [vmem:[%s7264_s2 + $0x60] sm:$0xff] }
  0xeb   :  { %v4382_v18 = vpop.eup %4381 }
  0xec   :  { %v151_v19 = vadd.f32 1.0, %v4382_v18  ;;  %v473_v18 = vsel %vm472_vm4, %v440_v14, 0.0 }
  0xee   :  { %4385 = vrcp.f32 %v151_v19 }
  0xf7   :  { %v4384_v20 = vpop.eup %4383 }
  0xf8   :  { %v156_v22 = vmul.f32 %v4384_v20, %v138_v9  ;;  %v476_v9 = vsel %vm472_vm4, %v441_v6, 0.0  ;;  %v444_v20 = vmul.f32 %v410_v15, %v410_v15  ;;  %v424_v6 = vld [vmem:[%s7264_s2 + $0x90] sm:$0xff]  ;;  %v459_v15 = vmul.f32 %v425_v11, %v425_v11 }
  0xf9   :  { %477 = vadd.xlane.f32.xlu1 %v476_v9  ;;  %v457_v9 = vmul.f32 %v423_v7, %v423_v7 }
  0xfa   :  { %v485_v25 = vsel %vm472_vm4, %v444_v20, 0.0  ;;  %v530_v20 = vsel %vm472_vm4, %v459_v15, 0.0 }
  0xfb   :  { %v4386_v21 = vpop.eup %4385  ;;  %v524_v14 = vsel %vm472_vm4, %v457_v9, 0.0 }
  0xfc   :  { %v157_v23 = vmul.f32 %v4386_v21, %v141_v13  ;;  %v443_v13 = vmul.f32 %v409_v8, %v409_v8  ;;  %v500_v21 = vsel %vm472_vm4, %v449_v16, 0.0  ;;  %v458_v8 = vmul.f32 %v424_v6, %v424_v6  ;;  %v428_v16 = vld [vmem:[%s7264_s2 + $0xb0] sm:$0xff]  ;;  %v5343_v6 = vld [vmem:[%s7267_s14] ss:$0 sm:$0xff] }
  0xfd   :  { %480 = vadd.xlane.f32.xlu1 %v479_v12 }
  0xfe   :  { %v162_v24 = vpack.c.bf16 %v157_v23, %v156_v22  ;;  %v482_v19 = vsel %vm472_vm4, %v443_v13, 0.0  ;;  %v452_v22 = vmul.f32 %v418_v17, %v418_v17  ;;  %v411_v23 = vld [vmem:[%s7264_s2 + $0x28] sm:$0xff]  ;;  %v527_v12 = vsel %vm472_vm4, %v458_v8, 0.0 }
  0xff   :  { %v445_v26 = vmul.f32 %v411_v23, %v411_v23  ;;  %v460_v13 = vmul.f32 %v426_v10, %v426_v10  ;;  %v427_v17 = vld [vmem:[%s7264_s2 + $0xa8] sm:$0xff]  ;;  %v429_v23 = vld [vmem:[%s7264_s2 + $0xb8] sm:$0xff] }
 0x100   :  { %4204 = vmatmul.mubr.msk.bf16.vlgmr.msra.gmra.mxu1 %vm182_vm2, %v162_v24  ;;  %v420_v24 = vld [vmem:[%s7264_s2 + $0x70] sm:$0xff]  ;;  %v509_v27 = vsel %vm472_vm4, %v452_v22, 0.0  ;;  %v430_v22 = vld [vmem:[%s7264_s2 + $0xc0] sm:$0xff] }
 0x101   :  { %4223 = vmatprep.mubr.msk.bf16.mxu1 %vm4954_vm0, %v7286_v0  ;;  %4220 = vmatpush3.bf16.msra.mxu1 %v4360_v45  ;;  %v454_v28 = vmul.f32 %v420_v24, %v420_v24  ;;  %v417_v45 = vld [vmem:[%s7264_s2 + $0x58] sm:$0xff] }
 0x102   :  { %4221 = vmatprep.subr.bf16.mxu1 %v7286_v0  ;;  %483 = vadd.xlane.f32.xlu1 %v482_v19  ;;  %v462_v19 = vmul.f32 %v428_v16, %v428_v16 }
 0x104   :  { %v539_v24 = vsel %vm472_vm4, %v462_v19, 0.0 }
 0x105   :  { %4222 = vmatpush3.bf16.msra.mxu1 %v4361_v46 }
 0x106   :  { %4227 = vmatprep.subr.bf16.mxu1 %v7286_v0  ;;  %486 = vadd.xlane.f32.xlu1 %v485_v25  ;;  %v464_v25 = vmul.f32 %v430_v22, %v430_v22 }
 0x1c0   :  { %v220_v29 = vpop.f32.mrf.mxu1 }
 0x1c1   :  { %v221_v33 = vadd.f32 %v3839_v30, %v220_v29  ;;  %v412_v29 = vld [vmem:[%s7264_s2 + $0x30] sm:$0xff] }
 0x1c2   :  { %v4205_v31 = vpop.f32.mrf.mxu1 }
 0x1c3   :  { %v488_v31 = vsel %vm472_vm4, %v445_v26, 0.0 }
 0x1c4   :  { %v223_v32 = vpop.f32.mrf.mxu1  ;;  %489 = vadd.xlane.f32.xlu1 %v488_v31  ;;  %v545_v31 = vsel %vm472_vm4, %v464_v25, 0.0 }
 0x1c5   :  { %v224_v34 = vadd.f32 %v3839_v30, %v223_v32  ;;  %v422_v30 = vld [vmem:[%s7264_s2 + $0x80] sm:$0xff]  ;;  %v446_v32 = vmul.f32 %v412_v29, %v412_v29  ;;  %v431_v29 = vld [vmem:[%s7264_s2 + $0xc8] sm:$0xff] }
 0x1c6   :  { %v4206_v35 = vpop.f32.mrf.mxu1 }
 0x1c7   :  { %v4341_v36 = vpack.i.bf16 %v224_v34, %v221_v33  ;;  %v515_v33 = vsel %vm472_vm4, %v454_v28, 0.0  ;;  %v456_v34 = vmul.f32 %v422_v30, %v422_v30  ;;  %v413_v35 = vld [vmem:[%s7264_s2 + $0x38] sm:$0xff]  ;;  %v432_v28 = vld [vmem:[%s7264_s2 + $0xd0] sm:$0xff]  ;;  %v5298_v30 = vpop.xlane.xlu1 %477 }
 0x1c9   :  { %4342 = vrot.lane.b32.xlu0 %v4341_v36, %s4955_s7  ;;  %v491_v36 = vsel %vm472_vm4, %v446_v32, 0.0  ;;  %v466_v32 = vmul.f32 %v432_v28, %v432_v28 }
 0x1ca   :  { %492 = vadd.xlane.f32.xlu1 %v491_v36  ;;  %v433_v36 = vld [vmem:[%s7264_s2 + $0xd8] sm:$0xff] }
 0x1e8   :  { %474 = vadd.xlane.f32.xlu0 %v473_v18  ;;  %v533_v18 = vsel %vm472_vm4, %v460_v13, 0.0 }
 0x1ec   :  { %501 = vadd.xlane.f32.xlu0 %v500_v21  ;;  %v461_v21 = vmul.f32 %v427_v17, %v427_v17 }
 0x1ee   :  { %v536_v26 = vsel %vm472_vm4, %v461_v21, 0.0 }
 0x1f0   :  { %510 = vadd.xlane.f32.xlu0 %v509_v27  ;;  %v463_v27 = vmul.f32 %v429_v23, %v429_v23 }
 0x1f4   :  { %516 = vadd.xlane.f32.xlu0 %v515_v33  ;;  %v542_v33 = vsel %vm472_vm4, %v463_v27, 0.0 }
 0x23b   :  { %v4343_v37 = vpop.permute.xlu0 %4342 }
 0x23c   :  { %v4345_v40 = vunpack.i.h.bf16 %v4343_v37  ;;  %v4344_v41 = vunpack.i.l.bf16 %v4343_v37  ;;  %v447_v37 = vmul.f32 %v413_v35, %v413_v35  ;;  %v434_v35 = vld [vmem:[%s7264_s2 + $0xe0] sm:$0xff] }
 0x23e   :  { %v237_v42 = vsel %vm182_vm2, %v227_v38, %v4344_v41  ;;  %v238_v43 = vsel %vm182_vm2, %v228_v39, %v4345_v40  ;;  %v521_v38 = vsel %vm472_vm4, %v456_v34, 0.0  ;;  %v414_v39 = vld [vmem:[%s7264_s2 + $0x40] sm:$0xff]  ;;  %v494_v40 = vsel %vm472_vm4, %v447_v37, 0.0 }
 0x23f   :  { %v247_v44 = vpack.c.bf16 %v238_v43, %v237_v42  ;;  %522 = vadd.xlane.f32.xlu0 %v521_v38  ;;  %v448_v41 = vmul.f32 %v414_v39, %v414_v39  ;;  %v416_v42 = vld [vmem:[%s7264_s2 + $0x50] sm:$0xff]  ;;  %495 = vadd.xlane.f32.xlu1 %v494_v40  ;;  %v465_v34 = vmul.f32 %v431_v29, %v431_v29  ;;  %v551_v37 = vsel %vm472_vm4, %v466_v32, 0.0  ;;  %v5309_v39 = vpop.xlane.xlu1 %480 }
 0x240   :  { %v468_v38 = vmul.f32 %v434_v35, %v434_v35 }
 0x241   :  { %4216 = vmatmul.mubr.msk.bf16.vlgmr.msra.gmra.mxu0 %vm279_vm3, %v247_v44  ;;  %v497_v43 = vsel %vm472_vm4, %v448_v41, 0.0  ;;  %v450_v44 = vmul.f32 %v416_v42, %v416_v42  ;;  %v548_v40 = vsel %vm472_vm4, %v465_v34, 0.0  ;;  %v467_v41 = vmul.f32 %v433_v36, %v433_v36  ;;  %v436_v42 = vld [vmem:[%s7264_s2 + $0xf0] sm:$0xff] }
 0x243   :  { %498 = vadd.xlane.f32.xlu1 %v497_v43  ;;  %v503_v46 = vsel %vm472_vm4, %v450_v44, 0.0  ;;  %v435_v43 = vld [vmem:[%s7264_s2 + $0xe8] sm:$0xff]  ;;  %v557_v44 = vsel %vm472_vm4, %v468_v38, 0.0 }
 0x247   :  { %504 = vadd.xlane.f32.xlu1 %v503_v46  ;;  %v554_v46 = vsel %vm472_vm4, %v467_v41, 0.0 }
 0x301   :  { %v317_v48 = vpop.f32.mrf.mxu0 }
 0x302   :  { %v318_v49 = vadd.f32 %v3843_v47, %v317_v48  ;;  %v419_v48 = vld [vmem:[%s7264_s2 + $0x68] sm:$0xff] }
 0x303   :  { %v4217_v50 = vpop.f32.mrf.mxu0 }
 0x304   :  { %v3849_v51 = vmul.f32 -1.442695, %v318_v49  ;;  %v453_v50 = vmul.f32 %v419_v48, %v419_v48  ;;  %v437_v48 = vld [vmem:[%s7264_s2 + $0xf8] sm:$0xff] }
 0x305   :  { %v320_v52 = vpop.f32.mrf.mxu0 }
 0x306   :  { %4387 = vpow2.f32 %v3849_v51  ;;  %v321_v53 = vadd.f32 %v3843_v47, %v320_v52  ;;  %v451_v47 = vmul.f32 %v417_v45, %v417_v45  ;;  %v421_v51 = vld [vmem:[%s7264_s2 + $0x78] sm:$0xff]  ;;  %v512_v52 = vsel %vm472_vm4, %v453_v50, 0.0 }
 0x307   :  { %v4218_v54 = vpop.f32.mrf.mxu0  ;;  %v470_v45 = vmul.f32 %v436_v42, %v436_v42 }
 0x308   :  { %v3850_v55 = vmul.f32 -1.442695, %v321_v53 }
 0x309   :  { %v563_v50 = vsel %vm472_vm4, %v470_v45, 0.0 }
 0x30a   :  { %4389 = vpow2.f32 %v3850_v55 }
 0x313   :  { %v4388_v56 = vpop.eup %4387 }
 0x314   :  { %v330_v57 = vadd.f32 1.0, %v4388_v56  ;;  %v3851_v56 = vld [vmem:[%s7265_s11] ss:$0 sm:$0xff]  ;;  %s4956_s11 = smov 96  }
 0x316   :  { %4391 = vrcp.f32 %v330_v57 }
 0x317   :  { %v4390_v58 = vpop.eup %4389 }
 0x318   :  { %v331_v59 = vadd.f32 1.0, %v4390_v58 }
 0x31a   :  { %4393 = vrcp.f32 %v331_v59 }
 0x323   :  { %v4392_v60 = vpop.eup %4391 }
 0x324   :  { %v336_v62 = vmul.f32 %v4392_v60, %v318_v49  ;;  %v506_v49 = vsel %vm472_vm4, %v451_v47, 0.0  ;;  %v469_v47 = vmul.f32 %v435_v43, %v435_v43 }
 0x325   :  { %507 = vadd.xlane.f32.xlu1 %v506_v49  ;;  %v5323_v49 = vpop.xlane.xlu1 %483 }
 0x326   :  { %7339 = vst [vmem:[#allocation2_spill] sm:$0xff] %v5323_v49 }
 0x327   :  { %v4394_v61 = vpop.eup %4393 }
 0x328   :  { %v337_v63 = vmul.f32 %v4394_v61, %v321_v53  ;;  %v455_v53 = vmul.f32 %v421_v51, %v421_v51  ;;  %v560_v51 = vsel %vm472_vm4, %v469_v47, 0.0 }
 0x329   :  { %513 = vadd.xlane.f32.xlu1 %v512_v52  ;;  %v471_v52 = vmul.f32 %v437_v48, %v437_v48 }
 0x32a   :  { %v342_v1 = vpack.c.bf16 %v337_v63, %v336_v62  ;;  %v518_v54 = vsel %vm472_vm4, %v455_v53, 0.0  ;;  %v4364_v63 = vld [vmem:[%s7266_s15 + $0x8] sm:$0xff]   ;;  %v5327_v53 = vpop.xlane.xlu1 %486 }
 0x32b   :  { %4235 = vmatprep.subr.bf16.mxu0 %v4364_v63  ;;  %7340 = vst [vmem:[#allocation3_spill] sm:$0xff] %v5327_v53 }
 0x32c   :  { %4224 = vmatmul.mubr.msk.bf16.vlgmr.msra.gmra.mxu1 %vm182_vm2, %v342_v1  ;;  %v4365_v1 = vld [vmem:[%s7266_s15] sm:$0xff]   ;;  %4236 = vmatpush3.bf16.msra.mxu0 %v4364_v63  ;;  %v645_v63 = vlaneseq }
 0x32d   :  { %4231 = vmatprep.mubr.msk.bf16.mxu1 %vm4954_vm0, %v7286_v0  ;;  %4228 = vmatpush3.bf16.msra.mxu1 %v4362_v2 }
 0x32e   :  { %4229 = vmatprep.subr.bf16.mxu1 %v7286_v0  ;;  %519 = vadd.xlane.f32.xlu1 %v518_v54  ;;  %v566_v54 = vsel %vm472_vm4, %v471_v52, 0.0 }
 0x32f   :  { %4237 = vmatprep.subr.bf16.mxu0 %v4365_v1 }
 0x330   :  { %4238 = vmatpush3.bf16.msra.mxu0 %v4365_v1  ;;  %v5338_v1 = vpop.xlane.xlu0 %474 }
 0x331   :  { %4230 = vmatpush3.bf16.msra.mxu1 %v4363_v3 }
 0x334   :  { %v5351_v10 = vpop.xlane.xlu0 %501 }
 0x335   :  { %7346 = vst [vmem:[#allocation9_spill] sm:$0xff] %v5351_v10 }
 0x3ec   :  { %v399_v55 = vpop.f32.mrf.mxu1 }
 0x3ed   :  { %v5241_v59 = vadd.f32 %v3851_v56, %v399_v55  ;;  %v5330_v55 = vpop.xlane.xlu1 %489 }
 0x3ee   :  { %v4225_v57 = vpop.f32.mrf.mxu1  ;;  %7341 = vst [vmem:[#allocation4_spill] sm:$0xff] %v5330_v55 }
 0x3f0   :  { %v402_v58 = vpop.f32.mrf.mxu1 }
 0x3f1   :  { %v5243_v60 = vadd.f32 %v3851_v56, %v402_v58  ;;  %v5332_v56 = vpop.xlane.xlu1 %492 }
 0x3f2   :  { %v4226_v61 = vpop.f32.mrf.mxu1  ;;  %7342 = vst [vmem:[#allocation5_spill] sm:$0xff] %v5332_v56 }
 0x3f3   :  { %v573_v62 = vpack.c.bf16 %v5243_v60, %v5241_v59  ;;  %v4957_v61 = vmov 1966171168  }
 0x3f5   :  { %4232 = vmatmul.mubr.msk.bf16.vlgmr.msra.gmra.mxu1 %vm182_vm2, %v573_v62  ;;  %v5334_v57 = vpop.xlane.xlu1 %495  ;;  %v643_v62 = vunpack.c.l.s4 %v4957_v61 }
 0x3f6   :  { %7343 = vst [vmem:[#allocation6_spill] sm:$0xff] %v5334_v57 }
 0x3f9   :  { %v5336_v58 = vpop.xlane.xlu1 %498 }
 0x3fa   :  { %7344 = vst [vmem:[#allocation7_spill] sm:$0xff] %v5336_v58 }
 0x3fd   :  { %v5345_v7 = vpop.xlane.xlu1 %504 }
 0x3fe   :  { %7345 = vst [vmem:[#allocation8_spill] sm:$0xff] %v5345_v7 }
 0x401   :  { %v5353_v11 = vpop.xlane.xlu1 %507 }
 0x402   :  { %7347 = vst [vmem:[#allocation10_spill] sm:$0xff] %v5353_v11 }
 0x405   :  { %v5358_v16 = vpop.xlane.xlu1 %513 }
 0x406   :  { %7349 = vst [vmem:[#allocation12_spill] sm:$0xff] %v5358_v16 }
 0x409   :  { %v5370_v22 = vpop.xlane.xlu1 %519 }
 0x40a   :  { %7351 = vst [vmem:[#allocation14_spill] sm:$0xff] %v5370_v22 }
 0x4b5   :  { %v5254_v2 = vpop.f32.mrf.mxu1 }
 0x4b6   :  { %821 = vrot.lane.b32.xlu1 %v5254_v2, %s4956_s11  ;;  %v637_v8 = vadd.f32 %v5343_v6, %v5254_v2 }
 0x4b7   :  { %v4233_v3 = vpop.f32.mrf.mxu1 }
 0x4b8   :  { %v644_v3 = vunpack.c.0.s8 %v643_v62  ;;  %v641_v13 = vcombine.high %v637_v8, %v637_v8 }
 0x4b9   :  { %v5258_v4 = vpop.f32.mrf.mxu1 }
 0x4ba   :  { %823 = vrot.lane.b32.xlu0 %v5258_v4, %s4956_s11 }
 0x4bb   :  { %v4234_v5 = vpop.f32.mrf.mxu1 }
 0x4bc   :  { %v646_v5 = vshrl.u32 %v645_v63, 7 }
 0x4be   :  { %v5349_v9 = vsub.s32 %v644_v3, %v646_v5  ;;  %v5372_v25 = vsub.s32 0, %v646_v5 }
 0x4c0   :  { %v655_v17 = vrot.slane %v641_v13, %v5349_v9  ;;  %7352 = vst [vmem:[#allocation15_spill] sm:$0xff] %v5372_v25 }
 0x4c2   :  { %v657_v21 = vcombine.high %v655_v17, %v655_v17 }
 0x4c4   :  { %v685_v35 = vrot.slane %v657_v21, %v5349_v9 }
 0x4c6   :  { %v762_v62 = vrot.slane %v685_v35, %v5372_v25 }
 0x4d9   :  { %528 = vadd.xlane.f32.xlu0 %v527_v12  ;;  %v648_v12 = vrot.slane %v637_v8, %v5349_v9 }
 0x4da   :  { %525 = vadd.xlane.f32.xlu1 %v524_v14  ;;  %v5356_v14 = vpop.xlane.xlu0 %510 }
 0x4db   :  { %7348 = vst [vmem:[#allocation11_spill] sm:$0xff] %v5356_v14  ;;  %v656_v15 = vcombine.high %v648_v12, %v648_v12 }
 0x4dd   :  { %534 = vadd.xlane.f32.xlu0 %v533_v18  ;;  %v664_v18 = vrot.slane %v648_v12, %v5349_v9  ;;  %v678_v2 = vrot.slane %v656_v15, %v5349_v9 }
 0x4de   :  { %531 = vadd.xlane.f32.xlu1 %v530_v20  ;;  %v5363_v19 = vpop.xlane.xlu0 %516  ;;  %v5368_v20 = vld [vmem:[%s7268_s13] ss:$0 sm:$0xff] }
 0x4df   :  { %7350 = vst [vmem:[#allocation13_spill] sm:$0xff] %v5363_v19  ;;  %v686_v23 = vcombine.high %v664_v18, %v664_v18  ;;  %v867_v27 = vmul.f32 %v5368_v20, %v5298_v30  ;;  %v868_v28 = vmul.f32 %v5368_v20, %v5309_v39  ;;  %v866_v29 = vmul.f32 %v5368_v20, %v5338_v1 }
 0x4e0   :  { %v870_v32 = vmul.f32 %v5368_v20, %v5327_v53  ;;  %v5389_v34 = vmul.f32 %v5368_v20, %v5356_v14  ;;  %v871_v36 = vmul.f32 %v5368_v20, %v5330_v55  ;;  %v873_v38 = vmul.f32 %v5368_v20, %v5334_v57 }
 0x4e1   :  { %540 = vadd.xlane.f32.xlu0 %v539_v24  ;;  %v688_v24 = vcombine.high %v678_v2, %v678_v2  ;;  %v742_v41 = vrot.slane %v664_v18, %v5372_v25  ;;  %v746_v42 = vrot.slane %v678_v2, %v5372_v25  ;;  %v750_v43 = vrot.slane %v686_v23, %v5372_v25 }
 0x4e2   :  { %537 = vadd.xlane.f32.xlu1 %v536_v26  ;;  %v671_v26 = vrot.slane %v655_v17, %v5349_v9  ;;  %v876_v47 = vmul.f32 %v5368_v20, %v5345_v7  ;;  %v877_v48 = vmul.f32 %v5368_v20, %v5353_v11  ;;  %v879_v63 = vmul.f32 %v5368_v20, %v5358_v16 }
 0x4e3   :  { %v881_v3 = vmul.f32 %v5368_v20, %v5370_v22  ;;  %v689_v18 = vcombine.high %v685_v35, %v685_v35 }
 0x4e4   :  { %v758_v45 = vrot.slane %v671_v26, %v5372_v25  ;;  %v687_v17 = vcombine.high %v671_v26, %v671_v26 }
 0x4e5   :  { %546 = vadd.xlane.f32.xlu0 %v545_v31  ;;  %v869_v31 = vmul.f32 %v5368_v20, %v5323_v49 }
 0x4e6   :  { %543 = vadd.xlane.f32.xlu1 %v542_v33  ;;  %v875_v33 = vmul.f32 %v5368_v20, %v5351_v10 }
 0x4e9   :  { %552 = vadd.xlane.f32.xlu0 %v551_v37  ;;  %v872_v37 = vmul.f32 %v5368_v20, %v5332_v56 }
 0x4ea   :  { %549 = vadd.xlane.f32.xlu1 %v548_v40  ;;  %v5398_v40 = vpop.xlane.xlu0 %522 }
 0x4eb   :  { %7353 = vst [vmem:[#allocation16_spill] sm:$0xff] %v5398_v40 }
 0x4ed   :  { %558 = vadd.xlane.f32.xlu0 %v557_v44  ;;  %v754_v44 = vrot.slane %v688_v24, %v5372_v25 }
 0x4ee   :  { %555 = vadd.xlane.f32.xlu1 %v554_v46  ;;  %v874_v46 = vmul.f32 %v5368_v20, %v5336_v58 }
 0x4f1   :  { %564 = vadd.xlane.f32.xlu0 %v563_v50 }
 0x4f2   :  { %561 = vadd.xlane.f32.xlu1 %v560_v51 }
 0x4f6   :  { %567 = vadd.xlane.f32.xlu1 %v566_v54 }
 0x528   :  { %v5411_v50 = vpop.permute.xlu1 %821 }
 0x529   :  { %v827_v51 = vadd.f32 %v5411_v50, %v742_v41  ;;  %v829_v52 = vadd.f32 %v5411_v50, %v746_v42  ;;  %v831_v54 = vadd.f32 %v5411_v50, %v750_v43  ;;  %v833_v61 = vadd.f32 %v5411_v50, %v754_v44 }
 0x52a   :  { %v835_v5 = vadd.f32 %v5411_v50, %v758_v45  ;;  %v837_v23 = vadd.f32 %v5411_v50, %v762_v62 }
 0x52b   :  { %v5423_v8 = vadd.f32 %v866_v29, %v827_v51  ;;  %v5425_v12 = vadd.f32 %v868_v28, %v829_v52  ;;  %v5427_v13 = vadd.f32 %v870_v32, %v831_v54  ;;  %v5429_v15 = vadd.f32 %v872_v37, %v833_v61 }
 0x52c   :  { %v5431_v2 = vpop.permute.xlu0 %823  ;;  %v5433_v21 = vadd.f32 %v874_v46, %v835_v5  ;;  %v766_v52 = vrot.slane %v687_v17, %v5372_v25  ;;  %v770_v5 = vrot.slane %v689_v18, %v5372_v25 }
 0x52d   :  { %v828_v24 = vadd.f32 %v5431_v2, %v742_v41  ;;  %v3860_v0 = vmul.f32 -1.442695, %v5423_v8  ;;  %v830_v29 = vadd.f32 %v5431_v2, %v746_v42  ;;  %v3862_v28 = vmul.f32 -1.442695, %v5425_v12 }
 0x52e   :  { %v832_v32 = vadd.f32 %v5431_v2, %v750_v43  ;;  %v3864_v37 = vmul.f32 -1.442695, %v5427_v13  ;;  %v834_v26 = vadd.f32 %v5431_v2, %v754_v44  ;;  %v3866_v35 = vmul.f32 -1.442695, %v5429_v15 }
 0x52f   :  { %v5444_v46 = vadd.f32 %v867_v27, %v828_v24  ;;  %4395 = vpow2.f32 %v3860_v0  ;;  %v5446_v51 = vadd.f32 %v869_v31, %v830_v29  ;;  %v836_v41 = vadd.f32 %v5431_v2, %v758_v45 }
 0x530   :  { %4397 = vpow2.f32 %v3862_v28  ;;  %v5450_v42 = vadd.f32 %v871_v36, %v832_v32  ;;  %v5452_v54 = vadd.f32 %v873_v38, %v834_v26  ;;  %v839_v31 = vadd.f32 %v5411_v50, %v766_v52 }
 0x531   :  { %v3861_v43 = vmul.f32 -1.442695, %v5444_v46  ;;  %v3863_v44 = vmul.f32 -1.442695, %v5446_v51  ;;  %4399 = vpow2.f32 %v3864_v37  ;;  %v5456_v61 = vadd.f32 %v875_v33, %v836_v41 }
 0x532   :  { %v3865_v0 = vmul.f32 -1.442695, %v5450_v42  ;;  %4401 = vpow2.f32 %v3866_v35  ;;  %v3867_v27 = vmul.f32 -1.442695, %v5452_v54  ;;  %v3868_v36 = vmul.f32 -1.442695, %v5433_v21 }
 0x533   :  { %4403 = vpow2.f32 %v3861_v43  ;;  %v838_v38 = vadd.f32 %v5431_v2, %v762_v62  ;;  %v5463_v45 = vadd.f32 %v876_v47, %v837_v23  ;;  %v3869_v33 = vmul.f32 -1.442695, %v5456_v61 }
 0x534   :  { %4405 = vpow2.f32 %v3863_v44  ;;  %v840_v17 = vadd.f32 %v5431_v2, %v766_v52  ;;  %v5471_v29 = vadd.f32 %v5389_v34, %v839_v31  ;;  %v842_v62 = vadd.f32 %v5431_v2, %v770_v5 }
 0x535   :  { %4407 = vpow2.f32 %v3865_v0  ;;  %v5468_v24 = vadd.f32 %v877_v48, %v838_v38  ;;  %v3870_v47 = vmul.f32 -1.442695, %v5463_v45  ;;  %v880_v48 = vmul.f32 %v5368_v20, %v5363_v19 }
 0x536   :  { %4409 = vpow2.f32 %v3867_v27  ;;  %v5473_v28 = vadd.f32 %v879_v63, %v840_v17  ;;  %v5478_v23 = vadd.f32 %v881_v3, %v842_v62  ;;  %v3872_v34 = vmul.f32 -1.442695, %v5471_v29 }
 0x537   :  { %4411 = vpow2.f32 %v3868_v36  ;;  %v3871_v18 = vmul.f32 -1.442695, %v5468_v24  ;;  %v841_v63 = vadd.f32 %v5411_v50, %v770_v5 }
 0x538   :  { %4413 = vpow2.f32 %v3869_v33  ;;  %v3873_v32 = vmul.f32 -1.442695, %v5473_v28  ;;  %v3875_v37 = vmul.f32 -1.442695, %v5478_v23 }
 0x539   :  { %4415 = vpow2.f32 %v3870_v47  ;;  %v5486_v43 = vadd.f32 %v880_v48, %v841_v63 }
 0x53a   :  { %4417 = vpow2.f32 %v3871_v18 }
 0x53b   :  { %4419 = vpow2.f32 %v3873_v32  ;;  %v3874_v33 = vmul.f32 -1.442695, %v5486_v43 }
 0x53c   :  { %v4396_v26 = vpop.eup %4395  ;;  %4421 = vpow2.f32 %v3872_v34 }
 0x53d   :  { %v4398_v35 = vpop.eup %4397  ;;  %v1026_v41 = vadd.f32 1.0, %v4396_v26  ;;  %4423 = vpow2.f32 %v3875_v37 }
 0x53e   :  { %v4400_v52 = vpop.eup %4399  ;;  %v1028_v3 = vadd.f32 1.0, %v4398_v35 }
 0x53f   :  { %v4402_v44 = vpop.eup %4401  ;;  %v1030_v0 = vadd.f32 1.0, %v4400_v52  ;;  %4425 = vrcp.f32 %v1026_v41  ;;  %v5491_v41 = vadd.f32 %v5343_v6, %v5258_v4 }
 0x540   :  { %v4404_v27 = vpop.eup %4403  ;;  %4427 = vrcp.f32 %v1028_v3  ;;  %v1032_v48 = vadd.f32 1.0, %v4402_v44 }
 0x541   :  { %v4406_v31 = vpop.eup %4405  ;;  %v1027_v36 = vadd.f32 1.0, %v4404_v27  ;;  %4429 = vrcp.f32 %v1030_v0 }
 0x542   :  { %v4408_v38 = vpop.eup %4407  ;;  %v1029_v5 = vadd.f32 1.0, %v4406_v31 }
 0x543   :  { %v4410_v17 = vpop.eup %4409  ;;  %4431 = vrcp.f32 %v1027_v36  ;;  %v1031_v62 = vadd.f32 1.0, %v4408_v38  ;;  %v697_v36 = vrot.slane %v5491_v41, %v5349_v9 }
 0x544   :  { %v4412_v47 = vpop.eup %4411  ;;  %4433 = vrcp.f32 %v1029_v5  ;;  %v1033_v18 = vadd.f32 1.0, %v4410_v17 }
 0x545   :  { %v4414_v32 = vpop.eup %4413  ;;  %4435 = vrcp.f32 %v1031_v62  ;;  %v1034_v63 = vadd.f32 1.0, %v4412_v47 }
 0x546   :  { %v1035_v34 = vadd.f32 1.0, %v4414_v32  ;;  %4437 = vpow2.f32 %v3874_v33  ;;  %v4416_v37 = vpop.eup %4415 }
 0x547   :  { %4439 = vrcp.f32 %v1033_v18  ;;  %v4418_v26 = vpop.eup %4417  ;;  %v1036_v38 = vadd.f32 1.0, %v4416_v37  ;;  %v713_v18 = vrot.slane %v697_v36, %v5349_v9 }
 0x548   :  { %4441 = vrcp.f32 %v1035_v34  ;;  %v4420_v35 = vpop.eup %4419  ;;  %v1037_v0 = vadd.f32 1.0, %v4418_v26 }
 0x549   :  { %4443 = vrcp.f32 %v1032_v48  ;;  %v4422_v52 = vpop.eup %4421  ;;  %v1039_v31 = vadd.f32 1.0, %v4420_v35 }
 0x54a   :  { %4445 = vrcp.f32 %v1034_v63  ;;  %v4424_v3 = vpop.eup %4423  ;;  %v1038_v33 = vadd.f32 1.0, %v4422_v52 }
 0x54b   :  { %4447 = vrcp.f32 %v1037_v0 }
 0x54c   :  { %v4426_v27 = vpop.eup %4425  ;;  %4449 = vrcp.f32 %v1039_v31 }
 0x54d   :  { %v4428_v44 = vpop.eup %4427  ;;  %v1122_v4 = vmul.f32 %v4426_v27, %v5423_v8  ;;  %4451 = vrcp.f32 %v1036_v38  ;;  %v1041_v8 = vadd.f32 1.0, %v4424_v3  ;;  %v774_v27 = vrot.slane %v713_v18, %v5372_v25 }
 0x54e   :  { %v4430_v5 = vpop.eup %4429  ;;  %v1124_v32 = vmul.f32 %v4428_v44, %v5425_v12  ;;  %4453 = vrcp.f32 %v1038_v33  ;;  %v705_v44 = vcombine.high %v697_v36, %v697_v36  ;;  %v690_v36 = vcombine.high %v5491_v41, %v5491_v41 }
 0x54f   :  { %v1126_v37 = vmul.f32 %v4430_v5, %v5427_v13  ;;  %v882_v13 = vmul.f32 %v5368_v20, %v5398_v40  ;;  %4455 = vrcp.f32 %v1041_v8  ;;  %v843_v3 = vadd.f32 %v5411_v50, %v774_v27 }
 0x550   :  { %v4432_v17 = vpop.eup %4431 }
 0x551   :  { %v4434_v62 = vpop.eup %4433  ;;  %v1123_v6 = vmul.f32 %v4432_v17, %v5444_v46 }
 0x552   :  { %v4436_v47 = vpop.eup %4435  ;;  %v1125_v48 = vmul.f32 %v4434_v62, %v5446_v51  ;;  %v5513_v62 = vadd.f32 %v882_v13, %v843_v3 }
 0x553   :  { %v4438_v34 = vpop.eup %4437  ;;  %v1158_v63 = vpack.c.bf16 %v1123_v6, %v1122_v4  ;;  %v1127_v26 = vmul.f32 %v4436_v47, %v5450_v42  ;;  %v727_v6 = vrot.slane %v705_v44, %v5349_v9 }
 0x554   :  { %v1159_v35 = vpack.c.bf16 %v1125_v48, %v1124_v32  ;;  %v4440_v52 = vpop.eup %4439  ;;  %v1040_v12 = vadd.f32 1.0, %v4438_v34  ;;  %v735_v48 = vcombine.high %v713_v18, %v713_v18  ;;  %v844_v18 = vadd.f32 %v5431_v2, %v774_v27 }
 0x555   :  { %4239 = vmatprep.mubr.msk.bf16.mxu0 %vm182_vm2, %v1158_v63  ;;  %v1160_v46 = vpack.c.bf16 %v1127_v26, %v1126_v37  ;;  %v4442_v0 = vpop.eup %4441  ;;  %v1129_v42 = vmul.f32 %v4440_v52, %v5452_v54  ;;  %v778_v34 = vrot.slane %v727_v6, %v5372_v25 }
 0x556   :  { %4240 = vmatmul.mubr.msk.bf16.vlgmr.msra.gmra.mxu0 %vm182_vm2, %v1159_v35  ;;  %v4444_v51 = vpop.eup %4443  ;;  %v1131_v38 = vmul.f32 %v4442_v0, %v5456_v61  ;;  %4457 = vrcp.f32 %v1040_v12  ;;  %v704_v35 = vrot.slane %v690_v36, %v5349_v9 }
 0x557   :  { %4243 = vmatprep.mubr.msk.bf16.mxu0 %vm182_vm2, %v1160_v46  ;;  %v4446_v31 = vpop.eup %4445  ;;  %v1128_v5 = vmul.f32 %v4444_v51, %v5429_v15  ;;  %v845_v41 = vadd.f32 %v5411_v50, %v778_v34  ;;  %v782_v51 = vrot.slane %v735_v48, %v5372_v25 }
 0x558   :  { %v1130_v33 = vmul.f32 %v4446_v31, %v5433_v21  ;;  %v4448_v4 = vpop.eup %4447  ;;  %v3876_v21 = vmul.f32 -1.442695, %v5513_v62  ;;  %v706_v27 = vcombine.high %v704_v35, %v704_v35 }
 0x559   :  { %v1161_v17 = vpack.c.bf16 %v1129_v42, %v1128_v5  ;;  %v4450_v32 = vpop.eup %4449  ;;  %v1133_v61 = vmul.f32 %v4448_v4, %v5468_v24  ;;  %v847_v44 = vadd.f32 %v5411_v50, %v782_v51 }
 0x55a   :  { %v1162_v47 = vpack.c.bf16 %v1131_v38, %v1130_v33  ;;  %v4452_v54 = vpop.eup %4451  ;;  %v1135_v63 = vmul.f32 %v4450_v32, %v5473_v28  ;;  %4459 = vpow2.f32 %v3876_v21 }
 0x55b   :  { %v4454_v15 = vpop.eup %4453  ;;  %v1132_v26 = vmul.f32 %v4452_v54, %v5463_v45  ;;  %v737_v45 = vcombine.high %v727_v6, %v727_v6 }
 0x55c   :  { %v1134_v24 = vmul.f32 %v4454_v15, %v5471_v29  ;;  %v4456_v0 = vpop.eup %4455 }
 0x55d   :  { %v1163_v46 = vpack.c.bf16 %v1133_v61, %v1132_v26  ;;  %v1137_v6 = vmul.f32 %v4456_v0, %v5478_v23  ;;  %v786_v54 = vrot.slane %v737_v45, %v5372_v25  ;;  %v848_v26 = vadd.f32 %v5431_v2, %v782_v51 }
 0x55e   :  { %4244 = vmatmul.mubr.msk.bf16.gmra.mxu0 %vm182_vm2, %v1161_v17  ;;  %v1164_v31 = vpack.c.bf16 %v1135_v63, %v1134_v24  ;;  %v846_v17 = vadd.f32 %v5431_v2, %v778_v34 }
 0x55f   :  { %4247 = vmatprep.mubr.msk.bf16.mxu0 %vm182_vm2, %v1162_v47  ;;  %v720_v47 = vrot.slane %v704_v35, %v5349_v9  ;;  %v849_v48 = vadd.f32 %v5411_v50, %v786_v54 }
 0x561   :  { %v790_v24 = vrot.slane %v720_v47, %v5372_v25 }
 0x562   :  { %v5524_v37 = vpop.xlane.xlu0 %528 }
 0x563   :  { %7354 = vst [vmem:[#allocation17_spill] sm:$0xff] %v5524_v37  ;;  %v884_v8 = vmul.f32 %v5368_v20, %v5524_v37  ;;  %v5531_v52 = vpop.xlane.xlu1 %525  ;;  %v4458_v29 = vpop.eup %4457  ;;  %v851_v45 = vadd.f32 %v5411_v50, %v790_v24 }
 0x564   :  { %7355 = vst [vmem:[#allocation18_spill] sm:$0xff] %v5531_v52  ;;  %v883_v28 = vmul.f32 %v5368_v20, %v5531_v52  ;;  %v1136_v61 = vmul.f32 %v4458_v29, %v5486_v43 }
 0x565   :  { %v5537_v12 = vadd.f32 %v884_v8, %v845_v41  ;;  %v734_v8 = vrot.slane %v706_v27, %v5349_v9  ;;  %v850_v27 = vadd.f32 %v5431_v2, %v786_v54 }
 0x566   :  { %v5540_v13 = vadd.f32 %v883_v28, %v844_v18  ;;  %4248 = vmatmul.mubr.msk.bf16.gmra.mxu0 %vm182_vm2, %v1163_v46  ;;  %v5543_v42 = vpop.xlane.xlu0 %534  ;;  %v1165_v41 = vpack.c.bf16 %v1137_v6, %v1136_v61  ;;  %v736_v46 = vcombine.high %v720_v47, %v720_v47 }
 0x567   :  { %7356 = vst [vmem:[#allocation19_spill] sm:$0xff] %v5543_v42  ;;  %v3878_v3 = vmul.f32 -1.442695, %v5537_v12  ;;  %v886_v38 = vmul.f32 %v5368_v20, %v5543_v42  ;;  %v5549_v5 = vpop.xlane.xlu1 %531  ;;  %4251 = vmatprep.mubr.msk.bf16.mxu0 %vm182_vm2, %v1164_v31  ;;  %v738_v6 = vcombine.high %v734_v8, %v734_v8 }
 0x568   :  { %7357 = vst [vmem:[#allocation20_spill] sm:$0xff] %v5549_v5  ;;  %v3877_v33 = vmul.f32 -1.442695, %v5540_v13  ;;  %v885_v4 = vmul.f32 %v5368_v20, %v5549_v5 }
 0x569   :  { %4461 = vpow2.f32 %v3878_v3  ;;  %v5558_v32 = vadd.f32 %v886_v38, %v847_v44  ;;  %v4460_v44 = vpop.eup %4459 }
 0x56a   :  { %4463 = vpow2.f32 %v3877_v33  ;;  %v5561_v36 = vadd.f32 %v885_v4, %v846_v17  ;;  %v5563_v15 = vpop.xlane.xlu0 %540  ;;  %v794_v33 = vrot.slane %v734_v8, %v5372_v25 }
 0x56b   :  { %7358 = vst [vmem:[#allocation21_spill] sm:$0xff] %v5563_v15  ;;  %v3880_v21 = vmul.f32 -1.442695, %v5558_v32  ;;  %v888_v23 = vmul.f32 %v5368_v20, %v5563_v15  ;;  %v5570_v34 = vpop.xlane.xlu1 %537 }
 0x56c   :  { %7359 = vst [vmem:[#allocation22_spill] sm:$0xff] %v5570_v34  ;;  %v3879_v63 = vmul.f32 -1.442695, %v5561_v36  ;;  %v887_v35 = vmul.f32 %v5368_v20, %v5570_v34  ;;  %v853_v61 = vadd.f32 %v5411_v50, %v794_v33 }
 0x56d   :  { %4465 = vpow2.f32 %v3880_v21  ;;  %v5577_v43 = vadd.f32 %v888_v23, %v849_v48  ;;  %v798_v48 = vrot.slane %v736_v46, %v5372_v25  ;;  %v802_v46 = vrot.slane %v738_v6, %v5372_v25 }
 0x56e   :  { %4467 = vpow2.f32 %v3879_v63  ;;  %v5580_v18 = vadd.f32 %v887_v35, %v848_v26  ;;  %4252 = vmatmul.mubr.msk.bf16.gmra.mxu0 %vm182_vm2, %v1165_v41  ;;  %v5583_v28 = vpop.xlane.xlu0 %546  ;;  %v852_v63 = vadd.f32 %v5431_v2, %v790_v24  ;;  %v1042_v35 = vadd.f32 1.0, %v4460_v44 }
 0x56f   :  { %7360 = vst [vmem:[#allocation23_spill] sm:$0xff] %v5583_v28  ;;  %v3882_v0 = vmul.f32 -1.442695, %v5577_v43  ;;  %v890_v51 = vmul.f32 %v5368_v20, %v5583_v28  ;;  %v5589_v31 = vpop.xlane.xlu1 %543  ;;  %v857_v25 = vadd.f32 %v5411_v50, %v802_v46 }
 0x570   :  { %7361 = vst [vmem:[#allocation24_spill] sm:$0xff] %v5589_v31  ;;  %v3881_v29 = vmul.f32 -1.442695, %v5580_v18  ;;  %v889_v3 = vmul.f32 %v5368_v20, %v5589_v31 }
 0x571   :  { %4469 = vpow2.f32 %v3882_v0  ;;  %v5595_v38 = vadd.f32 %v890_v51, %v851_v45  ;;  %v855_v51 = vadd.f32 %v5411_v50, %v798_v48 }
 0x572   :  { %4471 = vpow2.f32 %v3881_v29  ;;  %v5598_v17 = vadd.f32 %v889_v3, %v850_v27  ;;  %v5600_v4 = vpop.xlane.xlu0 %552 }
 0x573   :  { %7362 = vst [vmem:[#allocation25_spill] sm:$0xff] %v5600_v4  ;;  %v3884_v47 = vmul.f32 -1.442695, %v5595_v38  ;;  %v892_v54 = vmul.f32 %v5368_v20, %v5600_v4  ;;  %v5606_v21 = vpop.xlane.xlu1 %549 }
 0x574   :  { %7363 = vst [vmem:[#allocation26_spill] sm:$0xff] %v5606_v21  ;;  %v3883_v23 = vmul.f32 -1.442695, %v5598_v17  ;;  %v891_v26 = vmul.f32 %v5368_v20, %v5606_v21 }
 0x575   :  { %4473 = vpow2.f32 %v3884_v47  ;;  %v5613_v41 = vadd.f32 %v892_v54, %v853_v61  ;;  %v854_v47 = vadd.f32 %v5431_v2, %v794_v33 }
 0x576   :  { %v4462_v8 = vpop.eup %4461  ;;  %4475 = vpow2.f32 %v3883_v23  ;;  %v5615_v0 = vadd.f32 %v891_v26, %v852_v63  ;;  %v5617_v45 = vpop.xlane.xlu0 %558 }
 0x577   :  { %7364 = vst [vmem:[#allocation27_spill] sm:$0xff] %v5617_v45  ;;  %v4464_v29 = vpop.eup %4463  ;;  %v1044_v27 = vadd.f32 1.0, %v4462_v8  ;;  %v3886_v24 = vmul.f32 -1.442695, %v5613_v41  ;;  %v894_v3 = vmul.f32 %v5368_v20, %v5617_v45  ;;  %v5624_v44 = vpop.xlane.xlu1 %555  ;;  %4477 = vrcp.f32 %v1042_v35 }
 0x578   :  { %7365 = vst [vmem:[#allocation28_spill] sm:$0xff] %v5624_v44  ;;  %v1043_v61 = vadd.f32 1.0, %v4464_v29  ;;  %v3885_v54 = vmul.f32 -1.442695, %v5615_v0  ;;  %v893_v23 = vmul.f32 %v5368_v20, %v5624_v44 }
 0x579   :  { %4479 = vrcp.f32 %v1044_v27  ;;  %v5630_v6 = vadd.f32 %v894_v3, %v855_v51 }
 0x57a   :  { %v4466_v63 = vpop.eup %4465  ;;  %4481 = vrcp.f32 %v1043_v61  ;;  %v5632_v26 = vadd.f32 %v893_v23, %v854_v47  ;;  %v5634_v8 = vpop.xlane.xlu0 %564  ;;  %v856_v47 = vadd.f32 %v5431_v2, %v798_v48 }
 0x57b   :  { %7366 = vst [vmem:[#allocation29_spill] sm:$0xff] %v5634_v8  ;;  %v4468_v45 = vpop.eup %4467  ;;  %v1046_v33 = vadd.f32 1.0, %v4466_v63  ;;  %4483 = vpow2.f32 %v3886_v24  ;;  %v3888_v29 = vmul.f32 -1.442695, %v5630_v6  ;;  %v896_v44 = vmul.f32 %v5368_v20, %v5634_v8  ;;  %v5640_v35 = vpop.xlane.xlu1 %561 }
 0x57c   :  { %7367 = vst [vmem:[#allocation30_spill] sm:$0xff] %v5640_v35  ;;  %v1045_v51 = vadd.f32 1.0, %v4468_v45  ;;  %4485 = vpow2.f32 %v3885_v54  ;;  %v3887_v27 = vmul.f32 -1.442695, %v5632_v26  ;;  %v895_v50 = vmul.f32 %v5368_v20, %v5640_v35 }
 0x57d   :  { %4487 = vrcp.f32 %v1046_v33  ;;  %v5643_v3 = vadd.f32 %v896_v44, %v857_v25  ;;  %v858_v25 = vadd.f32 %v5431_v2, %v802_v46 }
 0x57e   :  { %v4470_v24 = vpop.eup %4469  ;;  %4489 = vrcp.f32 %v1045_v51  ;;  %v5649_v8 = vadd.f32 %v895_v50, %v856_v47 }
 0x57f   :  { %v4472_v61 = vpop.eup %4471  ;;  %v1048_v23 = vadd.f32 1.0, %v4470_v24  ;;  %4491 = vpow2.f32 %v3888_v29  ;;  %v3890_v63 = vmul.f32 -1.442695, %v5643_v3  ;;  %v5651_v45 = vpop.xlane.xlu1 %567 }
 0x580   :  { %7368 = vst [vmem:[#allocation31_spill] sm:$0xff] %v5651_v45  ;;  %v1047_v54 = vadd.f32 1.0, %v4472_v61  ;;  %4493 = vpow2.f32 %v3887_v27  ;;  %v897_v48 = vmul.f32 %v5368_v20, %v5651_v45  ;;  %v3889_v44 = vmul.f32 -1.442695, %v5649_v8 }
 0x581   :  { %4495 = vrcp.f32 %v1048_v23 }
 0x582   :  { %v4474_v33 = vpop.eup %4473  ;;  %4497 = vrcp.f32 %v1047_v54  ;;  %v5657_v51 = vadd.f32 %v897_v48, %v858_v25 }
 0x583   :  { %v4476_v29 = vpop.eup %4475  ;;  %4499 = vpow2.f32 %v3890_v63  ;;  %v1050_v61 = vadd.f32 1.0, %v4474_v33 }
 0x584   :  { %v1049_v47 = vadd.f32 1.0, %v4476_v29  ;;  %4501 = vpow2.f32 %v3889_v44  ;;  %v3891_v50 = vmul.f32 -1.442695, %v5657_v51  ;;  %v4478_v24 = vpop.eup %4477 }
 0x585   :  { %v1138_v23 = vmul.f32 %v4478_v24, %v5513_v62 }
 0x586   :  { %v4480_v27 = vpop.eup %4479  ;;  %4503 = vrcp.f32 %v1049_v47 }
 0x587   :  { %v4482_v2 = vpop.eup %4481  ;;  %4505 = vpow2.f32 %v3891_v50  ;;  %v1140_v35 = vmul.f32 %v4480_v27, %v5537_v12 }
 0x588   :  { %v4484_v20 = vpop.eup %4483  ;;  %v1139_v46 = vmul.f32 %v4482_v2, %v5540_v13  ;;  %4507 = vrcp.f32 %v1050_v61 }
 0x589   :  { %v4486_v54 = vpop.eup %4485  ;;  %v1052_v48 = vadd.f32 1.0, %v4484_v20 }
 0x58a   :  { %v4488_v25 = vpop.eup %4487  ;;  %v1051_v63 = vadd.f32 1.0, %v4486_v54  ;;  %v1166_v29 = vpack.c.bf16 %v1139_v46, %v1138_v23 }
 0x58b   :  { %v4490_v44 = vpop.eup %4489  ;;  %v1142_v20 = vmul.f32 %v4488_v25, %v5558_v32 }
 0x58c   :  { %v4492_v45 = vpop.eup %4491  ;;  %v1141_v33 = vmul.f32 %v4490_v44, %v5561_v36  ;;  %4509 = vrcp.f32 %v1051_v63  ;;  %4255 = vmatprep.mubr.msk.bf16.mxu0 %vm182_vm2, %v1166_v29 }
 0x58d   :  { %v4494_v47 = vpop.eup %4493  ;;  %4511 = vrcp.f32 %v1052_v48  ;;  %v1054_v13 = vadd.f32 1.0, %v4492_v45 }
 0x58e   :  { %v4496_v50 = vpop.eup %4495  ;;  %v1053_v62 = vadd.f32 1.0, %v4494_v47  ;;  %v1167_v24 = vpack.c.bf16 %v1141_v33, %v1140_v35 }
 0x58f   :  { %v4498_v2 = vpop.eup %4497  ;;  %v1144_v45 = vmul.f32 %v4496_v50, %v5577_v43 }
 0x590   :  { %v4500_v61 = vpop.eup %4499  ;;  %v1143_v46 = vmul.f32 %v4498_v2, %v5580_v18  ;;  %4513 = vrcp.f32 %v1053_v62  ;;  %4256 = vmatmul.mubr.msk.bf16.gmra.mxu0 %vm182_vm2, %v1167_v24 }
 0x591   :  { %v4502_v12 = vpop.eup %4501  ;;  %v1056_v36 = vadd.f32 1.0, %v4500_v61  ;;  %4515 = vrcp.f32 %v1054_v13 }
 0x592   :  { %v1055_v27 = vadd.f32 1.0, %v4502_v12  ;;  %v1168_v23 = vpack.c.bf16 %v1143_v46, %v1142_v20  ;;  %v5687_v12 = vld [vmem:[%s7269_s16] ss:$0 sm:$0xff] }
 0x593   :  { %v4504_v54 = vpop.eup %4503 }
 0x594   :  { %v4506_v63 = vpop.eup %4505  ;;  %v1145_v35 = vmul.f32 %v4504_v54, %v5598_v17  ;;  %4517 = vrcp.f32 %v1055_v27  ;;  %4259 = vmatprep.mubr.msk.bf16.mxu0 %vm182_vm2, %v1168_v23 }
 0x595   :  { %4519 = vrcp.f32 %v1056_v36  ;;  %v1057_v32 = vadd.f32 1.0, %v4506_v63  ;;  %v4508_v25 = vpop.eup %4507 }
 0x596   :  { %v1169_v18 = vpack.c.bf16 %v1145_v35, %v1144_v45  ;;  %v1146_v29 = vmul.f32 %v4508_v25, %v5595_v38 }
 0x597   :  { %4521 = vrcp.f32 %v1057_v32 }
 0x598   :  { %4260 = vmatmul.mubr.msk.bf16.gmra.mxu0 %vm182_vm2, %v1169_v18 }
 0x599   :  { %v4510_v48 = vpop.eup %4509 }
 0x59a   :  { %v1147_v44 = vmul.f32 %v4510_v48, %v5615_v0  ;;  %v4512_v33 = vpop.eup %4511 }
 0x59b   :  { %v1148_v17 = vmul.f32 %v4512_v33, %v5613_v41 }
 0x59c   :  { %v1170_v47 = vpack.c.bf16 %v1147_v44, %v1146_v29 }
 0x59d   :  { %v4514_v43 = vpop.eup %4513 }
 0x59e   :  { %v1149_v50 = vmul.f32 %v4514_v43, %v5632_v26  ;;  %4263 = vmatprep.mubr.msk.bf16.mxu0 %vm182_vm2, %v1170_v47  ;;  %v4516_v13 = vpop.eup %4515 }
 0x59f   :  { %v1150_v61 = vmul.f32 %v4516_v13, %v5630_v6 }
 0x5a0   :  { %v1171_v62 = vpack.c.bf16 %v1149_v50, %v1148_v17 }
 0x5a1   :  { %v4518_v24 = vpop.eup %4517 }
 0x5a2   :  { %v4520_v2 = vpop.eup %4519  ;;  %v1151_v20 = vmul.f32 %v4518_v24, %v5649_v8  ;;  %4264 = vmatmul.mubr.msk.bf16.gmra.mxu0 %vm182_vm2, %v1171_v62 }
 0x5a3   :  { %v1152_v46 = vmul.f32 %v4520_v2, %v5643_v3 }
 0x5a4   :  { %v4522_v38 = vpop.eup %4521  ;;  %v1172_v0 = vpack.c.bf16 %v1151_v20, %v1150_v61 }
 0x5a5   :  { %v1153_v41 = vmul.f32 %v4522_v38, %v5657_v51 }
 0x5a6   :  { %4267 = vmatprep.mubr.msk.bf16.mxu0 %vm182_vm2, %v1172_v0 }
 0x5a7   :  { %v1173_v26 = vpack.c.bf16 %v1153_v41, %v1152_v46 }
 0x5aa   :  { %4268 = vmatmul.mubr.msk.bf16.gmra.mxu0 %vm182_vm2, %v1173_v26 }
 0x616   :  { %v4241_v6 = vpop.f32.mrf.mxu0 }
 0x617   :  { %v5690_v8 = vadd.f32 %v4241_v6, %v5687_v12 }
 0x618   :  { %v1275_v36 = vpop.f32.mrf.mxu0 }
 0x619   :  { %v3913_v27 = vmul.f32 -1.442695, %v5690_v8  ;;  %v5694_v3 = vadd.f32 %v5687_v12, %v1275_v36 }
 0x61a   :  { %v4242_v51 = vpop.f32.mrf.mxu0 }
 0x61b   :  { %4523 = vpow2.f32 %v3913_v27  ;;  %v3911_v23 = vmul.f32 -1.442695, %v5694_v3  ;;  %v1287_v54 = vadd.f32 %v4242_v51, %v5687_v12 }
 0x61c   :  { %v1278_v63 = vpop.f32.mrf.mxu0 }
 0x61d   :  { %4525 = vpow2.f32 %v3911_v23  ;;  %v3914_v45 = vmul.f32 -1.442695, %v1287_v54  ;;  %v1279_v35 = vadd.f32 %v5687_v12, %v1278_v63 }
 0x61e   :  { %v4245_v32 = vpop.f32.mrf.mxu0 }
 0x61f   :  { %4527 = vpow2.f32 %v3914_v45  ;;  %v3912_v18 = vmul.f32 -1.442695, %v1279_v35  ;;  %v1300_v25 = vadd.f32 %v4245_v32, %v5687_v12  ;;  %v5706_v45 = vld [vmem:[%s7270_s3 + $0x4] ss:$8 sps:$4 sm:$0xff]  }
 0x620   :  { %v1291_v48 = vpop.f32.mrf.mxu0  ;;  %1684 = vmatprep.mubr.bf16.mxu1 %v5706_v45 }
 0x621   :  { %4529 = vpow2.f32 %v3912_v18  ;;  %v3917_v29 = vmul.f32 -1.442695, %v1300_v25  ;;  %v1292_v44 = vadd.f32 %v5687_v12, %v1291_v48 }
 0x622   :  { %v4246_v33 = vpop.f32.mrf.mxu0 }
 0x623   :  { %4531 = vpow2.f32 %v3917_v29  ;;  %v3915_v47 = vmul.f32 -1.442695, %v1292_v44  ;;  %v1303_v43 = vadd.f32 %v4246_v33, %v5687_v12 }
 0x624   :  { %v1294_v17 = vpop.f32.mrf.mxu0 }
 0x625   :  { %4533 = vpow2.f32 %v3915_v47  ;;  %v3918_v50 = vmul.f32 -1.442695, %v1303_v43  ;;  %v1295_v13 = vadd.f32 %v5687_v12, %v1294_v17 }
 0x626   :  { %v4249_v27 = vpop.f32.mrf.mxu0 }
 0x627   :  { %4535 = vpow2.f32 %v3918_v50  ;;  %v3916_v62 = vmul.f32 -1.442695, %v1295_v13 }
 0x628   :  { %v4524_v24 = vpop.eup %4523  ;;  %v1307_v18 = vpop.f32.mrf.mxu0 }
 0x629   :  { %v1500_v2 = vadd.f32 1.0, %v4524_v24  ;;  %4537 = vpow2.f32 %v3916_v62 }
 0x62a   :  { %v4526_v61 = vpop.eup %4525  ;;  %v4250_v33 = vpop.f32.mrf.mxu0 }
 0x62b   :  { %v1498_v20 = vadd.f32 1.0, %v4526_v61  ;;  %4539 = vrcp.f32 %v1500_v2  ;;  %v5768_v21 = vadd.f32 %v4250_v33, %v5687_v12 }
 0x62c   :  { %v4528_v38 = vpop.eup %4527  ;;  %v1310_v2 = vpop.f32.mrf.mxu0 }
 0x62d   :  { %v1501_v0 = vadd.f32 1.0, %v4528_v38  ;;  %4541 = vrcp.f32 %v1498_v20  ;;  %v3922_v34 = vmul.f32 -1.442695, %v5768_v21 }
 0x62e   :  { %v4530_v46 = vpop.eup %4529 }
 0x62f   :  { %4543 = vrcp.f32 %v1501_v0  ;;  %v1499_v41 = vadd.f32 1.0, %v4530_v46 }
 0x630   :  { %v4532_v26 = vpop.eup %4531 }
 0x631   :  { %4545 = vrcp.f32 %v1499_v41  ;;  %v1504_v6 = vadd.f32 1.0, %v4532_v26  ;;  %v4253_v41 = vpop.f32.mrf.mxu0 }
 0x632   :  { %v4534_v36 = vpop.eup %4533 }
 0x633   :  { %v1502_v51 = vadd.f32 1.0, %v4534_v36  ;;  %4547 = vrcp.f32 %v1504_v6 }
 0x634   :  { %v4536_v23 = vpop.eup %4535 }
 0x635   :  { %v1505_v63 = vadd.f32 1.0, %v4536_v23  ;;  %4549 = vrcp.f32 %v1502_v51  ;;  %v1323_v51 = vpop.f32.mrf.mxu0  ;;  %v5761_v23 = vadd.f32 %v4249_v27, %v5687_v12 }
 0x636   :  { %v4538_v32 = vpop.eup %4537 }
 0x637   :  { %4551 = vrcp.f32 %v1505_v63  ;;  %v1503_v48 = vadd.f32 1.0, %v4538_v32  ;;  %v4254_v32 = vpop.f32.mrf.mxu0  ;;  %v3921_v31 = vmul.f32 -1.442695, %v5761_v23 }
 0x638   :  { %v4540_v29 = vpop.eup %4539 }
 0x639   :  { %4553 = vrcp.f32 %v1503_v48  ;;  %v5710_v50 = vmul.f32 %v4540_v29, %v5690_v8  ;;  %v1326_v48 = vpop.f32.mrf.mxu0 }
 0x63a   :  { %v4542_v47 = vpop.eup %4541  ;;  %v5757_v0 = vadd.f32 %v5687_v12, %v1326_v48  ;;  %v5771_v48 = vadd.f32 %v5687_v12, %v1310_v2 }
 0x63b   :  { %v5715_v61 = vmul.f32 %v4542_v47, %v5694_v3 }
 0x63c   :  { %v4544_v17 = vpop.eup %4543  ;;  %v3920_v33 = vmul.f32 -1.442695, %v5771_v48 }
 0x63d   :  { %v5712_v62 = vmul.f32 %v4544_v17, %v1287_v54 }
 0x63e   :  { %v4546_v24 = vpop.eup %4545 }
 0x63f   :  { %v5719_v38 = vmul.f32 %v4546_v24, %v1279_v35 }
 0x640   :  { %v4548_v46 = vpop.eup %4547 }
 0x641   :  { %v5723_v6 = vmul.f32 %v4548_v46, %v1300_v25  ;;  %v5750_v46 = vadd.f32 %v5687_v12, %v1323_v51  ;;  %v3924_v51 = vmul.f32 -1.442695, %v5757_v0 }
 0x642   :  { %v4550_v26 = vpop.eup %4549 }
 0x643   :  { %v5727_v3 = vmul.f32 %v4550_v26, %v1292_v44 }
 0x644   :  { %v4552_v8 = vpop.eup %4551 }
 0x645   :  { %v5725_v54 = vmul.f32 %v4552_v8, %v1303_v43  ;;  %v5740_v43 = vadd.f32 %v4253_v41, %v5687_v12  ;;  %v5753_v8 = vadd.f32 %v4254_v32, %v5687_v12  ;;  %v3923_v41 = vmul.f32 -1.442695, %v5750_v46 }
 0x646   :  { %v4554_v36 = vpop.eup %4553 }
 0x647   :  { %v5731_v35 = vmul.f32 %v4554_v36, %v1295_v13  ;;  %v3925_v17 = vmul.f32 -1.442695, %v5740_v43  ;;  %v3926_v20 = vmul.f32 -1.442695, %v5753_v8 }
 0x649   :  { %4555 = vpow2.f32 %v3925_v17  ;;  %v5765_v17 = vadd.f32 %v5687_v12, %v1307_v18 }
 0x64a   :  { %4557 = vpow2.f32 %v3923_v41 }
 0x64b   :  { %4559 = vpow2.f32 %v3926_v20  ;;  %v3919_v41 = vmul.f32 -1.442695, %v5765_v17 }
 0x64c   :  { %4561 = vpow2.f32 %v3924_v51 }
 0x64d   :  { %4563 = vpow2.f32 %v3921_v31 }
 0x64e   :  { %4565 = vpow2.f32 %v3919_v41 }
 0x64f   :  { %4567 = vpow2.f32 %v3922_v34 }
 0x650   :  { %v5735_v29 = vpop.f32.mrf.mxu0  ;;  %4569 = vpow2.f32 %v3920_v33 }
 0x651   :  { %v5817_v7 = vadd.f32 %v5735_v29, %v5687_v12 }
 0x652   :  { %v5737_v25 = vpop.f32.mrf.mxu0 }
 0x654   :  { %v5742_v47 = vpop.f32.mrf.mxu0 }
 0x656   :  { %v5744_v44 = vpop.f32.mrf.mxu0  ;;  %v4556_v27 = vpop.eup %4555 }
 0x657   :  { %v1512_v20 = vadd.f32 1.0, %v4556_v27  ;;  %v4558_v34 = vpop.eup %4557 }
 0x658   :  { %v4261_v13 = vpop.f32.mrf.mxu0 }
 0x659   :  { %4571 = vrcp.f32 %v1512_v20  ;;  %v4560_v20 = vpop.eup %4559 }
 0x65a   :  { %v5747_v24 = vpop.f32.mrf.mxu0  ;;  %v4562_v11 = vpop.eup %4561 }
 0x65b   :  { %v5830_v29 = vadd.f32 %v5687_v12, %v5747_v24 }
 0x65c   :  { %v4262_v26 = vpop.f32.mrf.mxu0 }
 0x65d   :  { %v5807_v22 = vadd.f32 %v4262_v26, %v5687_v12  ;;  %v3931_v24 = vmul.f32 -1.442695, %v5830_v29 }
 0x65e   :  { %v1358_v36 = vpop.f32.mrf.mxu0 }
 0x65f   :  { %v3934_v26 = vmul.f32 -1.442695, %v5807_v22 }
 0x662   :  { %v4265_v63 = vpop.f32.mrf.mxu0 }
 0x663   :  { %v5781_v2 = vadd.f32 %v4265_v63, %v5687_v12 }
 0x664   :  { %v1371_v32 = vpop.f32.mrf.mxu0 }
 0x665   :  { %v3937_v63 = vmul.f32 -1.442695, %v5781_v2  ;;  %v5800_v37 = vadd.f32 %v5687_v12, %v1371_v32 }
 0x666   :  { %v4266_v4 = vpop.f32.mrf.mxu0 }
 0x667   :  { %v5777_v18 = vadd.f32 %v4266_v4, %v5687_v12 }
 0x668   :  { %v1374_v28 = vpop.f32.mrf.mxu0 }
 0x669   :  { %v3938_v42 = vmul.f32 -1.442695, %v5777_v18  ;;  %v5792_v31 = vadd.f32 %v5687_v12, %v1374_v28 }
 0x66a   :  { %v4269_v15 = vpop.f32.mrf.mxu0 }
 0x66b   :  { %v5784_v5 = vadd.f32 %v4269_v15, %v5687_v12  ;;  %v3936_v16 = vmul.f32 -1.442695, %v5792_v31 }
 0x66c   :  { %v1387_v51 = vpop.f32.mrf.mxu0 }
 0x66d   :  { %v3941_v52 = vmul.f32 -1.442695, %v5784_v5  ;;  %v5789_v4 = vadd.f32 %v5687_v12, %v1387_v51 }
 0x66e   :  { %v4270_v27 = vpop.f32.mrf.mxu0 }
 0x66f   :  { %v3939_v15 = vmul.f32 -1.442695, %v5789_v4  ;;  %v5797_v41 = vadd.f32 %v4270_v27, %v5687_v12  ;;  %4573 = vpow2.f32 %v3941_v52  ;;  %v1510_v27 = vadd.f32 1.0, %v4558_v34  ;;  %v4564_v34 = vpop.eup %4563 }
 0x670   :  { %v1390_v51 = vpop.f32.mrf.mxu0  ;;  %4575 = vpow2.f32 %v3938_v42  ;;  %v5812_v52 = vadd.f32 %v4261_v13, %v5687_v12  ;;  %v3935_v42 = vmul.f32 -1.442695, %v5800_v37  ;;  %v5825_v13 = vadd.f32 %v5742_v47, %v5687_v12 }
 0x671   :  { %v3942_v33 = vmul.f32 -1.442695, %v5797_v41  ;;  %v5804_v28 = vadd.f32 %v5687_v12, %v1390_v51  ;;  %4577 = vpow2.f32 %v3939_v15  ;;  %v1513_v51 = vadd.f32 1.0, %v4560_v20  ;;  %v4566_v20 = vpop.eup %4565 }
 0x672   :  { %4579 = vpow2.f32 %v3937_v63  ;;  %v5821_v15 = vadd.f32 %v5687_v12, %v1358_v36  ;;  %v1511_v63 = vadd.f32 1.0, %v4562_v11  ;;  %v3929_v36 = vmul.f32 -1.442695, %v5817_v7  ;;  %v4568_v11 = vpop.eup %4567 }
 0x673   :  { %v3940_v32 = vmul.f32 -1.442695, %v5804_v28  ;;  %4581 = vpow2.f32 %v3942_v33  ;;  %v3933_v33 = vmul.f32 -1.442695, %v5812_v52 }
 0x674   :  { %v3932_v47 = vmul.f32 -1.442695, %v5821_v15 }
 0x675   :  { %4583 = vpow2.f32 %v3940_v32  ;;  %v3930_v32 = vmul.f32 -1.442695, %v5825_v13 }
 0x676   :  { %4585 = vpow2.f32 %v3936_v16  ;;  %v5835_v16 = vadd.f32 %v5687_v12, %v5744_v44 }
 0x677   :  { %4587 = vrcp.f32 %v1510_v27  ;;  %v4570_v27 = vpop.eup %4569 }
 0x678   :  { %4589 = vpow2.f32 %v3935_v42  ;;  %v5839_v58 = vpop.eup %4571  ;;  %v1507_v49 = vadd.f32 1.0, %v4570_v27 }
 0x679   :  { %4591 = vrcp.f32 %v1513_v51  ;;  %v3928_v51 = vmul.f32 -1.442695, %v5835_v16 }
 0x67a   :  { %4593 = vpow2.f32 %v3934_v26  ;;  %v5845_v26 = vadd.f32 %v5687_v12, %v5737_v25  ;;  %v1509_v25 = vadd.f32 1.0, %v4568_v11 }
 0x67b   :  { %4595 = vrcp.f32 %v1511_v63 }
 0x67c   :  { %4597 = vpow2.f32 %v3933_v33  ;;  %v4574_v42 = vpop.eup %4573  ;;  %v3927_v53 = vmul.f32 -1.442695, %v5845_v26 }
 0x67d   :  { %4599 = vpow2.f32 %v3929_v36  ;;  %v4576_v40 = vpop.eup %4575  ;;  %v1528_v44 = vadd.f32 1.0, %v4574_v42 }
 0x67e   :  { %4601 = vpow2.f32 %v3932_v47  ;;  %v4578_v57 = vpop.eup %4577  ;;  %v1525_v19 = vadd.f32 1.0, %v4576_v40 }
 0x67f   :  { %4603 = vpow2.f32 %v3930_v32  ;;  %v4580_v63 = vpop.eup %4579  ;;  %v1526_v56 = vadd.f32 1.0, %v4578_v57 }
 0x680   :  { %4605 = vpow2.f32 %v3931_v24  ;;  %v4582_v55 = vpop.eup %4581  ;;  %v1524_v10 = vadd.f32 1.0, %v4580_v63 }
 0x681   :  { %4607 = vpow2.f32 %v3928_v51  ;;  %v1529_v36 = vadd.f32 1.0, %v4582_v55  ;;  %v1508_v51 = vadd.f32 1.0, %v4564_v34 }
 0x682   :  { %v4584_v33 = vpop.eup %4583  ;;  %4609 = vrcp.f32 %v1528_v44 }
 0x683   :  { %v4586_v14 = vpop.eup %4585  ;;  %4611 = vrcp.f32 %v1526_v56  ;;  %v1527_v47 = vadd.f32 1.0, %v4584_v33 }
 0x684   :  { %v4588_v42 = vpop.eup %4587  ;;  %4613 = vrcp.f32 %v1529_v36  ;;  %v1523_v57 = vadd.f32 1.0, %v4586_v14  ;;  %v1506_v36 = vadd.f32 1.0, %v4566_v20 }
 0x685   :  { %v4590_v12 = vpop.eup %4589  ;;  %4615 = vrcp.f32 %v1527_v47 }
 0x686   :  { %v4592_v32 = vpop.eup %4591  ;;  %4617 = vrcp.f32 %v1525_v19  ;;  %v1522_v55 = vadd.f32 1.0, %v4590_v12 }
 0x687   :  { %v4594_v24 = vpop.eup %4593  ;;  %4619 = vpow2.f32 %v3927_v53 }
 0x688   :  { %v4596_v40 = vpop.eup %4595  ;;  %4621 = vrcp.f32 %v1524_v10  ;;  %v1521_v33 = vadd.f32 1.0, %v4594_v24 }
 0x689   :  { %v4598_v44 = vpop.eup %4597  ;;  %4623 = vrcp.f32 %v1509_v25  ;;  %v5849_v25 = vmul.f32 %v4592_v32, %v5753_v8 }
 0x68a   :  { %v4600_v56 = vpop.eup %4599  ;;  %4625 = vrcp.f32 %v1523_v57  ;;  %v1520_v47 = vadd.f32 1.0, %v4598_v44 }
 0x68b   :  { %v4602_v63 = vpop.eup %4601  ;;  %4627 = vrcp.f32 %v1508_v51 }
 0x68c   :  { %v4604_v11 = vpop.eup %4603  ;;  %4629 = vrcp.f32 %v1522_v55  ;;  %v1519_v53 = vadd.f32 1.0, %v4602_v63  ;;  %v5859_v55 = vmul.f32 %v5839_v58, %v5740_v43 }
 0x68d   :  { %v4606_v19 = vpop.eup %4605  ;;  %4631 = vrcp.f32 %v1507_v49  ;;  %v1517_v24 = vadd.f32 1.0, %v4604_v11  ;;  %v5880_v11 = vmul.f32 %v4588_v42, %v5750_v46 }
 0x68e   :  { %v4608_v14 = vpop.eup %4607  ;;  %4633 = vrcp.f32 %v1521_v33  ;;  %v1518_v12 = vadd.f32 1.0, %v4606_v19  ;;  %v1516_v33 = vadd.f32 1.0, %v4600_v56 }
 0x68f   :  { %v4610_v34 = vpop.eup %4609  ;;  %4635 = vrcp.f32 %v1506_v36  ;;  %v5872_v36 = vmul.f32 %v4596_v40, %v5757_v0 }
 0x690   :  { %v4612_v10 = vpop.eup %4611  ;;  %4637 = vrcp.f32 %v1520_v47  ;;  %v5852_v20 = vmul.f32 %v4610_v34, %v5784_v5 }
 0x691   :  { %v4614_v27 = vpop.eup %4613  ;;  %4639 = vrcp.f32 %v1519_v53  ;;  %v5862_v44 = vmul.f32 %v4612_v10, %v5789_v4  ;;  %v1515_v4 = vadd.f32 1.0, %v4608_v14 }
 0x692   :  { %v4616_v57 = vpop.eup %4615  ;;  %v5855_v49 = vmul.f32 %v4614_v27, %v5797_v41  ;;  %4641 = vrcp.f32 %v1518_v12  ;;  %v1633_v41 = vpack.c.bf16 %v5849_v25, %v5859_v55 }
 0x693   :  { %v4618_v51 = vpop.eup %4617  ;;  %v5865_v8 = vmul.f32 %v4616_v57, %v5804_v28  ;;  %4643 = vrcp.f32 %v1517_v24 }
 0x694   :  { %v4620_v32 = vpop.eup %4619  ;;  %v1641_v5 = vpack.c.bf16 %v5855_v49, %v5852_v20  ;;  %v5877_v28 = vmul.f32 %v4618_v51, %v5777_v18  ;;  %4645 = vrcp.f32 %v1516_v33  ;;  %v1632_v18 = vpack.c.bf16 %v5872_v36, %v5880_v11 }
 0x695   :  { %v4622_v63 = vpop.eup %4621  ;;  %v1640_v58 = vpack.c.bf16 %v5865_v8, %v5862_v44  ;;  %v1514_v19 = vadd.f32 1.0, %v4620_v32  ;;  %4647 = vrcp.f32 %v1515_v4 }
 0x696   :  { %v4624_v43 = vpop.eup %4623  ;;  %4098 = vmatprep.subr.bf16.mxu1 %v1641_v5  ;;  %v5883_v0 = vmul.f32 %v4622_v63, %v5781_v2 }
 0x697   :  { %v4626_v56 = vpop.eup %4625  ;;  %4099 = vmatpush3.bf16.msra.mxu1 %v1633_v41  ;;  %v5886_v53 = vmul.f32 %v4624_v43, %v5768_v21  ;;  %4649 = vrcp.f32 %v1514_v19  ;;  %v7371_v19 = vpack.c.bf16 %v5712_v62, %v5710_v50 }
 0x698   :  { %v4628_v47 = vpop.eup %4627  ;;  %4100 = vmatprep.subr.bf16.mxu1 %v1640_v58  ;;  %v5891_v46 = vmul.f32 %v4626_v56, %v5792_v31  ;;  %v1639_v42 = vpack.c.bf16 %v5877_v28, %v5883_v0  ;;  %v7370_v56 = vpack.c.bf16 %v5731_v35, %v5727_v3 }
 0x699   :  { %v4630_v40 = vpop.eup %4629  ;;  %v5896_v2 = vmul.f32 %v4628_v47, %v5761_v23 }
 0x69a   :  { %v4632_v14 = vpop.eup %4631  ;;  %v5899_v21 = vmul.f32 %v4630_v40, %v5800_v37  ;;  %v7372_v40 = vpack.c.bf16 %v5719_v38, %v5715_v61 }
 0x69b   :  { %v4634_v34 = vpop.eup %4633  ;;  %4101 = vmatpush3.bf16.msra.mxu1 %v1632_v18  ;;  %v1631_v27 = vpack.c.bf16 %v5886_v53, %v5896_v2  ;;  %v5904_v31 = vmul.f32 %v4632_v14, %v5771_v48  ;;  %v7373_v18 = vmov 0.0   ;;  %v4370_v14 = vld [vmem:[%s7271_s17 + $0x10] sm:$0xff]  }
 0x69c   :  { %v4636_v10 = vpop.eup %4635  ;;  %4102 = vmatprep.subr.bf16.mxu1 %v1639_v42  ;;  %v5907_v57 = vmul.f32 %v4634_v34, %v5807_v22  ;;  %v1638_v23 = vpack.c.bf16 %v5891_v46, %v5899_v21  ;;  %v4371_v42 = vld [vmem:[%s7271_s17 + $0x8] sm:$0xff]  }
 0x69d   :  { %v4638_v12 = vpop.eup %4637  ;;  %v5912_v51 = vmul.f32 %v4636_v10, %v5765_v17  ;;  %v4372_v10 = vld [vmem:[%s7271_s17] sm:$0xff]  }
 0x69e   :  { %v4640_v24 = vpop.eup %4639  ;;  %v5915_v37 = vmul.f32 %v4638_v12, %v5812_v52 }
 0x69f   :  { %4103 = vmatpush3.bf16.msra.mxu1 %v1631_v27  ;;  %v4642_v32 = vpop.eup %4641  ;;  %v1630_v48 = vpack.c.bf16 %v5904_v31, %v5912_v51  ;;  %v5920_v33 = vmul.f32 %v4640_v24, %v5821_v15  ;;  %v7369_v15 = vpack.c.bf16 %v5725_v54, %v5723_v6 }
 0x6a0   :  { %4104 = vmatprep.subr.bf16.mxu1 %v1638_v23  ;;  %v1637_v22 = vpack.c.bf16 %v5907_v57, %v5915_v37  ;;  %v4644_v5 = vpop.eup %4643  ;;  %v5925_v17 = vmul.f32 %v4642_v32, %v5830_v29 }
 0x6a1   :  { %v4646_v63 = vpop.eup %4645  ;;  %v5928_v52 = vmul.f32 %v4644_v5, %v5825_v13 }
 0x6a2   :  { %v1636_v41 = vpack.c.bf16 %v5920_v33, %v5925_v17  ;;  %v4648_v58 = vpop.eup %4647  ;;  %v5936_v43 = vmul.f32 %v4646_v63, %v5817_v7 }
 0x6a3   :  { %4105 = vmatpush3.bf16.msra.mxu1 %v1630_v48  ;;  %v5939_v29 = vmul.f32 %v4648_v58, %v5835_v16  ;;  %v4366_v16 = vld [vmem:[%s7270_s3] ss:$8 sps:$4 sm:$0xff]  }
 0x6a4   :  { %4106 = vmatprep.subr.bf16.mxu1 %v1637_v22  ;;  %v4650_v4 = vpop.eup %4649  ;;  %v1635_v13 = vpack.c.bf16 %v5928_v52, %v5936_v43  ;;  %v5983_v22 = vld [vmem:[%s7272_s21] ss:$0 sm:$0xff] }
 0x6a5   :  { %v5947_v47 = vmul.f32 %v4650_v4, %v5845_v26  ;;  %v4369_v26 = vld [vmem:[%s7271_s17 + $0x18] sm:$0xff]   ;;  %v1731_v5 = vmul.f32 %v5983_v22, %v5855_v49 }
 0x6a7   :  { %4107 = vmatpush3.bf16.msra.mxu1 %v7369_v15  ;;  %v1634_v7 = vpack.c.bf16 %v5939_v29, %v5947_v47  ;;  %v1825_v63 = vsel %vm182_vm2, %v1731_v5, 0.0  ;;  %v1729_v15 = vmul.f32 %v5983_v22, %v5865_v8  ;;  %v4374_v5 = vld [vmem:[%s7273_s19] sm:$0xff]  }
 0x6a8   :  { %4108 = vmatprep.subr.bf16.mxu1 %v1636_v41  ;;  %v1715_v41 = vmul.f32 %v5983_v22, %v5849_v25 }
 0x6a9   :  { %v1819_v4 = vsel %vm182_vm2, %v1729_v15, 0.0 }
 0x6aa   :  { %v1777_v58 = vsel %vm182_vm2, %v1715_v41, 0.0 }
 0x6ab   :  { %4109 = vmatpush3.bf16.msra.mxu1 %v7370_v56  ;;  %v1727_v56 = vmul.f32 %v5983_v22, %v5877_v28 }
 0x6ac   :  { %4110 = vmatprep.subr.bf16.mxu1 %v1635_v13  ;;  %v1713_v13 = vmul.f32 %v5983_v22, %v5872_v36 }
 0x6ad   :  { %v1813_v25 = vsel %vm182_vm2, %v1727_v56, 0.0 }
 0x6ae   :  { %v1771_v49 = vsel %vm182_vm2, %v1713_v13, 0.0 }
 0x6af   :  { %4111 = vmatpush3.bf16.msra.mxu1 %v7371_v19  ;;  %v1725_v19 = vmul.f32 %v5983_v22, %v5891_v46 }
 0x6b0   :  { %4112 = vmatprep.subr.bf16.mxu1 %v1634_v7  ;;  %v1711_v7 = vmul.f32 %v5983_v22, %v5886_v53 }
 0x6b1   :  { %v1807_v36 = vsel %vm182_vm2, %v1725_v19, 0.0 }
 0x6b2   :  { %v1765_v8 = vsel %vm182_vm2, %v1711_v7, 0.0 }
 0x6b3   :  { %4113 = vmatpush3.bf16.msra.mxu1 %v7372_v40  ;;  %v1723_v40 = vmul.f32 %v5983_v22, %v5907_v57 }
 0x6b4   :  { %4271 = vmatprep.subr.bf16.mxu1 %v7373_v18 }
 0x6b5   :  { %v1801_v53 = vsel %vm182_vm2, %v1723_v40, 0.0 }
 0x6b6   :  { %1685 = vmatmul.mubr.bf16.vlgmr.msra.gmra.mxu1 %v4366_v16  ;;  %v1709_v16 = vmul.f32 %v5983_v22, %v5904_v31 }
 0x6b7   :  { %4279 = vmatprep.mubr.msk.bf16.mxu1 %vm4954_vm0, %v7373_v18  ;;  %4272 = vmatpush3.bf16.msra.mxu1 %v4369_v26  ;;  %v1707_v26 = vmul.f32 %v5983_v22, %v5725_v54 }
 0x6b8   :  { %4273 = vmatprep.subr.bf16.mxu1 %v7373_v18  ;;  %v1759_v28 = vsel %vm182_vm2, %v1709_v16, 0.0 }
 0x6b9   :  { %v1753_v46 = vsel %vm182_vm2, %v1707_v26, 0.0 }
 0x6bb   :  { %4274 = vmatpush3.bf16.msra.mxu1 %v4370_v14  ;;  %v1721_v14 = vmul.f32 %v5983_v22, %v5920_v33 }
 0x6bc   :  { %4275 = vmatprep.subr.bf16.mxu1 %v7373_v18 }
 0x6bd   :  { %v1795_v31 = vsel %vm182_vm2, %v1721_v14, 0.0  ;;  %v4376_v14 = vld [vmem:[%s7338_s0 + $0x10] sm:$0xff]  }
 0x6bf   :  { %4276 = vmatpush3.bf16.msra.mxu1 %v4371_v42  ;;  %v1705_v42 = vmul.f32 %v5983_v22, %v5731_v35 }
 0x6c0   :  { %4277 = vmatprep.subr.bf16.mxu1 %v7373_v18 }
 0x6c1   :  { %v1747_v57 = vsel %vm182_vm2, %v1705_v42, 0.0 }
 0x6c3   :  { %4278 = vmatpush3.bf16.msra.mxu1 %v4372_v10  ;;  %v1703_v10 = vmul.f32 %v5983_v22, %v5712_v62 }
 0x6c4   :  { %4283 = vmatprep.subr.bf16.mxu1 %v7373_v18 }
 0x6c5   :  { %v1741_v33 = vsel %vm182_vm2, %v1703_v10, 0.0 }
 0x776   :  { %v4114_v34 = vpop.f32.mrf.mxu1 }
 0x778   :  { %v4115_v12 = vpop.f32.mrf.mxu1 }
 0x779   :  { %v4116_v24 = vadd.f32 %v4115_v12, %v4114_v34  ;;  %v1719_v34 = vmul.f32 %v5983_v22, %v5928_v52  ;;  %v1717_v12 = vmul.f32 %v5983_v22, %v5939_v29 }
 0x77a   :  { %v4117_v27 = vpop.f32.mrf.mxu1 }
 0x77b   :  { %v1789_v54 = vsel %vm182_vm2, %v1719_v34, 0.0  ;;  %v1783_v35 = vsel %vm182_vm2, %v1717_v12, 0.0  ;;  %v3958_v34 = vld [vmem:[%s7275_s20] ss:$0 sm:$0xff] }
 0x77c   :  { %v4118_v23 = vpop.f32.mrf.mxu1 }
 0x77d   :  { %v4119_v32 = vadd.f32 %v4118_v23, %v4117_v27  ;;  %v1701_v27 = vmul.f32 %v5983_v22, %v5719_v38  ;;  %v4373_v38 = vld [vmem:[%s7273_s19 + $0x8] sm:$0xff]  }
 0x77f   :  { %v4346_v48 = vpack.i.bf16 %v4119_v32, %v4116_v24  ;;  %v1735_v52 = vsel %vm182_vm2, %v1701_v27, 0.0  ;;  %v4377_v27 = vld [vmem:[%s7266_s15 + $0x18] sm:$0xff]  }
 0x780   :  { %4299 = vmatprep.subr.bf16.mxu0 %v4377_v27 }
 0x781   :  { %4347 = vrot.lane.b32.xlu0 %v4346_v48, %s4955_s7  ;;  %4300 = vmatpush3.bf16.msra.mxu0 %v4377_v27  ;;  %v7380_v27 = vld [vmem:[#allocation5_spill] sm:$0xff] }
 0x7a0   :  { %1826 = vadd.xlane.f32.xlu0 %v1825_v63  ;;  %v3947_v63 = vld [vmem:[%s7274_s18] ss:$0 sm:$0xff] }
 0x7a4   :  { %1778 = vadd.xlane.f32.xlu0 %v1777_v58 }
 0x7a8   :  { %1820 = vadd.xlane.f32.xlu0 %v1819_v4 }
 0x7ac   :  { %1772 = vadd.xlane.f32.xlu0 %v1771_v49 }
 0x7b0   :  { %1814 = vadd.xlane.f32.xlu0 %v1813_v25 }
 0x7b4   :  { %1766 = vadd.xlane.f32.xlu0 %v1765_v8 }
 0x7b8   :  { %1808 = vadd.xlane.f32.xlu0 %v1807_v36 }
 0x7bc   :  { %1760 = vadd.xlane.f32.xlu0 %v1759_v28 }
 0x7c0   :  { %1802 = vadd.xlane.f32.xlu0 %v1801_v53 }
 0x7c4   :  { %1754 = vadd.xlane.f32.xlu0 %v1753_v46  ;;  %v4375_v46 = vld [vmem:[%s7338_s0 + $0x18] sm:$0xff]  }
 0x7c8   :  { %1796 = vadd.xlane.f32.xlu0 %v1795_v31 }
 0x7cc   :  { %1748 = vadd.xlane.f32.xlu0 %v1747_v57 }
 0x7d0   :  { %1790 = vadd.xlane.f32.xlu0 %v1789_v54 }
 0x7d4   :  { %1742 = vadd.xlane.f32.xlu0 %v1741_v33 }
 0x7d8   :  { %1784 = vadd.xlane.f32.xlu0 %v1783_v35 }
 0x7dc   :  { %1736 = vadd.xlane.f32.xlu0 %v1735_v52 }
 0x7f3   :  { %v4348_v23 = vpop.permute.xlu0 %4347 }
 0x7f4   :  { %v4350_v24 = vunpack.i.h.bf16 %v4348_v23  ;;  %v4349_v32 = vunpack.i.l.bf16 %v4348_v23 }
 0x7f6   :  { %v2084_v62 = vsel %vm182_vm2, %v5243_v60, %v4350_v24  ;;  %v2083_v48 = vsel %vm182_vm2, %v5241_v59, %v4349_v32  ;;  %v1730_v24 = vmul.f32 %v5983_v22, %v5852_v20 }
 0x7f7   :  { %v2093_v29 = vpack.c.bf16 %v2084_v62, %v2083_v48  ;;  %v1714_v62 = vmul.f32 %v5983_v22, %v5859_v55 }
 0x7f8   :  { %v1822_v32 = vsel %vm182_vm2, %v1730_v24, 0.0  ;;  %v7383_v24 = vld [vmem:[#allocation7_spill] sm:$0xff] }
 0x7f9   :  { %4280 = vmatmul.mubr.msk.bf16.vlgmr.msra.gmra.mxu1 %vm279_vm3, %v2093_v29  ;;  %v1774_v48 = vsel %vm182_vm2, %v1714_v62, 0.0  ;;  %v1728_v29 = vmul.f32 %v5983_v22, %v5862_v44  ;;  %v7384_v62 = vld [vmem:[#allocation8_spill] sm:$0xff] }
 0x7fa   :  { %4287 = vmatprep.mubr.msk.bf16.mxu1 %vm4954_vm0, %v7373_v18  ;;  %4284 = vmatpush3.bf16.msra.mxu1 %v4373_v38 }
 0x7fb   :  { %4285 = vmatprep.subr.bf16.mxu1 %v7373_v18  ;;  %v1816_v38 = vsel %vm182_vm2, %v1728_v29, 0.0 }
 0x7fe   :  { %4286 = vmatpush3.bf16.msra.mxu1 %v4374_v5  ;;  %v1712_v5 = vmul.f32 %v5983_v22, %v5880_v11 }
 0x7ff   :  { %4291 = vmatprep.subr.bf16.mxu1 %v7373_v18 }
 0x800   :  { %v1768_v20 = vsel %vm182_vm2, %v1712_v5, 0.0  ;;  %v7385_v5 = vld [vmem:[#allocation10_spill] sm:$0xff] }
 0x8b9   :  { %v2162_v41 = vpop.f32.mrf.mxu1 }
 0x8ba   :  { %v2163_v58 = vadd.f32 %v3947_v63, %v2162_v41  ;;  %v1710_v41 = vmul.f32 %v5983_v22, %v5896_v2 }
 0x8bb   :  { %v4281_v15 = vpop.f32.mrf.mxu1 }
 0x8bc   :  { %v3953_v4 = vmul.f32 -1.442695, %v2163_v58  ;;  %v1762_v44 = vsel %vm182_vm2, %v1710_v41, 0.0  ;;  %v1708_v15 = vmul.f32 %v5983_v22, %v5912_v51 }
 0x8bd   :  { %v2165_v13 = vpop.f32.mrf.mxu1 }
 0x8be   :  { %4651 = vpow2.f32 %v3953_v4  ;;  %v2166_v49 = vadd.f32 %v3947_v63, %v2165_v13  ;;  %v1726_v63 = vmul.f32 %v5983_v22, %v5883_v0  ;;  %v1756_v0 = vsel %vm182_vm2, %v1708_v15, 0.0 }
 0x8bf   :  { %v4282_v56 = vpop.f32.mrf.mxu1  ;;  %v1722_v4 = vmul.f32 %v5983_v22, %v5915_v37  ;;  %v1706_v13 = vmul.f32 %v5983_v22, %v5723_v6  ;;  %v3967_v6 = vld [vmem:[%s7267_s14 + $0x1] ss:$0 sm:$0xff] }
 0x8c0   :  { %v3954_v25 = vmul.f32 -1.442695, %v2166_v49  ;;  %v1810_v55 = vsel %vm182_vm2, %v1726_v63, 0.0  ;;  %v1704_v56 = vmul.f32 %v5983_v22, %v5727_v3 }
 0x8c1   :  { %v1798_v2 = vsel %vm182_vm2, %v1722_v4, 0.0 }
 0x8c2   :  { %4653 = vpow2.f32 %v3954_v25  ;;  %v1744_v37 = vsel %vm182_vm2, %v1704_v56, 0.0  ;;  %v1718_v25 = vmul.f32 %v5983_v22, %v5936_v43  ;;  %v7391_v56 = vld [vmem:[#allocation20_spill] sm:$0xff] }
 0x8cb   :  { %v4652_v7 = vpop.eup %4651 }
 0x8cc   :  { %v2175_v8 = vadd.f32 1.0, %v4652_v7  ;;  %v1786_v7 = vsel %vm182_vm2, %v1718_v25, 0.0  ;;  %v7392_v25 = vld [vmem:[#allocation21_spill] sm:$0xff] }
 0x8ce   :  { %4655 = vrcp.f32 %v2175_v8 }
 0x8cf   :  { %v4654_v19 = vpop.eup %4653 }
 0x8d0   :  { %v2176_v36 = vadd.f32 1.0, %v4654_v19  ;;  %v1716_v19 = vmul.f32 %v5983_v22, %v5947_v47 }
 0x8d2   :  { %4657 = vrcp.f32 %v2176_v36  ;;  %v1780_v43 = vsel %vm182_vm2, %v1716_v19, 0.0 }
 0x8db   :  { %v4656_v16 = vpop.eup %4655 }
 0x8dc   :  { %v2181_v40 = vmul.f32 %v4656_v16, %v2163_v58  ;;  %v1724_v58 = vmul.f32 %v5983_v22, %v5899_v21  ;;  %v1750_v21 = vsel %vm182_vm2, %v1706_v13, 0.0  ;;  %v1700_v16 = vmul.f32 %v5983_v22, %v5715_v61  ;;  %v7389_v13 = vld [vmem:[#allocation18_spill] sm:$0xff] }
 0x8de   :  { %v1804_v11 = vsel %vm182_vm2, %v1724_v58, 0.0  ;;  %v1732_v47 = vsel %vm182_vm2, %v1700_v16, 0.0 }
 0x8df   :  { %v4658_v28 = vpop.eup %4657 }
 0x8e0   :  { %v2182_v53 = vmul.f32 %v4658_v28, %v2166_v49  ;;  %v1720_v49 = vmul.f32 %v5983_v22, %v5925_v17  ;;  %v1702_v17 = vmul.f32 %v5983_v22, %v5710_v50  ;;  %v6130_v50 = vld [vmem:[%s7268_s13 + $0x1] ss:$0 sm:$0xff] }
 0x8e1   :  { %v6140_v61 = vmul.f32 %v6130_v50, %v5338_v1  ;;  %v7377_v1 = vld [vmem:[#allocation11_spill] sm:$0xff] }
 0x8e2   :  { %v2187_v26 = vpack.c.bf16 %v2182_v53, %v2181_v40  ;;  %v1792_v51 = vsel %vm182_vm2, %v1720_v49, 0.0  ;;  %v1738_v3 = vsel %vm182_vm2, %v1702_v17, 0.0  ;;  %v7390_v49 = vld [vmem:[#allocation19_spill] sm:$0xff] }
 0x8e4   :  { %4288 = vmatmul.mubr.msk.bf16.vlgmr.msra.gmra.mxu1 %vm182_vm2, %v2187_v26  ;;  %v6136_v26 = vmul.f32 %v6130_v50, %v5298_v30 }
 0x8e5   :  { %4295 = vmatprep.mubr.msk.bf16.mxu1 %vm4954_vm0, %v7373_v18  ;;  %4292 = vmatpush3.bf16.msra.mxu1 %v4375_v46  ;;  %v6144_v46 = vmul.f32 %v6130_v50, %v5309_v39 }
 0x8e6   :  { %4293 = vmatprep.subr.bf16.mxu1 %v7373_v18 }
 0x8e9   :  { %4294 = vmatpush3.bf16.msra.mxu1 %v4376_v14  ;;  %v7374_v14 = vld [vmem:[#allocation2_spill] sm:$0xff] }
 0x9a4   :  { %v2237_v31 = vpop.f32.mrf.mxu1 }
 0x9a5   :  { %v2244_v57 = vadd.f32 %v2237_v31, %v5241_v59  ;;  %v4378_v59 = vld [vmem:[%s7266_s15 + $0x10] sm:$0xff]   ;;  %v6148_v31 = vmul.f32 %v6130_v50, %v7374_v14  ;;  %v7397_v14 = vld [vmem:[#allocation26_spill] sm:$0xff] }
 0x9a6   :  { %v4289_v42 = vpop.f32.mrf.mxu1  ;;  %4301 = vmatprep.subr.bf16.mxu0 %v4378_v59 }
 0x9a7   :  { %v2253_v12 = vadd.f32 %v3958_v34, %v2244_v57  ;;  %4302 = vmatpush3.bf16.msra.mxu0 %v4378_v59  ;;  %v7375_v42 = vld [vmem:[#allocation9_spill] sm:$0xff]  ;;  %v2561_v59 = vmul.f32 %v6130_v50, %v7380_v27 }
 0x9a8   :  { %v2240_v54 = vpop.f32.mrf.mxu1  ;;  %v6152_v57 = vmul.f32 %v6130_v50, %v7375_v42  ;;  %v6242_v42 = vmul.f32 %v6130_v50, %v7397_v14 }
 0x9a9   :  { %v2245_v10 = vadd.f32 %v2240_v54, %v5243_v60 }
 0x9aa   :  { %v4290_v33 = vpop.f32.mrf.mxu1 }
 0x9ab   :  { %v2254_v35 = vadd.f32 %v3958_v34, %v2245_v10  ;;  %v7376_v34 = vld [vmem:[#allocation3_spill] sm:$0xff]  ;;  %v6160_v10 = vmul.f32 %v6130_v50, %v7377_v1  ;;  %v7378_v33 = vld [vmem:[#allocation13_spill] sm:$0xff] }
 0x9ac   :  { %v6156_v54 = vmul.f32 %v6130_v50, %v7376_v34  ;;  %v6164_v39 = vmul.f32 %v6130_v50, %v7378_v33  ;;  %v7398_v1 = vld [vmem:[#allocation27_spill] sm:$0xff] }
 0x9ad   :  { %v2260_v18 = vpack.c.bf16 %v2254_v35, %v2253_v12  ;;  %v7379_v35 = vld [vmem:[#allocation4_spill] sm:$0xff]  ;;  %v6248_v33 = vmul.f32 %v6130_v50, %v7398_v1 }
 0x9af   :  { %4296 = vmatmul.mubr.msk.bf16.vlgmr.msra.gmra.mxu1 %vm182_vm2, %v2260_v18  ;;  %v6169_v18 = vmul.f32 %v6130_v50, %v7379_v35  ;;  %v7399_v35 = vld [vmem:[#allocation28_spill] sm:$0xff] }
 0x9b0   :  { %3733 = vmatprep.mubr.bf16.mxu1 %v5706_v45  ;;  %v6252_v27 = vmul.f32 %v6130_v50, %v7399_v35 }
 0xa6f   :  { %v2310_v60 = vpop.f32.mrf.mxu1 }
 0xa70   :  { %2509 = vrot.lane.b32.xlu1 %v2310_v60, %s4956_s11  ;;  %v2325_v8 = vadd.f32 %v3967_v6, %v2310_v60  ;;  %v7381_v60 = vld [vmem:[#allocation6_spill] sm:$0xff] }
 0xa71   :  { %v4297_v52 = vpop.f32.mrf.mxu1 }
 0xa72   :  { %v2329_v36 = vcombine.high %v2325_v8, %v2325_v8  ;;  %v2336_v28 = vrot.slane %v2325_v8, %v5349_v9  ;;  %v6175_v52 = vmul.f32 %v6130_v50, %v7381_v60  ;;  %v7394_v8 = vld [vmem:[#allocation23_spill] sm:$0xff] }
 0xa73   :  { %v2313_v23 = vpop.f32.mrf.mxu1  ;;  %v7400_v60 = vld [vmem:[#allocation15_spill] sm:$0xff] }
 0xa74   :  { %2511 = vrot.lane.b32.xlu1 %v2313_v23, %s4956_s11  ;;  %v2343_v40 = vrot.slane %v2329_v36, %v5349_v9  ;;  %v2326_v53 = vadd.f32 %v3967_v6, %v2313_v23  ;;  %v2344_v22 = vcombine.high %v2336_v28, %v2336_v28  ;;  %v7382_v23 = vld [vmem:[#allocation16_spill] sm:$0xff]  ;;  %v2352_v29 = vrot.slane %v2336_v28, %v5349_v9 }
 0xa75   :  { %v4298_v45 = vpop.f32.mrf.mxu1  ;;  %v6219_v6 = vmul.f32 %v6130_v50, %v7392_v25 }
 0xa76   :  { %v2345_v30 = vcombine.high %v2343_v40, %v2343_v40  ;;  %v2385_v12 = vrot.slane %v2326_v53, %v5349_v9  ;;  %v6179_v45 = vmul.f32 %v6130_v50, %v7382_v23  ;;  %v2359_v63 = vrot.slane %v2343_v40, %v5349_v9 }
 0xa77   :  { %v2378_v41 = vcombine.high %v2326_v53, %v2326_v53  ;;  %v2374_v19 = vcombine.high %v2352_v29, %v2352_v29  ;;  %v2430_v23 = vrot.slane %v2352_v29, %v7400_v60 }
 0xa78   :  { %v2375_v28 = vcombine.high %v2359_v63, %v2359_v63 }
 0xa79   :  { %v6234_v53 = vrot.slane %v2378_v41, %v5349_v9 }
 0xa7b   :  { %v6266_v29 = vrot.slane %v6234_v53, %v5349_v9 }
 0xa98   :  { %1823 = vadd.xlane.f32.xlu1 %v1822_v32  ;;  %v2563_v32 = vmul.f32 %v6130_v50, %v7383_v24 }
 0xa9c   :  { %1775 = vadd.xlane.f32.xlu1 %v1774_v48  ;;  %v2565_v48 = vmul.f32 %v6130_v50, %v7384_v62  ;;  %v2438_v62 = vrot.slane %v2374_v19, %v7400_v60 }
 0xaa0   :  { %1817 = vadd.xlane.f32.xlu1 %v1816_v38  ;;  %v2366_v38 = vrot.slane %v2344_v22, %v5349_v9 }
 0xaa2   :  { %v2376_v36 = vcombine.high %v2366_v38, %v2366_v38  ;;  %v2434_v24 = vrot.slane %v2366_v38, %v7400_v60 }
 0xaa4   :  { %1769 = vadd.xlane.f32.xlu1 %v1768_v20  ;;  %v6189_v20 = vmul.f32 %v6130_v50, %v7385_v5  ;;  %v2442_v5 = vrot.slane %v2376_v36, %v7400_v60 }
 0xaa8   :  { %1811 = vadd.xlane.f32.xlu1 %v1810_v55  ;;  %v2373_v55 = vrot.slane %v2345_v30, %v5349_v9  ;;  %v2401_v30 = vrot.slane %v2385_v12, %v5349_v9 }
 0xaaa   :  { %v2377_v40 = vcombine.high %v2373_v55, %v2373_v55  ;;  %v2450_v41 = vrot.slane %v2373_v55, %v7400_v60  ;;  %v2423_v38 = vcombine.high %v2401_v30, %v2401_v30 }
 0xaac   :  { %1763 = vadd.xlane.f32.xlu1 %v1762_v44  ;;  %v7386_v44 = vld [vmem:[#allocation12_spill] sm:$0xff] }
 0xaad   :  { %v6195_v58 = vmul.f32 %v6130_v50, %v7386_v44  ;;  %v2454_v44 = vrot.slane %v2375_v28, %v7400_v60 }
 0xab0   :  { %1805 = vadd.xlane.f32.xlu1 %v1804_v11  ;;  %v7387_v11 = vld [vmem:[#allocation14_spill] sm:$0xff] }
 0xab1   :  { %v6199_v15 = vmul.f32 %v6130_v50, %v7387_v11  ;;  %v2458_v11 = vrot.slane %v2377_v40, %v7400_v60 }
 0xab4   :  { %1757 = vadd.xlane.f32.xlu1 %v1756_v0  ;;  %v7388_v0 = vld [vmem:[#allocation17_spill] sm:$0xff] }
 0xab5   :  { %v6203_v4 = vmul.f32 %v6130_v50, %v7388_v0  ;;  %v2394_v0 = vcombine.high %v6234_v53, %v6234_v53 }
 0xab8   :  { %1799 = vadd.xlane.f32.xlu1 %v1798_v2  ;;  %v2393_v2 = vcombine.high %v2385_v12, %v2385_v12  ;;  %v2446_v12 = vrot.slane %v2359_v63, %v7400_v60 }
 0xaba   :  { %v2415_v34 = vrot.slane %v2393_v2, %v5349_v9 }
 0xabc   :  { %1751 = vadd.xlane.f32.xlu1 %v1750_v21  ;;  %v6207_v21 = vmul.f32 %v6130_v50, %v7389_v13  ;;  %v2425_v2 = vcombine.high %v2415_v34, %v2415_v34  ;;  %v2462_v13 = vrot.slane %v2401_v30, %v7400_v60 }
 0xac0   :  { %1793 = vadd.xlane.f32.xlu1 %v1792_v51  ;;  %v6211_v51 = vmul.f32 %v6130_v50, %v7390_v49  ;;  %v6270_v49 = vrot.slane %v2415_v34, %v7400_v60 }
 0xac4   :  { %1745 = vadd.xlane.f32.xlu1 %v1744_v37  ;;  %v6215_v37 = vmul.f32 %v6130_v50, %v7391_v56 }
 0xac8   :  { %1787 = vadd.xlane.f32.xlu1 %v1786_v7  ;;  %v7393_v7 = vld [vmem:[#allocation22_spill] sm:$0xff] }
 0xac9   :  { %v6223_v17 = vmul.f32 %v6130_v50, %v7393_v7 }
 0xacc   :  { %1739 = vadd.xlane.f32.xlu1 %v1738_v3  ;;  %v6227_v3 = vmul.f32 %v6130_v50, %v7394_v8 }
 0xad0   :  { %1781 = vadd.xlane.f32.xlu1 %v1780_v43  ;;  %v7395_v43 = vld [vmem:[#allocation24_spill] sm:$0xff] }
 0xad1   :  { %v6231_v16 = vmul.f32 %v6130_v50, %v7395_v43 }
 0xad4   :  { %1733 = vadd.xlane.f32.xlu1 %v1732_v47  ;;  %v7396_v47 = vld [vmem:[#allocation25_spill] sm:$0xff] }
 0xad5   :  { %v6238_v22 = vmul.f32 %v6130_v50, %v7396_v47 }
 0xae2   :  { %v6272_v63 = vpop.permute.xlu1 %2509 }
 0xae3   :  { %v2515_v55 = vadd.f32 %v6272_v63, %v2430_v23  ;;  %v2517_v56 = vadd.f32 %v6272_v63, %v2434_v24  ;;  %v2519_v25 = vadd.f32 %v6272_v63, %v2438_v62  ;;  %v2521_v7 = vadd.f32 %v6272_v63, %v2442_v5 }
 0xae4   :  { %v2523_v8 = vadd.f32 %v6272_v63, %v2446_v12  ;;  %v2525_v19 = vadd.f32 %v6272_v63, %v2450_v41  ;;  %v2527_v36 = vadd.f32 %v6272_v63, %v2454_v44  ;;  %v2529_v43 = vadd.f32 %v6272_v63, %v2458_v11 }
 0xae5   :  { %v6283_v28 = vadd.f32 %v6140_v61, %v2515_v55  ;;  %v6286_v40 = vadd.f32 %v6144_v46, %v2517_v56  ;;  %v6289_v47 = vadd.f32 %v6156_v54, %v2519_v25  ;;  %v6291_v14 = vadd.f32 %v2561_v59, %v2521_v7 }
 0xae6   :  { %v6293_v30 = vpop.permute.xlu1 %2511  ;;  %v6295_v34 = vadd.f32 %v2563_v32, %v2523_v8  ;;  %v6297_v1 = vadd.f32 %v2565_v48, %v2525_v19  ;;  %v6300_v35 = vadd.f32 %v6160_v10, %v2527_v36  ;;  %v6303_v61 = vadd.f32 %v6164_v39, %v2529_v43 }
 0xae7   :  { %v2516_v46 = vadd.f32 %v6293_v30, %v2430_v23  ;;  %v3970_v55 = vmul.f32 -1.442695, %v6283_v28  ;;  %v2518_v54 = vadd.f32 %v6293_v30, %v2434_v24  ;;  %v3972_v59 = vmul.f32 -1.442695, %v6286_v40 }
 0xae8   :  { %v2520_v56 = vadd.f32 %v6293_v30, %v2438_v62  ;;  %v3974_v32 = vmul.f32 -1.442695, %v6289_v47  ;;  %v2522_v48 = vadd.f32 %v6293_v30, %v2442_v5  ;;  %v3976_v10 = vmul.f32 -1.442695, %v6291_v14 }
 0xae9   :  { %v6314_v25 = vadd.f32 %v6136_v26, %v2516_v46  ;;  %4659 = vpow2.f32 %v3970_v55  ;;  %v6317_v39 = vadd.f32 %v6148_v31, %v2518_v54  ;;  %v2524_v23 = vadd.f32 %v6293_v30, %v2446_v12 }
 0xaea   :  { %v2470_v24 = vrot.slane %v2423_v38, %v7400_v60  ;;  %4661 = vpow2.f32 %v3972_v59  ;;  %v6322_v62 = vadd.f32 %v6169_v18, %v2520_v56  ;;  %v6325_v7 = vadd.f32 %v6175_v52, %v2522_v48 }
 0xaeb   :  { %v3971_v5 = vmul.f32 -1.442695, %v6314_v25  ;;  %v3973_v26 = vmul.f32 -1.442695, %v6317_v39  ;;  %4663 = vpow2.f32 %v3974_v32  ;;  %v6330_v8 = vadd.f32 %v6152_v57, %v2524_v23 }
 0xaec   :  { %v3975_v31 = vmul.f32 -1.442695, %v6322_v62  ;;  %4665 = vpow2.f32 %v3976_v10  ;;  %v3977_v12 = vmul.f32 -1.442695, %v6325_v7  ;;  %v2526_v38 = vadd.f32 %v6293_v30, %v2450_v41 }
 0xaed   :  { %v2474_v18 = vrot.slane %v2425_v2, %v7400_v60  ;;  %4667 = vpow2.f32 %v3971_v5  ;;  %v3978_v52 = vmul.f32 -1.442695, %v6295_v34  ;;  %v2528_v19 = vadd.f32 %v6293_v30, %v2454_v44 }
 0xaee   :  { %4669 = vpow2.f32 %v3973_v26  ;;  %v3979_v36 = vmul.f32 -1.442695, %v6330_v8  ;;  %v6340_v57 = vadd.f32 %v6189_v20, %v2526_v38  ;;  %v2530_v43 = vadd.f32 %v6293_v30, %v2458_v11  ;;  %v7401_v26 = vld [vmem:[#allocation29_spill] sm:$0xff] }
 0xaef   :  { %4671 = vpow2.f32 %v3975_v31  ;;  %v3980_v46 = vmul.f32 -1.442695, %v6297_v1  ;;  %v6345_v41 = vadd.f32 %v6195_v58, %v2528_v19  ;;  %v2531_v2 = vadd.f32 %v6272_v63, %v2462_v13 }
 0xaf0   :  { %4673 = vpow2.f32 %v3977_v12  ;;  %v3981_v55 = vmul.f32 -1.442695, %v6340_v57  ;;  %v6350_v44 = vadd.f32 %v6199_v15, %v2530_v43  ;;  %v2532_v54 = vadd.f32 %v6293_v30, %v2462_v13 }
 0xaf1   :  { %4675 = vpow2.f32 %v3978_v52  ;;  %v3982_v20 = vmul.f32 -1.442695, %v6300_v35  ;;  %v6355_v11 = vadd.f32 %v6179_v45, %v2531_v2  ;;  %v2533_v58 = vadd.f32 %v6272_v63, %v6270_v49 }
 0xaf2   :  { %4677 = vpow2.f32 %v3979_v36  ;;  %v3983_v59 = vmul.f32 -1.442695, %v6345_v41  ;;  %v6361_v56 = vadd.f32 %v6207_v21, %v2532_v54  ;;  %v2534_v15 = vadd.f32 %v6293_v30, %v6270_v49 }
 0xaf3   :  { %4679 = vpow2.f32 %v3980_v46  ;;  %v3984_v13 = vmul.f32 -1.442695, %v6303_v61  ;;  %v6367_v32 = vadd.f32 %v6203_v4, %v2533_v58  ;;  %v2535_v45 = vadd.f32 %v6272_v63, %v2470_v24 }
 0xaf4   :  { %4681 = vpow2.f32 %v3981_v55  ;;  %v3985_v48 = vmul.f32 -1.442695, %v6350_v44  ;;  %v6372_v10 = vadd.f32 %v6215_v37, %v2534_v15  ;;  %v2536_v21 = vadd.f32 %v6293_v30, %v2470_v24 }
 0xaf5   :  { %v2422_v49 = vrot.slane %v2394_v0, %v5349_v9  ;;  %4683 = vpow2.f32 %v3982_v20  ;;  %v6380_v23 = vadd.f32 %v6211_v51, %v2535_v45  ;;  %v2537_v4 = vadd.f32 %v6272_v63, %v2474_v18 }
 0xaf6   :  { %v4660_v5 = vpop.eup %4659  ;;  %v6385_v31 = vmul.f32 %v6130_v50, %v7401_v26  ;;  %4685 = vpow2.f32 %v3983_v59  ;;  %v6388_v37 = vadd.f32 %v6223_v17, %v2536_v21  ;;  %v2538_v24 = vadd.f32 %v6293_v30, %v2474_v18 }
 0xaf7   :  { %v4662_v12 = vpop.eup %4661  ;;  %v2478_v9 = vrot.slane %v6266_v29, %v7400_v60  ;;  %v2715_v53 = vadd.f32 1.0, %v4660_v5  ;;  %4687 = vpow2.f32 %v3984_v13  ;;  %v6394_v51 = vadd.f32 %v6219_v6, %v2537_v4  ;;  %v7402_v4 = vld [vmem:[#allocation30_spill] sm:$0xff] }
 0xaf8   :  { %v4664_v0 = vpop.eup %4663  ;;  %v2424_v38 = vcombine.high %v6266_v29, %v6266_v29  ;;  %v2717_v52 = vadd.f32 1.0, %v4662_v12  ;;  %4689 = vpow2.f32 %v3985_v48  ;;  %v6399_v17 = vadd.f32 %v6231_v16, %v2538_v24 }
 0xaf9   :  { %v4666_v19 = vpop.eup %4665  ;;  %v2482_v18 = vrot.slane %v2422_v49, %v7400_v60  ;;  %4691 = vrcp.f32 %v2715_v53  ;;  %v2719_v36 = vadd.f32 1.0, %v4664_v0  ;;  %v2539_v43 = vadd.f32 %v6272_v63, %v2478_v9 }
 0xafa   :  { %v4668_v46 = vpop.eup %4667  ;;  %v2426_v2 = vcombine.high %v2422_v49, %v2422_v49  ;;  %4693 = vrcp.f32 %v2717_v52  ;;  %v2721_v6 = vadd.f32 1.0, %v4666_v19  ;;  %v2540_v55 = vadd.f32 %v6293_v30, %v2478_v9 }
 0xafb   :  { %v4670_v54 = vpop.eup %4669  ;;  %v2716_v29 = vadd.f32 1.0, %v4668_v46  ;;  %4695 = vrcp.f32 %v2719_v36  ;;  %v6405_v20 = vadd.f32 %v6227_v3, %v2539_v43  ;;  %v2541_v16 = vadd.f32 %v6272_v63, %v2482_v18 }
 0xafc   :  { %v4672_v58 = vpop.eup %4671  ;;  %v2718_v59 = vadd.f32 1.0, %v4670_v54  ;;  %4697 = vrcp.f32 %v2721_v6  ;;  %v6409_v15 = vadd.f32 %v6242_v42, %v2540_v55  ;;  %v2542_v13 = vadd.f32 %v6293_v30, %v2482_v18 }
 0xafd   :  { %v4674_v45 = vpop.eup %4673  ;;  %v2486_v48 = vrot.slane %v2424_v38, %v7400_v60  ;;  %4699 = vrcp.f32 %v2716_v29  ;;  %v2720_v21 = vadd.f32 1.0, %v4672_v58  ;;  %v6414_v49 = vadd.f32 %v6238_v22, %v2541_v16  ;;  %v7403_v38 = vld [vmem:[#allocation31_spill] sm:$0xff] }
 0xafe   :  { %v4676_v3 = vpop.eup %4675  ;;  %v2584_v5 = vmul.f32 %v6130_v50, %v7402_v4  ;;  %4701 = vrcp.f32 %v2718_v59  ;;  %v2722_v26 = vadd.f32 1.0, %v4674_v45  ;;  %v6419_v24 = vadd.f32 %v6252_v27, %v2542_v13 }
 0xaff   :  { %v4678_v42 = vpop.eup %4677  ;;  %v2490_v12 = vrot.slane %v2426_v2, %v7400_v60  ;;  %4703 = vrcp.f32 %v2720_v21  ;;  %v2723_v9 = vadd.f32 1.0, %v4676_v3  ;;  %v2543_v53 = vadd.f32 %v6272_v63, %v2486_v48 }
 0xb00   :  { %v4680_v0 = vpop.eup %4679  ;;  %v2586_v22 = vmul.f32 %v6130_v50, %v7403_v38  ;;  %4705 = vrcp.f32 %v2722_v26  ;;  %v2724_v52 = vadd.f32 1.0, %v4678_v42  ;;  %v2544_v19 = vadd.f32 %v6293_v30, %v2486_v48 }
 0xb01   :  { %v4682_v18 = vpop.eup %4681  ;;  %4707 = vrcp.f32 %v2723_v9  ;;  %v2725_v36 = vadd.f32 1.0, %v4680_v0  ;;  %v6427_v27 = vadd.f32 %v6248_v33, %v2543_v53  ;;  %v2545_v60 = vadd.f32 %v6272_v63, %v2490_v12 }
 0xb02   :  { %v4684_v43 = vpop.eup %4683  ;;  %4709 = vrcp.f32 %v2724_v52  ;;  %v2726_v46 = vadd.f32 1.0, %v4682_v18  ;;  %v6430_v2 = vadd.f32 %v2584_v5, %v2544_v19  ;;  %v2546_v6 = vadd.f32 %v6293_v30, %v2490_v12 }
 0xb03   :  { %v4686_v50 = vpop.eup %4685  ;;  %4711 = vrcp.f32 %v2725_v36  ;;  %v2727_v55 = vadd.f32 1.0, %v4684_v43  ;;  %v6434_v54 = vadd.f32 %v6385_v31, %v2545_v60  ;;  %v3986_v59 = vmul.f32 -1.442695, %v6355_v11 }
 0xb04   :  { %v4688_v29 = vpop.eup %4687  ;;  %4713 = vrcp.f32 %v2726_v46  ;;  %v2728_v16 = vadd.f32 1.0, %v4686_v50  ;;  %v6436_v33 = vadd.f32 %v2586_v22, %v2546_v6  ;;  %v3987_v30 = vmul.f32 -1.442695, %v6361_v56 }
 0xb05   :  { %v4690_v58 = vpop.eup %4689  ;;  %4715 = vrcp.f32 %v2727_v55  ;;  %v2729_v63 = vadd.f32 1.0, %v4688_v29  ;;  %v3988_v31 = vmul.f32 -1.442695, %v6367_v32  ;;  %v3989_v3 = vmul.f32 -1.442695, %v6372_v10 }
 0xb06   :  { %v4692_v13 = vpop.eup %4691  ;;  %4717 = vrcp.f32 %v2728_v16  ;;  %v2730_v45 = vadd.f32 1.0, %v4690_v58  ;;  %v3990_v5 = vmul.f32 -1.442695, %v6380_v23  ;;  %v3991_v42 = vmul.f32 -1.442695, %v6388_v37 }
 0xb07   :  { %v4694_v48 = vpop.eup %4693  ;;  %4719 = vrcp.f32 %v2729_v63  ;;  %v3992_v12 = vmul.f32 -1.442695, %v6394_v51  ;;  %v3993_v9 = vmul.f32 -1.442695, %v6399_v17  ;;  %v2811_v0 = vmul.f32 %v4692_v13, %v6283_v28 }
 0xb08   :  { %v4696_v21 = vpop.eup %4695  ;;  %4721 = vrcp.f32 %v2730_v45  ;;  %v3994_v22 = vmul.f32 -1.442695, %v6405_v20  ;;  %v2813_v19 = vmul.f32 %v4694_v48, %v6286_v40  ;;  %v3995_v36 = vmul.f32 -1.442695, %v6409_v15 }
 0xb09   :  { %v4698_v4 = vpop.eup %4697  ;;  %4723 = vpow2.f32 %v3986_v59  ;;  %v2815_v46 = vmul.f32 %v4696_v21, %v6289_v47  ;;  %v3996_v29 = vmul.f32 -1.442695, %v6414_v49  ;;  %v3997_v16 = vmul.f32 -1.442695, %v6419_v24 }
 0xb0a   :  { %v4700_v26 = vpop.eup %4699  ;;  %4725 = vpow2.f32 %v3987_v30  ;;  %v2817_v50 = vmul.f32 %v4698_v4, %v6291_v14  ;;  %v3998_v63 = vmul.f32 -1.442695, %v6427_v27  ;;  %v3999_v59 = vmul.f32 -1.442695, %v6430_v2 }
 0xb0b   :  { %v4702_v53 = vpop.eup %4701  ;;  %v2812_v38 = vmul.f32 %v4700_v26, %v6314_v25  ;;  %4727 = vpow2.f32 %v3988_v31 }
 0xb0c   :  { %v4704_v52 = vpop.eup %4703  ;;  %v2814_v18 = vmul.f32 %v4702_v53, %v6317_v39  ;;  %4729 = vpow2.f32 %v3989_v3 }
 0xb0d   :  { %v4706_v60 = vpop.eup %4705  ;;  %v2848_v43 = vpack.c.bf16 %v2812_v38, %v2811_v0  ;;  %v2816_v6 = vmul.f32 %v4704_v52, %v6322_v62  ;;  %4731 = vpow2.f32 %v3990_v5 }
 0xb0e   :  { %v4708_v28 = vpop.eup %4707  ;;  %v2849_v25 = vpack.c.bf16 %v2814_v18, %v2813_v19  ;;  %v2818_v55 = vmul.f32 %v4706_v60, %v6325_v7  ;;  %4733 = vpow2.f32 %v3991_v42 }
 0xb0f   :  { %v4710_v40 = vpop.eup %4709  ;;  %4303 = vmatprep.mubr.msk.bf16.mxu0 %vm182_vm2, %v2848_v43  ;;  %v2850_v39 = vpack.c.bf16 %v2816_v6, %v2815_v46  ;;  %4735 = vpow2.f32 %v3992_v12  ;;  %v2819_v58 = vmul.f32 %v4708_v28, %v6295_v34  ;;  %v4000_v34 = vmul.f32 -1.442695, %v6434_v54 }
 0xb10   :  { %v4712_v47 = vpop.eup %4711  ;;  %4304 = vmatmul.mubr.msk.bf16.vlgmr.msra.gmra.mxu0 %vm182_vm2, %v2849_v25  ;;  %v2851_v62 = vpack.c.bf16 %v2818_v55, %v2817_v50  ;;  %v2820_v14 = vmul.f32 %v4710_v40, %v6330_v8  ;;  %4737 = vpow2.f32 %v3993_v9  ;;  %v4001_v8 = vmul.f32 -1.442695, %v6436_v33 }
 0xb11   :  { %v4714_v7 = vpop.eup %4713  ;;  %4307 = vmatprep.mubr.msk.bf16.mxu0 %vm182_vm2, %v2850_v39  ;;  %4739 = vpow2.f32 %v3994_v22  ;;  %v2821_v30 = vmul.f32 %v4712_v47, %v6297_v1 }
 0xb12   :  { %v4716_v13 = vpop.eup %4715  ;;  %v2852_v45 = vpack.c.bf16 %v2820_v14, %v2819_v58  ;;  %v2822_v48 = vmul.f32 %v4714_v7, %v6340_v57  ;;  %4741 = vpow2.f32 %v3995_v36 }
 0xb13   :  { %v4718_v31 = vpop.eup %4717  ;;  %4743 = vpow2.f32 %v3996_v29  ;;  %v2823_v4 = vmul.f32 %v4716_v13, %v6300_v35 }
 0xb14   :  { %v4720_v21 = vpop.eup %4719  ;;  %v2853_v3 = vpack.c.bf16 %v2822_v48, %v2821_v30  ;;  %v2824_v5 = vmul.f32 %v4718_v31, %v6345_v41  ;;  %4745 = vpow2.f32 %v3997_v16 }
 0xb15   :  { %v4722_v26 = vpop.eup %4721  ;;  %4747 = vpow2.f32 %v3998_v63  ;;  %v2825_v57 = vmul.f32 %v4720_v21, %v6303_v61 }
 0xb16   :  { %v4724_v42 = vpop.eup %4723  ;;  %v2854_v1 = vpack.c.bf16 %v2824_v5, %v2823_v4  ;;  %v2826_v12 = vmul.f32 %v4722_v26, %v6350_v44  ;;  %4749 = vpow2.f32 %v3999_v59 }
 0xb17   :  { %v4726_v9 = vpop.eup %4725  ;;  %v2731_v53 = vadd.f32 1.0, %v4724_v42  ;;  %4751 = vpow2.f32 %v4000_v34 }
 0xb18   :  { %v4728_v0 = vpop.eup %4727  ;;  %4308 = vmatmul.mubr.msk.bf16.gmra.mxu0 %vm182_vm2, %v2851_v62  ;;  %v2855_v38 = vpack.c.bf16 %v2826_v12, %v2825_v57  ;;  %v2732_v35 = vadd.f32 1.0, %v4726_v9  ;;  %4753 = vpow2.f32 %v4001_v8 }
 0xb19   :  { %v4730_v41 = vpop.eup %4729  ;;  %4311 = vmatprep.mubr.msk.bf16.mxu0 %vm182_vm2, %v2852_v45  ;;  %4755 = vrcp.f32 %v2731_v53  ;;  %v2733_v22 = vadd.f32 1.0, %v4728_v0 }
 0xb1a   :  { %v4732_v52 = vpop.eup %4731  ;;  %4757 = vrcp.f32 %v2732_v35  ;;  %v2734_v61 = vadd.f32 1.0, %v4730_v41 }
 0xb1b   :  { %v4734_v19 = vpop.eup %4733  ;;  %4759 = vrcp.f32 %v2733_v22  ;;  %v2735_v44 = vadd.f32 1.0, %v4732_v52 }
 0xb1c   :  { %v4736_v18 = vpop.eup %4735  ;;  %4761 = vrcp.f32 %v2734_v61  ;;  %v2736_v36 = vadd.f32 1.0, %v4734_v19 }
 0xb1d   :  { %v4738_v60 = vpop.eup %4737  ;;  %4763 = vrcp.f32 %v2735_v44  ;;  %v2737_v43 = vadd.f32 1.0, %v4736_v18 }
 0xb1e   :  { %v4740_v46 = vpop.eup %4739  ;;  %4765 = vrcp.f32 %v2736_v36  ;;  %v2738_v6 = vadd.f32 1.0, %v4738_v60 }
 0xb1f   :  { %v4742_v28 = vpop.eup %4741  ;;  %4767 = vrcp.f32 %v2737_v43  ;;  %v2739_v25 = vadd.f32 1.0, %v4740_v46 }
 0xb20   :  { %v4744_v50 = vpop.eup %4743  ;;  %4312 = vmatmul.mubr.msk.bf16.gmra.mxu0 %vm182_vm2, %v2853_v3  ;;  %4769 = vrcp.f32 %v2738_v6  ;;  %v2740_v55 = vadd.f32 1.0, %v4742_v28 }
 0xb21   :  { %v4746_v40 = vpop.eup %4745  ;;  %4315 = vmatprep.mubr.msk.bf16.mxu0 %vm182_vm2, %v2854_v1  ;;  %4771 = vrcp.f32 %v2739_v25  ;;  %v2741_v39 = vadd.f32 1.0, %v4744_v50 }
 0xb22   :  { %v4748_v29 = vpop.eup %4747  ;;  %4773 = vrcp.f32 %v2740_v55  ;;  %v2742_v16 = vadd.f32 1.0, %v4746_v40 }
 0xb23   :  { %v4750_v47 = vpop.eup %4749  ;;  %4775 = vrcp.f32 %v2741_v39  ;;  %v2743_v62 = vadd.f32 1.0, %v4748_v29 }
 0xb24   :  { %v4752_v58 = vpop.eup %4751  ;;  %4777 = vrcp.f32 %v2742_v16  ;;  %v2744_v14 = vadd.f32 1.0, %v4750_v47 }
 0xb25   :  { %v4754_v7 = vpop.eup %4753  ;;  %4779 = vrcp.f32 %v2743_v62  ;;  %v2745_v63 = vadd.f32 1.0, %v4752_v58 }
 0xb26   :  { %v4756_v59 = vpop.eup %4755  ;;  %4781 = vrcp.f32 %v2744_v14  ;;  %v2746_v13 = vadd.f32 1.0, %v4754_v7 }
 0xb27   :  { %v4758_v45 = vpop.eup %4757  ;;  %4783 = vrcp.f32 %v2745_v63  ;;  %v2827_v48 = vmul.f32 %v4756_v59, %v6355_v11 }
 0xb28   :  { %v4760_v30 = vpop.eup %4759  ;;  %4316 = vmatmul.mubr.msk.bf16.gmra.mxu0 %vm182_vm2, %v2855_v38  ;;  %v2828_v31 = vmul.f32 %v4758_v45, %v6361_v56  ;;  %4785 = vrcp.f32 %v2746_v13 }
 0xb29   :  { %v4762_v34 = vpop.eup %4761  ;;  %v2829_v3 = vmul.f32 %v4760_v30, %v6367_v32 }
 0xb2a   :  { %v4764_v8 = vpop.eup %4763  ;;  %v2856_v21 = vpack.c.bf16 %v2828_v31, %v2827_v48  ;;  %v2830_v4 = vmul.f32 %v4762_v34, %v6372_v10 }
 0xb2b   :  { %v4766_v5 = vpop.eup %4765  ;;  %v2831_v1 = vmul.f32 %v4764_v8, %v6380_v23 }
 0xb2c   :  { %v4768_v26 = vpop.eup %4767  ;;  %4319 = vmatprep.mubr.msk.bf16.mxu0 %vm182_vm2, %v2856_v21  ;;  %v2857_v42 = vpack.c.bf16 %v2830_v4, %v2829_v3  ;;  %v2832_v57 = vmul.f32 %v4766_v5, %v6388_v37 }
 0xb2d   :  { %v4770_v11 = vpop.eup %4769  ;;  %v2833_v9 = vmul.f32 %v4768_v26, %v6394_v51 }
 0xb2e   :  { %v4772_v12 = vpop.eup %4771  ;;  %v2858_v56 = vpack.c.bf16 %v2832_v57, %v2831_v1  ;;  %v2834_v53 = vmul.f32 %v4770_v11, %v6399_v17 }
 0xb2f   :  { %v4774_v0 = vpop.eup %4773  ;;  %v2835_v38 = vmul.f32 %v4772_v12, %v6405_v20 }
 0xb30   :  { %v4776_v32 = vpop.eup %4775  ;;  %4320 = vmatmul.mubr.msk.bf16.gmra.mxu0 %vm182_vm2, %v2857_v42  ;;  %v2859_v10 = vpack.c.bf16 %v2834_v53, %v2833_v9  ;;  %v2836_v35 = vmul.f32 %v4774_v0, %v6409_v15 }
 0xb31   :  { %v4778_v41 = vpop.eup %4777  ;;  %4323 = vmatprep.mubr.msk.bf16.mxu0 %vm182_vm2, %v2858_v56  ;;  %v2837_v22 = vmul.f32 %v4776_v32, %v6414_v49  ;;  %v6505_v49 = vld [vmem:[%s7269_s16 + $0x1] ss:$0 sm:$0xff] }
 0xb32   :  { %v4780_v23 = vpop.eup %4779  ;;  %v2860_v37 = vpack.c.bf16 %v2836_v35, %v2835_v38  ;;  %v2838_v51 = vmul.f32 %v4778_v41, %v6419_v24 }
 0xb33   :  { %v4782_v52 = vpop.eup %4781  ;;  %v2839_v19 = vmul.f32 %v4780_v23, %v6427_v27 }
 0xb34   :  { %v4784_v17 = vpop.eup %4783  ;;  %v2861_v61 = vpack.c.bf16 %v2838_v51, %v2837_v22  ;;  %v2840_v44 = vmul.f32 %v4782_v52, %v6430_v2 }
 0xb35   :  { %v4786_v18 = vpop.eup %4785  ;;  %v2841_v15 = vmul.f32 %v4784_v17, %v6434_v54 }
 0xb36   :  { %v2862_v20 = vpack.c.bf16 %v2840_v44, %v2839_v19  ;;  %v2842_v36 = vmul.f32 %v4786_v18, %v6436_v33 }
 0xb38   :  { %4324 = vmatmul.mubr.msk.bf16.gmra.mxu0 %vm182_vm2, %v2859_v10  ;;  %v2863_v60 = vpack.c.bf16 %v2842_v36, %v2841_v15 }
 0xb39   :  { %4327 = vmatprep.mubr.msk.bf16.mxu0 %vm182_vm2, %v2860_v37 }
 0xb40   :  { %4328 = vmatmul.mubr.msk.bf16.gmra.mxu0 %vm182_vm2, %v2861_v61 }
 0xb41   :  { %4331 = vmatprep.mubr.msk.bf16.mxu0 %vm182_vm2, %v2862_v20 }
 0xb48   :  { %4332 = vmatmul.mubr.msk.bf16.gmra.mxu0 %vm182_vm2, %v2863_v60 }
 0xbd0   :  { %v4305_v24 = vpop.f32.mrf.mxu0 }
 0xbd1   :  { %v6508_v27 = vadd.f32 %v4305_v24, %v6505_v49 }
 0xbd2   :  { %v2966_v2 = vpop.f32.mrf.mxu0 }
 0xbd3   :  { %v4028_v54 = vmul.f32 -1.442695, %v6508_v27  ;;  %v6512_v33 = vadd.f32 %v6505_v49, %v2966_v2 }
 0xbd4   :  { %v4306_v43 = vpop.f32.mrf.mxu0 }
 0xbd5   :  { %4787 = vpow2.f32 %v4028_v54  ;;  %v4026_v46 = vmul.f32 -1.442695, %v6512_v33  ;;  %v6516_v6 = vadd.f32 %v4306_v43, %v6505_v49 }
 0xbd6   :  { %v2969_v28 = vpop.f32.mrf.mxu0 }
 0xbd7   :  { %4789 = vpow2.f32 %v4026_v46  ;;  %v4029_v25 = vmul.f32 -1.442695, %v6516_v6  ;;  %v6520_v50 = vadd.f32 %v6505_v49, %v2969_v28 }
 0xbd8   :  { %v4309_v55 = vpop.f32.mrf.mxu0 }
 0xbd9   :  { %4791 = vpow2.f32 %v4029_v25  ;;  %v4027_v40 = vmul.f32 -1.442695, %v6520_v50  ;;  %v6524_v39 = vadd.f32 %v4309_v55, %v6505_v49 }
 0xbda   :  { %v2982_v29 = vpop.f32.mrf.mxu0 }
 0xbdb   :  { %4793 = vpow2.f32 %v4027_v40  ;;  %v4032_v16 = vmul.f32 -1.442695, %v6524_v39  ;;  %v6528_v47 = vadd.f32 %v6505_v49, %v2982_v29  ;;  %v6582_v29 = vld [vmem:[%s7272_s21 + $0x1] ss:$0 sm:$0xff] }
 0xbdc   :  { %v4310_v62 = vpop.f32.mrf.mxu0 }
 0xbdd   :  { %4795 = vpow2.f32 %v4032_v16  ;;  %v4030_v58 = vmul.f32 -1.442695, %v6528_v47  ;;  %v6532_v14 = vadd.f32 %v4310_v62, %v6505_v49 }
 0xbde   :  { %v2985_v7 = vpop.f32.mrf.mxu0 }
 0xbdf   :  { %4797 = vpow2.f32 %v4030_v58  ;;  %v4033_v63 = vmul.f32 -1.442695, %v6532_v14  ;;  %v6536_v59 = vadd.f32 %v6505_v49, %v2985_v7 }
 0xbe0   :  { %v4313_v13 = vpop.f32.mrf.mxu0 }
 0xbe1   :  { %4799 = vpow2.f32 %v4033_v63  ;;  %v4031_v45 = vmul.f32 -1.442695, %v6536_v59  ;;  %v6540_v30 = vadd.f32 %v4313_v13, %v6505_v49 }
 0xbe2   :  { %v4788_v48 = vpop.eup %4787  ;;  %v2998_v31 = vpop.f32.mrf.mxu0 }
 0xbe3   :  { %v3191_v34 = vadd.f32 1.0, %v4788_v48  ;;  %4801 = vpow2.f32 %v4031_v45  ;;  %v4036_v8 = vmul.f32 -1.442695, %v6540_v30  ;;  %v6544_v21 = vadd.f32 %v6505_v49, %v2998_v31 }
 0xbe4   :  { %v4790_v3 = vpop.eup %4789  ;;  %v4314_v4 = vpop.f32.mrf.mxu0 }
 0xbe5   :  { %4803 = vrcp.f32 %v3191_v34  ;;  %v3189_v5 = vadd.f32 1.0, %v4790_v3  ;;  %v4034_v26 = vmul.f32 -1.442695, %v6544_v21  ;;  %v6548_v42 = vadd.f32 %v4314_v4, %v6505_v49 }
 0xbe6   :  { %v4792_v1 = vpop.eup %4791  ;;  %4805 = vpow2.f32 %v4036_v8  ;;  %v3001_v57 = vpop.f32.mrf.mxu0 }
 0xbe7   :  { %4807 = vrcp.f32 %v3189_v5  ;;  %v3192_v11 = vadd.f32 1.0, %v4792_v1  ;;  %v4037_v12 = vmul.f32 -1.442695, %v6548_v42  ;;  %v6552_v56 = vadd.f32 %v6505_v49, %v3001_v57 }
 0xbe8   :  { %v4794_v9 = vpop.eup %4793  ;;  %4809 = vpow2.f32 %v4034_v26  ;;  %v4317_v53 = vpop.f32.mrf.mxu0 }
 0xbe9   :  { %4811 = vrcp.f32 %v3192_v11  ;;  %v3190_v0 = vadd.f32 1.0, %v4794_v9  ;;  %v4035_v32 = vmul.f32 -1.442695, %v6552_v56  ;;  %v6556_v10 = vadd.f32 %v4317_v53, %v6505_v49 }
 0xbea   :  { %v4796_v38 = vpop.eup %4795  ;;  %4813 = vpow2.f32 %v4037_v12  ;;  %v3014_v35 = vpop.f32.mrf.mxu0 }
 0xbeb   :  { %4815 = vrcp.f32 %v3190_v0  ;;  %v3195_v41 = vadd.f32 1.0, %v4796_v38  ;;  %v4040_v23 = vmul.f32 -1.442695, %v6556_v10  ;;  %v6560_v37 = vadd.f32 %v6505_v49, %v3014_v35 }
 0xbec   :  { %v4798_v22 = vpop.eup %4797  ;;  %4817 = vpow2.f32 %v4035_v32  ;;  %v4318_v51 = vpop.f32.mrf.mxu0 }
 0xbed   :  { %4819 = vrcp.f32 %v3195_v41  ;;  %v3193_v52 = vadd.f32 1.0, %v4798_v22  ;;  %v4038_v17 = vmul.f32 -1.442695, %v6560_v37  ;;  %v6564_v61 = vadd.f32 %v4318_v51, %v6505_v49 }
 0xbee   :  { %v4800_v19 = vpop.eup %4799  ;;  %4821 = vpow2.f32 %v4040_v23  ;;  %v3017_v44 = vpop.f32.mrf.mxu0 }
 0xbef   :  { %4823 = vrcp.f32 %v3193_v52  ;;  %v3196_v18 = vadd.f32 1.0, %v4800_v19  ;;  %v4041_v20 = vmul.f32 -1.442695, %v6564_v61  ;;  %v6568_v15 = vadd.f32 %v6505_v49, %v3017_v44 }
 0xbf0   :  { %v4802_v36 = vpop.eup %4801  ;;  %4825 = vpow2.f32 %v4038_v17  ;;  %v4321_v60 = vpop.f32.mrf.mxu0 }
 0xbf1   :  { %4827 = vrcp.f32 %v3196_v18  ;;  %v3194_v24 = vadd.f32 1.0, %v4802_v36  ;;  %v4039_v2 = vmul.f32 -1.442695, %v6568_v15  ;;  %v6572_v54 = vadd.f32 %v4321_v60, %v6505_v49 }
 0xbf2   :  { %v4804_v43 = vpop.eup %4803  ;;  %4829 = vpow2.f32 %v4041_v20  ;;  %v3030_v46 = vpop.f32.mrf.mxu0 }
 0xbf3   :  { %v4806_v28 = vpop.eup %4805  ;;  %v3287_v25 = vmul.f32 %v4804_v43, %v6508_v27  ;;  %4831 = vrcp.f32 %v3194_v24  ;;  %v4044_v55 = vmul.f32 -1.442695, %v6572_v54  ;;  %v6577_v40 = vadd.f32 %v6505_v49, %v3030_v46 }
 0xbf4   :  { %v4808_v16 = vpop.eup %4807  ;;  %v3199_v62 = vadd.f32 1.0, %v4806_v28  ;;  %4833 = vpow2.f32 %v4039_v2  ;;  %v4322_v58 = vpop.f32.mrf.mxu0 }
 0xbf5   :  { %v4810_v7 = vpop.eup %4809  ;;  %v3285_v63 = vmul.f32 %v4808_v16, %v6512_v33  ;;  %4835 = vpow2.f32 %v4044_v55  ;;  %v4042_v27 = vmul.f32 -1.442695, %v6577_v40  ;;  %v6587_v13 = vadd.f32 %v4322_v58, %v6505_v49 }
 0xbf6   :  { %v4812_v45 = vpop.eup %4811  ;;  %4837 = vrcp.f32 %v3199_v62  ;;  %v3197_v48 = vadd.f32 1.0, %v4810_v7  ;;  %v3033_v31 = vpop.f32.mrf.mxu0  ;;  %v3327_v34 = vmul.f32 %v6582_v29, %v3287_v25 }
 0xbf7   :  { %v4814_v8 = vpop.eup %4813  ;;  %v3288_v3 = vmul.f32 %v4812_v45, %v6516_v6  ;;  %4839 = vpow2.f32 %v4042_v27  ;;  %v4045_v4 = vmul.f32 -1.442695, %v6587_v13  ;;  %v6593_v33 = vadd.f32 %v6505_v49, %v3033_v31 }
 0xbf8   :  { %v4816_v5 = vpop.eup %4815  ;;  %4841 = vrcp.f32 %v3197_v48  ;;  %v3200_v26 = vadd.f32 1.0, %v4814_v8  ;;  %v3363_v1 = vsel %vm182_vm2, %v3327_v34, 0.0  ;;  %v4325_v57 = vpop.f32.mrf.mxu0  ;;  %v3325_v11 = vmul.f32 %v6582_v29, %v3285_v63 }
 0xbf9   :  { %v4818_v12 = vpop.eup %4817  ;;  %v3286_v9 = vmul.f32 %v4816_v5, %v6520_v50  ;;  %4843 = vpow2.f32 %v4045_v4  ;;  %v4043_v6 = vmul.f32 -1.442695, %v6593_v33  ;;  %3364 = vadd.xlane.f32.xlu1 %v3363_v1  ;;  %v6600_v53 = vadd.f32 %v4325_v57, %v6505_v49 }
 0xbfa   :  { %v4820_v0 = vpop.eup %4819  ;;  %4845 = vrcp.f32 %v3200_v26  ;;  %v3198_v32 = vadd.f32 1.0, %v4818_v12  ;;  %v3046_v38 = vpop.f32.mrf.mxu0  ;;  %v3328_v35 = vmul.f32 %v6582_v29, %v3288_v3  ;;  %v3357_v41 = vsel %vm182_vm2, %v3325_v11, 0.0 }
 0xbfb   :  { %v4822_v23 = vpop.eup %4821  ;;  %v3291_v22 = vmul.f32 %v4820_v0, %v6524_v39  ;;  %4847 = vpow2.f32 %v4043_v6  ;;  %v4048_v50 = vmul.f32 -1.442695, %v6600_v53  ;;  %v6607_v51 = vadd.f32 %v6505_v49, %v3046_v38 }
 0xbfc   :  { %v4824_v52 = vpop.eup %4823  ;;  %4849 = vrcp.f32 %v3198_v32  ;;  %v3203_v17 = vadd.f32 1.0, %v4822_v23  ;;  %v3366_v19 = vsel %vm182_vm2, %v3328_v35, 0.0  ;;  %v4326_v44 = vpop.f32.mrf.mxu0  ;;  %v3326_v18 = vmul.f32 %v6582_v29, %v3286_v9 }
 0xbfd   :  { %v4826_v20 = vpop.eup %4825  ;;  %v3289_v36 = vmul.f32 %v4824_v52, %v6528_v47  ;;  %4851 = vpow2.f32 %v4048_v50  ;;  %v4046_v39 = vmul.f32 -1.442695, %v6607_v51  ;;  %3367 = vadd.xlane.f32.xlu0 %v3366_v19  ;;  %3358 = vadd.xlane.f32.xlu1 %v3357_v41  ;;  %v6614_v60 = vadd.f32 %v4326_v44, %v6505_v49 }
 0xbfe   :  { %v4828_v24 = vpop.eup %4827  ;;  %4853 = vrcp.f32 %v3203_v17  ;;  %v3201_v2 = vadd.f32 1.0, %v4826_v20  ;;  %v3049_v43 = vpop.f32.mrf.mxu0  ;;  %v3360_v46 = vsel %vm182_vm2, %v3326_v18, 0.0  ;;  %v3331_v28 = vmul.f32 %v6582_v29, %v3291_v22 }
 0xbff   :  { %v4830_v25 = vpop.eup %4829  ;;  %v3292_v55 = vmul.f32 %v4828_v24, %v6532_v14  ;;  %4855 = vpow2.f32 %v4046_v39  ;;  %v4049_v47 = vmul.f32 -1.442695, %v6614_v60  ;;  %v6621_v16 = vadd.f32 %v6505_v49, %v3049_v43 }
 0xc00   :  { %v4832_v62 = vpop.eup %4831  ;;  %4857 = vrcp.f32 %v3201_v2  ;;  %v3204_v58 = vadd.f32 1.0, %v4830_v25  ;;  %v3375_v7 = vsel %vm182_vm2, %v3331_v28, 0.0  ;;  %v4329_v63 = vpop.f32.mrf.mxu0  ;;  %v3329_v27 = vmul.f32 %v6582_v29, %v3289_v36 }
 0xc01   :  { %v4834_v45 = vpop.eup %4833  ;;  %v3290_v48 = vmul.f32 %v4832_v62, %v6536_v59  ;;  %4859 = vpow2.f32 %v4049_v47  ;;  %v4047_v14 = vmul.f32 -1.442695, %v6621_v16  ;;  %3361 = vadd.xlane.f32.xlu0 %v3360_v46  ;;  %3376 = vadd.xlane.f32.xlu1 %v3375_v7  ;;  %v6628_v31 = vadd.f32 %v4329_v63, %v6505_v49 }
 0xc02   :  { %v4836_v34 = vpop.eup %4835  ;;  %4861 = vrcp.f32 %v3204_v58  ;;  %v3202_v8 = vadd.f32 1.0, %v4834_v45  ;;  %v3062_v3 = vpop.f32.mrf.mxu0  ;;  %v3332_v4 = vmul.f32 %v6582_v29, %v3292_v55  ;;  %v3369_v5 = vsel %vm182_vm2, %v3329_v27, 0.0 }
 0xc03   :  { %v4838_v26 = vpop.eup %4837  ;;  %v3207_v1 = vadd.f32 1.0, %v4836_v34  ;;  %4863 = vpow2.f32 %v4047_v14  ;;  %v4052_v59 = vmul.f32 -1.442695, %v6628_v31  ;;  %v6634_v57 = vadd.f32 %v6505_v49, %v3062_v3 }
 0xc04   :  { %v4840_v11 = vpop.eup %4839  ;;  %v3295_v12 = vmul.f32 %v4838_v26, %v6540_v30  ;;  %4865 = vrcp.f32 %v3202_v8  ;;  %v3378_v9 = vsel %vm182_vm2, %v3332_v4, 0.0  ;;  %v4330_v6 = vpop.f32.mrf.mxu0  ;;  %v3330_v0 = vmul.f32 %v6582_v29, %v3290_v48 }
 0xc05   :  { %v4842_v32 = vpop.eup %4841  ;;  %4867 = vrcp.f32 %v3207_v1  ;;  %v3205_v38 = vadd.f32 1.0, %v4840_v11  ;;  %v4050_v35 = vmul.f32 -1.442695, %v6634_v57  ;;  %3379 = vadd.xlane.f32.xlu0 %v3378_v9  ;;  %3370 = vadd.xlane.f32.xlu1 %v3369_v5  ;;  %v6641_v41 = vadd.f32 %v4330_v6, %v6505_v49 }
 0xc06   :  { %v4844_v23 = vpop.eup %4843  ;;  %v3293_v22 = vmul.f32 %v4842_v32, %v6544_v21  ;;  %4869 = vpow2.f32 %v4052_v59  ;;  %v3065_v30 = vpop.f32.mrf.mxu0  ;;  %v3372_v50 = vsel %vm182_vm2, %v3330_v0, 0.0  ;;  %v3335_v52 = vmul.f32 %v6582_v29, %v3295_v12 }
 0xc07   :  { %v4846_v17 = vpop.eup %4845  ;;  %4871 = vrcp.f32 %v3205_v38  ;;  %v3208_v19 = vadd.f32 1.0, %v4844_v23  ;;  %v4053_v44 = vmul.f32 -1.442695, %v6641_v41  ;;  %v6648_v18 = vadd.f32 %v6505_v49, %v3065_v30 }
 0xc08   :  { %v4848_v20 = vpop.eup %4847  ;;  %v3296_v36 = vmul.f32 %v4846_v17, %v6548_v42  ;;  %4873 = vpow2.f32 %v4050_v35  ;;  %v3387_v21 = vsel %vm182_vm2, %v3335_v52, 0.0  ;;  %v4333_v39 = vpop.f32.mrf.mxu0  ;;  %v3333_v24 = vmul.f32 %v6582_v29, %v3293_v22 }
 0xc09   :  { %v4850_v2 = vpop.eup %4849  ;;  %4875 = vrcp.f32 %v3208_v19  ;;  %v3206_v43 = vadd.f32 1.0, %v4848_v20  ;;  %v4051_v46 = vmul.f32 -1.442695, %v6648_v18  ;;  %3373 = vadd.xlane.f32.xlu0 %v3372_v50  ;;  %3388 = vadd.xlane.f32.xlu1 %v3387_v21  ;;  %v6655_v28 = vadd.f32 %v4333_v39, %v6505_v49 }
 0xc0a   :  { %v4852_v25 = vpop.eup %4851  ;;  %v3294_v55 = vmul.f32 %v4850_v2, %v6552_v56  ;;  %4877 = vpow2.f32 %v4053_v44  ;;  %v3078_v42 = vpop.f32.mrf.mxu0  ;;  %v3336_v47 = vmul.f32 %v6582_v29, %v3296_v36  ;;  %v3381_v62 = vsel %vm182_vm2, %v3333_v24, 0.0 }
 0xc0b   :  { %v4854_v58 = vpop.eup %4853  ;;  %4879 = vrcp.f32 %v3206_v43  ;;  %v3211_v7 = vadd.f32 1.0, %v4852_v25  ;;  %v4056_v63 = vmul.f32 -1.442695, %v6655_v28  ;;  %v6662_v27 = vadd.f32 %v6505_v49, %v3078_v42 }
 0xc0c   :  { %v4856_v45 = vpop.eup %4855  ;;  %v3299_v48 = vmul.f32 %v4854_v58, %v6556_v10  ;;  %4881 = vpow2.f32 %v4051_v46  ;;  %v3390_v56 = vsel %vm182_vm2, %v3336_v47, 0.0  ;;  %v4334_v14 = vpop.f32.mrf.mxu0  ;;  %v3334_v34 = vmul.f32 %v6582_v29, %v3294_v55 }
 0xc0d   :  { %v4858_v8 = vpop.eup %4857  ;;  %4883 = vrcp.f32 %v3211_v7  ;;  %v3209_v3 = vadd.f32 1.0, %v4856_v45  ;;  %v4054_v4 = vmul.f32 -1.442695, %v6662_v27  ;;  %3391 = vadd.xlane.f32.xlu0 %v3390_v56  ;;  %3382 = vadd.xlane.f32.xlu1 %v3381_v62  ;;  %v6669_v5 = vadd.f32 %v4334_v14, %v6505_v49 }
 0xc0e   :  { %v4860_v26 = vpop.eup %4859  ;;  %v3297_v1 = vmul.f32 %v4858_v8, %v6560_v37  ;;  %4885 = vpow2.f32 %v4056_v63  ;;  %v3081_v10 = vpop.f32.mrf.mxu0  ;;  %v3339_v59 = vmul.f32 %v6582_v29, %v3299_v48  ;;  %v3384_v38 = vsel %vm182_vm2, %v3334_v34, 0.0 }
 0xc0f   :  { %v4862_v11 = vpop.eup %4861  ;;  %4887 = vrcp.f32 %v3209_v3  ;;  %v3212_v12 = vadd.f32 1.0, %v4860_v26  ;;  %v4057_v9 = vmul.f32 -1.442695, %v6669_v5  ;;  %v6675_v6 = vadd.f32 %v6505_v49, %v3081_v10 }
 0xc10   :  { %v4864_v0 = vpop.eup %4863  ;;  %v3300_v32 = vmul.f32 %v4862_v11, %v6564_v61  ;;  %4889 = vpow2.f32 %v4054_v4  ;;  %v3337_v37 = vmul.f32 %v6582_v29, %v3297_v1  ;;  %v4958_v49 = vmov 0  }
 0xc11   :  { %v4866_v35 = vpop.eup %4865  ;;  %4891 = vrcp.f32 %v3212_v12  ;;  %v3210_v23 = vadd.f32 1.0, %v4864_v0  ;;  %v4055_v22 = vmul.f32 -1.442695, %v6675_v6  ;;  %3385 = vadd.xlane.f32.xlu0 %v3384_v38  ;;  %4352 = vset.pattern.permute.xlu1 %v4958_v49  ;;  %v3399_v17 = vsel %vm182_vm2, %v3339_v59, 0.0 }
 0xc12   :  { %v4868_v30 = vpop.eup %4867  ;;  %4893 = vpow2.f32 %v4057_v9  ;;  %v3393_v50 = vsel %vm182_vm2, %v3337_v37, 0.0  ;;  %4351 = vset.pattern.permute.xlu0 %v4958_v49  ;;  %v3298_v44 = vmul.f32 %v4866_v35, %v6568_v15  ;;  %v3340_v36 = vmul.f32 %v6582_v29, %v3300_v32 }
 0xc13   :  { %v4870_v52 = vpop.eup %4869  ;;  %v3303_v61 = vmul.f32 %v4868_v30, %v6572_v54  ;;  %4895 = vrcp.f32 %v3210_v23  ;;  %3394 = vadd.xlane.f32.xlu1 %v3393_v50 }
 0xc14   :  { %v4872_v19 = vpop.eup %4871  ;;  %v3215_v20 = vadd.f32 1.0, %v4870_v52  ;;  %4897 = vpow2.f32 %v4055_v22  ;;  %v3402_v47 = vsel %vm182_vm2, %v3340_v36, 0.0  ;;  %v6707_v22 = vpop.xlane.xlu1 %1823 }
 0xc15   :  { %v4874_v21 = vpop.eup %4873  ;;  %v3301_v39 = vmul.f32 %v4872_v19, %v6577_v40  ;;  %3400 = vadd.xlane.f32.xlu0 %v3399_v17  ;;  %v3343_v24 = vmul.f32 %v6582_v29, %v3303_v61  ;;  %v3338_v40 = vmul.f32 %v6582_v29, %v3298_v44  ;;  %v6715_v19 = vpop.xlane.xlu0 %1826 }
 0xc16   :  { %v4876_v2 = vpop.eup %4875  ;;  %4899 = vrcp.f32 %v3215_v20  ;;  %v3213_v54 = vadd.f32 1.0, %v4874_v21 }
 0xc17   :  { %v4878_v43 = vpop.eup %4877  ;;  %v3304_v46 = vmul.f32 %v4876_v2, %v6587_v13  ;;  %v3411_v25 = vsel %vm182_vm2, %v3343_v24, 0.0  ;;  %v3341_v15 = vmul.f32 %v6582_v29, %v3301_v39  ;;  %v3396_v8 = vsel %vm182_vm2, %v3338_v40, 0.0 }
 0xc18   :  { %v4880_v55 = vpop.eup %4879  ;;  %4901 = vrcp.f32 %v3213_v54  ;;  %v3216_v42 = vadd.f32 1.0, %v4878_v43  ;;  %3412 = vadd.xlane.f32.xlu1 %v3411_v25  ;;  %v6721_v39 = vpop.xlane.xlu1 %1775 }
 0xc19   :  { %v4882_v62 = vpop.eup %4881  ;;  %3403 = vadd.xlane.f32.xlu0 %v3402_v47  ;;  %v3405_v45 = vsel %vm182_vm2, %v3341_v15, 0.0  ;;  %v3344_v48 = vmul.f32 %v6582_v29, %v3304_v46  ;;  %v3302_v14 = vmul.f32 %v4880_v55, %v6593_v33  ;;  %v6728_v25 = vpop.xlane.xlu0 %1778 }
 0xc1a   :  { %v4884_v58 = vpop.eup %4883  ;;  %4903 = vrcp.f32 %v3216_v42  ;;  %v3214_v7 = vadd.f32 1.0, %v4882_v62 }
 0xc1b   :  { %v4886_v63 = vpop.eup %4885  ;;  %v3307_v13 = vmul.f32 %v4884_v58, %v6600_v53  ;;  %v3414_v59 = vsel %vm182_vm2, %v3344_v48, 0.0 }
 0xc1c   :  { %v4888_v56 = vpop.eup %4887  ;;  %4905 = vrcp.f32 %v3214_v7  ;;  %v3219_v34 = vadd.f32 1.0, %v4886_v63  ;;  %3406 = vadd.xlane.f32.xlu1 %v3405_v45  ;;  %v6732_v47 = vpop.xlane.xlu1 %1817 }
 0xc1d   :  { %v4890_v3 = vpop.eup %4889  ;;  %v3305_v4 = vmul.f32 %v4888_v56, %v6607_v51  ;;  %3397 = vadd.xlane.f32.xlu0 %v3396_v8  ;;  %v3347_v26 = vmul.f32 %v6582_v29, %v3307_v13  ;;  %v3342_v51 = vmul.f32 %v6582_v29, %v3302_v14  ;;  %v6741_v13 = vpop.xlane.xlu0 %1820 }
 0xc1e   :  { %v4892_v1 = vpop.eup %4891  ;;  %4907 = vrcp.f32 %v3219_v34  ;;  %v3217_v53 = vadd.f32 1.0, %v4890_v3 }
 0xc1f   :  { %v4894_v10 = vpop.eup %4893  ;;  %v3423_v11 = vsel %vm182_vm2, %v3347_v26, 0.0  ;;  %v3345_v33 = vmul.f32 %v6582_v29, %v3305_v4  ;;  %v3308_v9 = vmul.f32 %v4892_v1, %v6614_v60  ;;  %v3408_v60 = vsel %vm182_vm2, %v3342_v51, 0.0 }
 0xc20   :  { %v4896_v12 = vpop.eup %4895  ;;  %4909 = vrcp.f32 %v3217_v53  ;;  %v3220_v0 = vadd.f32 1.0, %v4894_v10  ;;  %3424 = vadd.xlane.f32.xlu1 %v3423_v11  ;;  %v6745_v48 = vpop.xlane.xlu1 %1769 }
 0xc21   :  { %v4898_v32 = vpop.eup %4897  ;;  %3415 = vadd.xlane.f32.xlu0 %v3414_v59  ;;  %v3306_v35 = vmul.f32 %v4896_v12, %v6621_v16  ;;  %v3417_v23 = vsel %vm182_vm2, %v3345_v33, 0.0  ;;  %v3348_v50 = vmul.f32 %v6582_v29, %v3308_v9 }
 0xc22   :  { %4911 = vrcp.f32 %v3220_v0  ;;  %v3218_v38 = vadd.f32 1.0, %v4898_v32 }
 0xc23   :  { %v4900_v37 = vpop.eup %4899  ;;  %v3346_v16 = vmul.f32 %v6582_v29, %v3306_v35 }
 0xc24   :  { %v3311_v30 = vmul.f32 %v4900_v37, %v6628_v31  ;;  %4913 = vrcp.f32 %v3218_v38  ;;  %3418 = vadd.xlane.f32.xlu1 %v3417_v23  ;;  %v3426_v31 = vsel %vm182_vm2, %v3348_v50, 0.0  ;;  %v6751_v34 = vpop.xlane.xlu1 %1811 }
 0xc25   :  { %v4902_v49 = vpop.eup %4901  ;;  %3409 = vadd.xlane.f32.xlu0 %v3408_v60  ;;  %v3420_v24 = vsel %vm182_vm2, %v3346_v16, 0.0 }
 0xc26   :  { %v3309_v52 = vmul.f32 %v4902_v49, %v6634_v57  ;;  %v3351_v61 = vmul.f32 %v6582_v29, %v3311_v30  ;;  %v6801_v49 = vld [vmem:[%s7276_s22 + $0x1] ss:$0 sm:$0xff] }
 0xc27   :  { %v4904_v17 = vpop.eup %4903 }
 0xc28   :  { %v3312_v44 = vmul.f32 %v4904_v17, %v6641_v41  ;;  %v3435_v20 = vsel %vm182_vm2, %v3351_v61, 0.0  ;;  %v3349_v36 = vmul.f32 %v6582_v29, %v3309_v52  ;;  %v6756_v4 = vpop.xlane.xlu1 %1763 }
 0xc29   :  { %v4906_v21 = vpop.eup %4905  ;;  %3427 = vadd.xlane.f32.xlu0 %v3426_v31  ;;  %3436 = vadd.xlane.f32.xlu1 %v3435_v20 }
 0xc2a   :  { %v3310_v2 = vmul.f32 %v4906_v21, %v6648_v18  ;;  %v3429_v41 = vsel %vm182_vm2, %v3349_v36, 0.0  ;;  %v3352_v43 = vmul.f32 %v6582_v29, %v3312_v44 }
 0xc2b   :  { %v4908_v57 = vpop.eup %4907 }
 0xc2c   :  { %v3315_v54 = vmul.f32 %v4908_v57, %v6655_v28  ;;  %v3438_v28 = vsel %vm182_vm2, %v3352_v43, 0.0  ;;  %v3350_v62 = vmul.f32 %v6582_v29, %v3310_v2  ;;  %v6760_v26 = vpop.xlane.xlu1 %1805 }
 0xc2d   :  { %v4910_v46 = vpop.eup %4909  ;;  %3421 = vadd.xlane.f32.xlu0 %v3420_v24  ;;  %3430 = vadd.xlane.f32.xlu1 %v3429_v41 }
 0xc2e   :  { %v3313_v15 = vmul.f32 %v4910_v46, %v6662_v27  ;;  %v3355_v55 = vmul.f32 %v6582_v29, %v3315_v54  ;;  %v3432_v45 = vsel %vm182_vm2, %v3350_v62, 0.0 }
 0xc2f   :  { %v4912_v42 = vpop.eup %4911 }
 0xc30   :  { %v3316_v18 = vmul.f32 %v4912_v42, %v6669_v5  ;;  %v3353_v40 = vmul.f32 %v6582_v29, %v3313_v15  ;;  %v3447_v14 = vsel %vm182_vm2, %v3355_v55, 0.0  ;;  %v6764_v53 = vpop.xlane.xlu1 %1757 }
 0xc31   :  { %v4914_v58 = vpop.eup %4913  ;;  %3439 = vadd.xlane.f32.xlu0 %v3438_v28 }
 0xc32   :  { %v3314_v7 = vmul.f32 %v4914_v58, %v6675_v6  ;;  %v3441_v63 = vsel %vm182_vm2, %v3353_v40, 0.0  ;;  %v3356_v27 = vmul.f32 %v6582_v29, %v3316_v18  ;;  %v6749_v6 = vpop.xlane.xlu0 %1772 }
 0xc33   :  { %3442 = vadd.xlane.f32.xlu1 %v3441_v63 }
 0xc34   :  { %v3354_v5 = vmul.f32 %v6582_v29, %v3314_v7  ;;  %v3450_v56 = vsel %vm182_vm2, %v3356_v27, 0.0  ;;  %v6768_v59 = vpop.xlane.xlu1 %1799 }
 0xc35   :  { %3433 = vadd.xlane.f32.xlu0 %v3432_v45 }
 0xc36   :  { %v3444_v8 = vsel %vm182_vm2, %v3354_v5, 0.0  ;;  %v6754_v3 = vpop.xlane.xlu0 %1814 }
 0xc37   :  { %3451 = vadd.xlane.f32.xlu1 %v3450_v56 }
 0xc38   :  { %v6772_v33 = vpop.xlane.xlu1 %1751 }
 0xc39   :  { %3448 = vadd.xlane.f32.xlu0 %v3447_v14 }
 0xc3a   :  { %v6758_v29 = vpop.xlane.xlu0 %1766 }
 0xc3c   :  { %v6776_v9 = vpop.xlane.xlu1 %1793 }
 0xc3d   :  { %3445 = vadd.xlane.f32.xlu0 %v3444_v8 }
 0xc3e   :  { %v6762_v1 = vpop.xlane.xlu0 %1808 }
 0xc40   :  { %v6780_v51 = vpop.xlane.xlu1 %1745 }
 0xc42   :  { %v6766_v10 = vpop.xlane.xlu0 %1760 }
 0xc44   :  { %v6784_v38 = vpop.xlane.xlu1 %1787 }
 0xc46   :  { %v6770_v11 = vpop.xlane.xlu0 %1802 }
 0xc48   :  { %v6788_v35 = vpop.xlane.xlu1 %1739 }
 0xc4a   :  { %v6774_v12 = vpop.xlane.xlu0 %1754 }
 0xc4c   :  { %v6792_v30 = vpop.xlane.xlu1 %1781 }
 0xc4e   :  { %v6778_v0 = vpop.xlane.xlu0 %1796 }
 0xc50   :  { %v6796_v50 = vpop.xlane.xlu1 %1733 }
 0xc52   :  { %v6782_v32 = vpop.xlane.xlu0 %1748 }
 0xc56   :  { %v6786_v37 = vpop.xlane.xlu0 %1790 }
 0xc5a   :  { %v6790_v23 = vpop.xlane.xlu0 %1742 }
 0xc5e   :  { %v6794_v60 = vpop.xlane.xlu0 %1784 }
 0xc62   :  { %v6803_v52 = vpop.xlane.xlu0 %1736 }
 0xc82   :  { %v3365_v61 = vpop.xlane.xlu1 %3364 }
 0xc83   :  { %v3463_v17 = vadd.f32 %v6801_v49, %v3365_v61 }
 0xc85   :  { %3505 = vperm.xlu0 %4351, %v3463_v17  }
 0xc86   :  { %v3368_v16 = vpop.xlane.xlu0 %3367  ;;  %v3359_v44 = vpop.xlane.xlu1 %3358 }
 0xc87   :  { %v3464_v31 = vadd.f32 %v6801_v49, %v3368_v16  ;;  %v3461_v20 = vadd.f32 %v6801_v49, %v3359_v44 }
 0xc89   :  { %3495 = vperm.xlu0 %4351, %v3461_v20   ;;  %3510 = vperm.xlu1 %4352, %v3464_v31  }
 0xc8a   :  { %v3362_v36 = vpop.xlane.xlu0 %3361  ;;  %v3377_v21 = vpop.xlane.xlu1 %3376 }
 0xc8b   :  { %v3462_v57 = vadd.f32 %v6801_v49, %v3362_v36  ;;  %v3467_v24 = vadd.f32 %v6801_v49, %v3377_v21 }
 0xc8d   :  { %3525 = vperm.xlu0 %4351, %v3467_v24   ;;  %3500 = vperm.xlu1 %4352, %v3462_v57  }
 0xc8e   :  { %v3380_v2 = vpop.xlane.xlu0 %3379  ;;  %v3371_v54 = vpop.xlane.xlu1 %3370 }
 0xc8f   :  { %v3468_v41 = vadd.f32 %v6801_v49, %v3380_v2  ;;  %v3465_v43 = vadd.f32 %v6801_v49, %v3371_v54 }
 0xc91   :  { %3515 = vperm.xlu0 %4351, %v3465_v43   ;;  %3530 = vperm.xlu1 %4352, %v3468_v41  }
 0xc92   :  { %v3374_v46 = vpop.xlane.xlu0 %3373  ;;  %v3389_v15 = vpop.xlane.xlu1 %3388 }
 0xc93   :  { %v3466_v55 = vadd.f32 %v6801_v49, %v3374_v46  ;;  %v3471_v42 = vadd.f32 %v6801_v49, %v3389_v15 }
 0xc95   :  { %3545 = vperm.xlu0 %4351, %v3471_v42   ;;  %3520 = vperm.xlu1 %4352, %v3466_v55  }
 0xc96   :  { %v3392_v18 = vpop.xlane.xlu0 %3391  ;;  %v3383_v28 = vpop.xlane.xlu1 %3382 }
 0xc97   :  { %v3472_v40 = vadd.f32 %v6801_v49, %v3392_v18  ;;  %v3469_v62 = vadd.f32 %v6801_v49, %v3383_v28 }
 0xc99   :  { %3535 = vperm.xlu0 %4351, %v3469_v62   ;;  %3550 = vperm.xlu1 %4352, %v3472_v40  }
 0xc9a   :  { %v3386_v58 = vpop.xlane.xlu0 %3385 }
 0xc9b   :  { %v3470_v7 = vadd.f32 %v6801_v49, %v3386_v58 }
 0xc9c   :  { %v3395_v63 = vpop.xlane.xlu1 %3394 }
 0xc9d   :  { %3540 = vperm.xlu1 %4352, %v3470_v7   ;;  %v3473_v8 = vadd.f32 %v6801_v49, %v3395_v63 }
 0xc9e   :  { %v3401_v27 = vpop.xlane.xlu0 %3400 }
 0xc9f   :  { %v3475_v45 = vadd.f32 %v6801_v49, %v3401_v27 }
 0xca1   :  { %3565 = vperm.xlu1 %4352, %v3475_v45   ;;  %v3413_v5 = vpop.xlane.xlu1 %3412 }
 0xca2   :  { %v3404_v56 = vpop.xlane.xlu0 %3403  ;;  %v3479_v14 = vadd.f32 %v6801_v49, %v3413_v5  ;;  %v6836_v5 = vld [vmem:[%s7276_s22] ss:$0 sm:$0xff] }
 0xca3   :  { %v3476_v44 = vadd.f32 %v6801_v49, %v3404_v56  ;;  %v1865_v56 = vadd.f32 %v6836_v5, %v6707_v22  ;;  %v1847_v22 = vadd.f32 %v6836_v5, %v6745_v48  ;;  %v1850_v48 = vadd.f32 %v6836_v5, %v6728_v25 }
 0xca4   :  { %3585 = vperm.xlu0 %4351, %v3479_v14   ;;  %v1857_v25 = vadd.f32 %v6836_v5, %v6768_v59  ;;  %v1860_v59 = vadd.f32 %v6836_v5, %v6762_v1  ;;  %v1837_v1 = vadd.f32 %v6836_v5, %v6788_v35  ;;  %v1840_v35 = vadd.f32 %v6836_v5, %v6782_v32 }
 0xca5   :  { %3555 = vperm.xlu1 %4352, %v3473_v8   ;;  %v3407_v61 = vpop.xlane.xlu1 %3406 }
 0xca6   :  { %v3398_v17 = vpop.xlane.xlu0 %3397  ;;  %v3477_v16 = vadd.f32 %v6801_v49, %v3407_v61  ;;  %v1849_v61 = vadd.f32 %v6836_v5, %v6721_v39 }
 0xca7   :  { %v3474_v21 = vadd.f32 %v6801_v49, %v3398_v17 }
 0xca8   :  { %3575 = vperm.xlu0 %4351, %v3477_v16   ;;  %v1863_v16 = vadd.f32 %v6836_v5, %v6732_v47  ;;  %v1845_v47 = vadd.f32 %v6836_v5, %v6756_v4  ;;  %v1848_v4 = vadd.f32 %v6836_v5, %v6749_v6  ;;  %v1855_v6 = vadd.f32 %v6836_v5, %v6776_v9 }
 0xca9   :  { %3570 = vperm.xlu1 %4352, %v3476_v44   ;;  %v3425_v31 = vpop.xlane.xlu1 %3424  ;;  %v1858_v9 = vadd.f32 %v6836_v5, %v6770_v11  ;;  %v1835_v11 = vadd.f32 %v6836_v5, %v6796_v50 }
 0xcaa   :  { %v3416_v20 = vpop.xlane.xlu0 %3415  ;;  %v3483_v36 = vadd.f32 %v6801_v49, %v3425_v31  ;;  %v1866_v31 = vadd.f32 %v6836_v5, %v6715_v19  ;;  %v1859_v19 = vadd.f32 %v6836_v5, %v6760_v26  ;;  %v1862_v26 = vadd.f32 %v6836_v5, %v6754_v3 }
 0xcab   :  { %v3480_v54 = vadd.f32 %v6801_v49, %v3416_v20  ;;  %v1861_v20 = vadd.f32 %v6836_v5, %v6751_v34  ;;  %v1843_v34 = vadd.f32 %v6836_v5, %v6764_v53  ;;  %v1846_v53 = vadd.f32 %v6836_v5, %v6758_v29 }
 0xcac   :  { %3605 = vperm.xlu0 %4351, %v3483_v36   ;;  %v1839_v3 = vadd.f32 %v6836_v5, %v6780_v51  ;;  %v1853_v29 = vadd.f32 %v6836_v5, %v6784_v38  ;;  %v1842_v51 = vadd.f32 %v6836_v5, %v6774_v12  ;;  %v1856_v38 = vadd.f32 %v6836_v5, %v6778_v0  ;;  %v6901_v12 = vld [vmem:[%s7264_s2 + $0x10] sm:$0xff]  ;;  %v6909_v0 = vld [vmem:[%s7264_s2 + $0x18] sm:$0xff] }
 0xcad   :  { %3560 = vperm.xlu1 %4352, %v3474_v21   ;;  %v3419_v57 = vpop.xlane.xlu1 %3418  ;;  %v1864_v21 = vadd.f32 %v6836_v5, %v6741_v13  ;;  %v1841_v13 = vadd.f32 %v6836_v5, %v6772_v33  ;;  %v1844_v33 = vadd.f32 %v6836_v5, %v6766_v10  ;;  %v1851_v10 = vadd.f32 %v6836_v5, %v6792_v30 }
 0xcae   :  { %v3410_v24 = vpop.xlane.xlu0 %3409  ;;  %v3481_v2 = vadd.f32 %v6801_v49, %v3419_v57 }
 0xcaf   :  { %v3478_v46 = vadd.f32 %v6801_v49, %v3410_v24  ;;  %v1854_v24 = vadd.f32 %v6836_v5, %v6786_v37  ;;  %v1838_v37 = vadd.f32 %v6836_v5, %v6790_v23 }
 0xcb0   :  { %3595 = vperm.xlu0 %4351, %v3481_v2  }
 0xcb1   :  { %3590 = vperm.xlu1 %4352, %v3480_v54  }
 0xcb2   :  { %v3428_v41 = vpop.xlane.xlu0 %3427  ;;  %v3437_v43 = vpop.xlane.xlu1 %3436 }
 0xcb3   :  { %v3484_v42 = vadd.f32 %v6801_v49, %v3428_v41  ;;  %v3487_v58 = vadd.f32 %v6801_v49, %v3437_v43  ;;  %v6921_v41 = vld [vmem:[%s7264_s2] sm:$0xff] }
 0xcb5   :  { %3580 = vperm.xlu1 %4352, %v3478_v46   ;;  %v6929_v46 = vld [vmem:[%s7264_s2 + $0x8] sm:$0xff] }
 0xcb6   :  { %v3422_v15 = vpop.xlane.xlu0 %3421  ;;  %v3431_v55 = vpop.xlane.xlu1 %3430 }
 0xcb7   :  { %v3485_v18 = vadd.f32 %v6801_v49, %v3431_v55  ;;  %v3482_v28 = vadd.f32 %v6801_v49, %v3422_v15  ;;  %v7173_v55 = vld [vmem:[%s7264_s2 + $0x80] sm:$0xff] }
 0xcb9   :  { %3615 = vperm.xlu0 %4351, %v3485_v18   ;;  %3610 = vperm.xlu1 %4352, %v3484_v42  }
 0xcba   :  { %v3440_v40 = vpop.xlane.xlu0 %3439 }
 0xcbb   :  { %v3488_v45 = vadd.f32 %v6801_v49, %v3440_v40 }
 0xcbc   :  { %v3443_v62 = vpop.xlane.xlu1 %3442 }
 0xcbd   :  { %3600 = vperm.xlu1 %4352, %v3482_v28   ;;  %v3489_v44 = vadd.f32 %v6801_v49, %v3443_v62  ;;  %v1852_v28 = vadd.f32 %v6836_v5, %v6794_v60  ;;  %v1836_v62 = vadd.f32 %v6836_v5, %v6803_v52 }
 0xcbe   :  { %v3434_v27 = vpop.xlane.xlu0 %3433 }
 0xcbf   :  { %v3486_v14 = vadd.f32 %v6801_v49, %v3434_v27 }
 0xcc0   :  { %v3452_v7 = vpop.xlane.xlu1 %3451 }
 0xcc1   :  { %v3492_v63 = vadd.f32 %v6801_v49, %v3452_v7  ;;  %3625 = vperm.xlu1 %4352, %v3487_v58  }
 0xcc2   :  { %v3449_v8 = vpop.xlane.xlu0 %3448 }
 0xcc3   :  { %3650 = vperm.xlu0 %4351, %v3492_v63   ;;  %v3491_v17 = vadd.f32 %v6801_v49, %v3449_v8 }
 0xcc5   :  { %3630 = vperm.xlu1 %4352, %v3488_v45  }
 0xcc6   :  { %v3446_v39 = vpop.xlane.xlu0 %3445 }
 0xcc7   :  { %2019 = vperm.xlu0 %4351, %v1865_v56   ;;  %v3490_v36 = vadd.f32 %v6801_v49, %v3446_v39 }
 0xcc9   :  { %3620 = vperm.xlu1 %4352, %v3486_v14  }
 0xccb   :  { %1939 = vperm.xlu0 %4351, %v1849_v61  }
 0xccd   :  { %3645 = vperm.xlu1 %4352, %v3491_v17  }
 0xccf   :  { %2009 = vperm.xlu0 %4351, %v1863_v16  }
 0xcd1   :  { %3635 = vperm.xlu1 %4352, %v3489_v44  }
 0xcd3   :  { %1929 = vperm.xlu0 %4351, %v1847_v22  }
 0xcd5   :  { %2024 = vperm.xlu1 %4352, %v1866_v31  }
 0xcd7   :  { %1999 = vperm.xlu0 %4351, %v1861_v20  }
 0xcd9   :  { %3640 = vperm.xlu1 %4352, %v3490_v36  }
 0xcdb   :  { %1919 = vperm.xlu0 %4351, %v1845_v47  }
 0xcdd   :  { %1944 = vperm.xlu1 %4352, %v1850_v48  }
 0xcdf   :  { %1989 = vperm.xlu0 %4351, %v1859_v19  }
 0xce1   :  { %2014 = vperm.xlu1 %4352, %v1864_v21   ;;  %v6979_v21 = vld [vmem:[%s7264_s2 + $0x78] sm:$0xff] }
 0xce3   :  { %1909 = vperm.xlu0 %4351, %v1843_v34  }
 0xce5   :  { %1934 = vperm.xlu1 %4352, %v1848_v4  }
 0xce7   :  { %1979 = vperm.xlu0 %4351, %v1857_v25   ;;  %v6985_v25 = vld [vmem:[%s7264_s2 + $0xf8] sm:$0xff] }
 0xce9   :  { %2004 = vperm.xlu1 %4352, %v1862_v26  }
 0xceb   :  { %1899 = vperm.xlu0 %4351, %v1841_v13   ;;  %v6991_v13 = vld [vmem:[%s7264_s2 + $0xf0] sm:$0xff] }
 0xced   :  { %1924 = vperm.xlu1 %4352, %v1846_v53  }
 0xcef   :  { %1969 = vperm.xlu0 %4351, %v1855_v6   ;;  %v6997_v6 = vld [vmem:[%s7264_s2 + $0x70] sm:$0xff] }
 0xcf1   :  { %1994 = vperm.xlu1 %4352, %v1860_v59  }
 0xcf3   :  { %1889 = vperm.xlu0 %4351, %v1839_v3  }
 0xcf5   :  { %1914 = vperm.xlu1 %4352, %v1844_v33  }
 0xcf7   :  { %1959 = vperm.xlu0 %4351, %v1853_v29  }
 0xcf9   :  { %1984 = vperm.xlu1 %4352, %v1858_v9  }
 0xcfb   :  { %1879 = vperm.xlu0 %4351, %v1837_v1  }
 0xcfd   :  { %1904 = vperm.xlu1 %4352, %v1842_v51  }
 0xcff   :  { %1949 = vperm.xlu0 %4351, %v1851_v10  }
 0xd00   :  { %v3506_v49 = vpop.permute.xlu0 %3505 }
 0xd01   :  { %1974 = vperm.xlu1 %4352, %v1856_v38   ;;  %v6904_v30 = vmul.f32 %v6901_v12, %v3506_v49  ;;  %v7011_v38 = vld [vmem:[%s7264_s2 + $0x68] sm:$0xff] }
 0xd03   :  { %1869 = vperm.xlu0 %4351, %v1835_v11  }
 0xd04   :  { %v3511_v57 = vpop.permute.xlu1 %3510  ;;  %v3496_v32 = vpop.permute.xlu0 %3495 }
 0xd05   :  { %v6912_v50 = vmul.f32 %v6909_v0, %v3511_v57  ;;  %1894 = vperm.xlu1 %4352, %v1840_v35   ;;  %v6924_v43 = vmul.f32 %v6921_v41, %v3496_v32  ;;  %v7017_v35 = vld [vmem:[%s7264_s2 + $0xd8] sm:$0xff]  ;;  %v7023_v32 = vld [vmem:[%s7264_s2 + $0xe0] sm:$0xff] }
 0xd07   :  { %v3686_v2 = vpack.c.bf16 %v6912_v50, %v6904_v30 }
 0xd08   :  { %v3501_v54 = vpop.permute.xlu1 %3500  ;;  %v6940_v18 = vpop.permute.xlu0 %3525 }
 0xd09   :  { %v6932_v15 = vmul.f32 %v6929_v46, %v3501_v54  ;;  %1964 = vperm.xlu1 %4352, %v1854_v24   ;;  %v7029_v54 = vld [vmem:[%s7264_s2 + $0xe8] sm:$0xff] }
 0xd0c   :  { %v6938_v42 = vpop.permute.xlu1 %3530  ;;  %v6948_v58 = vpop.permute.xlu0 %3515 }
 0xd0d   :  { %1884 = vperm.xlu1 %4352, %v1838_v37  }
 0xd10   :  { %v6944_v40 = vpop.permute.xlu1 %3520  ;;  %v6952_v63 = vpop.permute.xlu0 %3545 }
 0xd11   :  { %1954 = vperm.xlu1 %4352, %v1852_v28   ;;  %v7035_v28 = vld [vmem:[%s7264_s2 + $0x60] sm:$0xff] }
 0xd14   :  { %v3551_v23 = vpop.permute.xlu1 %3550  ;;  %v6954_v45 = vpop.permute.xlu0 %3535 }
 0xd15   :  { %1874 = vperm.xlu1 %4352, %v1836_v62  }
 0xd18   :  { %v6950_v7 = vpop.permute.xlu1 %3540 }
 0xd1c   :  { %v3566_v27 = vpop.permute.xlu1 %3565 }
 0xd1d   :  { %v3667_v59 = vmul.f32 %v6997_v6, %v3566_v27 }
 0xd1f   :  { %v6956_v14 = vpop.permute.xlu0 %3585 }
 0xd20   :  { %v3556_v56 = vpop.permute.xlu1 %3555 }
 0xd21   :  { %v3665_v62 = vmul.f32 %v7035_v28, %v3556_v56 }
 0xd23   :  { %v6958_v61 = vpop.permute.xlu0 %3575 }
 0xd24   :  { %v3571_v60 = vpop.permute.xlu1 %3570 }
 0xd25   :  { %v3668_v34 = vmul.f32 %v6979_v21, %v3571_v60  ;;  %v7043_v60 = vld [vmem:[%s7264_s2 + $0xd0] sm:$0xff] }
 0xd27   :  { %v6962_v52 = vpop.permute.xlu0 %3605  ;;  %v3692_v29 = vpack.c.bf16 %v3668_v34, %v3667_v59 }
 0xd28   :  { %v3561_v8 = vpop.permute.xlu1 %3560 }
 0xd29   :  { %v3666_v49 = vmul.f32 %v7011_v38, %v3561_v8 }
 0xd2b   :  { %v6968_v44 = vpop.permute.xlu0 %3595 }
 0xd2c   :  { %v6960_v17 = vpop.permute.xlu1 %3590 }
 0xd30   :  { %v6964_v5 = vpop.permute.xlu1 %3580 }
 0xd34   :  { %v6966_v16 = vpop.permute.xlu1 %3610  ;;  %v3616_v31 = vpop.permute.xlu0 %3615 }
 0xd38   :  { %v6970_v22 = vpop.permute.xlu1 %3600 }
 0xd3c   :  { %v3626_v39 = vpop.permute.xlu1 %3625 }
 0xd3d   :  { %v3679_v8 = vmul.f32 %v7043_v60, %v3626_v39  ;;  %v7063_v39 = vld [vmem:[%s7264_s2 + $0x50] sm:$0xff] }
 0xd3e   :  { %v3651_v20 = vpop.permute.xlu0 %3650 }
 0xd3f   :  { %v3684_v26 = vmul.f32 %v6985_v25, %v3651_v20 }
 0xd40   :  { %v3631_v36 = vpop.permute.xlu1 %3630 }
 0xd41   :  { %v3680_v57 = vmul.f32 %v7017_v35, %v3631_v36  ;;  %v7049_v36 = vld [vmem:[%s7264_s2 + $0x58] sm:$0xff] }
 0xd42   :  { %v6972_v47 = vpop.permute.xlu0 %2019  ;;  %v3664_v34 = vmul.f32 %v7049_v36, %v3551_v23  ;;  %v3663_v23 = vmul.f32 %v7063_v39, %v6952_v63 }
 0xd43   :  { %v3698_v56 = vpack.c.bf16 %v3680_v57, %v3679_v8  ;;  %v7085_v57 = vld [vmem:[%s7264_s2 + $0xb8] sm:$0xff] }
 0xd44   :  { %v3621_v48 = vpop.permute.xlu1 %3620 }
 0xd46   :  { %v6974_v19 = vpop.permute.xlu0 %1939 }
 0xd48   :  { %v3646_v4 = vpop.permute.xlu1 %3645 }
 0xd49   :  { %v3683_v53 = vmul.f32 %v6991_v13, %v3646_v4  ;;  %v3691_v4 = vpack.c.bf16 %v3666_v49, %v3665_v62  ;;  %v7078_v49 = vld [vmem:[%s7264_s2 + $0x48] sm:$0xff] }
 0xd4a   :  { %v7000_v3 = vpop.permute.xlu0 %2009  ;;  %v3662_v63 = vmul.f32 %v7078_v49, %v6950_v7  ;;  %v7101_v7 = vld [vmem:[%s7264_s2 + $0xb0] sm:$0xff] }
 0xd4b   :  { %v3700_v33 = vpack.c.bf16 %v3684_v26, %v3683_v53  ;;  %v7057_v53 = vld [vmem:[%s7264_s2 + $0xc8] sm:$0xff]  ;;  %v2055_v30 = vmul.f32 %v7023_v32, %v7000_v3 }
 0xd4c   :  { %v3636_v9 = vpop.permute.xlu1 %3635  ;;  %v3678_v59 = vmul.f32 %v7057_v53, %v3621_v48  ;;  %v3690_v48 = vpack.c.bf16 %v3664_v34, %v3663_v23  ;;  %v7122_v23 = vld [vmem:[%s7264_s2 + $0x30] sm:$0xff] }
 0xd4d   :  { %4149 = vmatprep.subr.bf16.mxu1 %v3700_v33  ;;  %v3681_v24 = vmul.f32 %v7023_v32, %v3636_v9 }
 0xd4e   :  { %v7002_v1 = vpop.permute.xlu0 %1929  ;;  %4150 = vmatpush3.bf16.msra.mxu1 %v3692_v29  ;;  %v7072_v29 = vld [vmem:[%s7264_s2 + $0xc0] sm:$0xff] }
 0xd4f   :  { %v3677_v9 = vmul.f32 %v7072_v29, %v3616_v31 }
 0xd50   :  { %v7004_v51 = vpop.permute.xlu1 %2024 }
 0xd51   :  { %v3697_v31 = vpack.c.bf16 %v3678_v59, %v3677_v9  ;;  %v7115_v59 = vld [vmem:[%s7264_s2 + $0xa8] sm:$0xff]  ;;  %v3659_v9 = vmul.f32 %v7122_v23, %v6940_v18 }
 0xd52   :  { %v7006_v10 = vpop.permute.xlu0 %1999 }
 0xd54   :  { %v3641_v11 = vpop.permute.xlu1 %3640 }
 0xd55   :  { %v3682_v37 = vmul.f32 %v7029_v54, %v3641_v11 }
 0xd56   :  { %v7038_v27 = vpop.permute.xlu0 %1919 }
 0xd57   :  { %v3699_v20 = vpack.c.bf16 %v3682_v37, %v3681_v24  ;;  %v3676_v24 = vmul.f32 %v7085_v57, %v6966_v16  ;;  %v7092_v37 = vld [vmem:[%s7264_s2 + $0x40] sm:$0xff]  ;;  %v3675_v16 = vmul.f32 %v7101_v7, %v6962_v52  ;;  %v3674_v52 = vmul.f32 %v7115_v59, %v6970_v22  ;;  %v7136_v22 = vld [vmem:[%s7264_s2 + $0x28] sm:$0xff] }
 0xd58   :  { %v7052_v26 = vpop.permute.xlu1 %1944  ;;  %v3661_v62 = vmul.f32 %v7092_v37, %v6954_v45 }
 0xd59   :  { %4151 = vmatprep.subr.bf16.mxu1 %v3699_v20  ;;  %v7108_v20 = vld [vmem:[%s7264_s2 + $0x38] sm:$0xff] }
 0xd5a   :  { %v7067_v33 = vpop.permute.xlu0 %1989  ;;  %4152 = vmatpush3.bf16.msra.mxu1 %v3691_v4  ;;  %v3660_v45 = vmul.f32 %v7108_v20, %v6938_v42  ;;  %v3689_v34 = vpack.c.bf16 %v3662_v63, %v3661_v62  ;;  %v7129_v42 = vld [vmem:[%s7264_s2 + $0xa0] sm:$0xff]  ;;  %v7145_v62 = vld [vmem:[%s7264_s2 + $0x98] sm:$0xff] }
 0xd5b   :  { %4153 = vmatprep.subr.bf16.mxu1 %v3698_v56  ;;  %v3696_v56 = vpack.c.bf16 %v3676_v24, %v3675_v16  ;;  %v3658_v24 = vmul.f32 %v7136_v22, %v6944_v40 }
 0xd5c   :  { %v2015_v11 = vpop.permute.xlu1 %2014  ;;  %v3688_v63 = vpack.c.bf16 %v3660_v45, %v3659_v9  ;;  %v7152_v45 = vld [vmem:[%s7264_s2 + $0x20] sm:$0xff] }
 0xd5d   :  { %v3657_v40 = vmul.f32 %v7152_v45, %v6948_v58 }
 0xd5e   :  { %v7096_v8 = vpop.permute.xlu0 %1909  ;;  %4154 = vmatpush3.bf16.msra.mxu1 %v3690_v48  ;;  %v3673_v48 = vmul.f32 %v7129_v42, %v6968_v44  ;;  %v3672_v44 = vmul.f32 %v7145_v62, %v6960_v17 }
 0xd5f   :  { %4155 = vmatprep.subr.bf16.mxu1 %v3697_v31  ;;  %v3687_v17 = vpack.c.bf16 %v3658_v24, %v3657_v40  ;;  %v2042_v40 = vmul.f32 %v6979_v21, %v7052_v26 }
 0xd60   :  { %v1935_v4 = vpop.permute.xlu1 %1934  ;;  %v3695_v16 = vpack.c.bf16 %v3674_v52, %v3673_v48  ;;  %v7166_v48 = vld [vmem:[%s7264_s2 + $0x88] sm:$0xff] }
 0xd61   :  { %v3670_v58 = vmul.f32 %v7166_v48, %v6964_v5  ;;  %v2057_v5 = vmul.f32 %v6991_v13, %v6972_v47 }
 0xd62   :  { %4156 = vmatpush3.bf16.msra.mxu1 %v3689_v34  ;;  %v7140_v18 = vpop.permute.xlu0 %1979  ;;  %v7159_v34 = vld [vmem:[%s7264_s2 + $0x90] sm:$0xff] }
 0xd63   :  { %4157 = vmatprep.subr.bf16.mxu1 %v3696_v56  ;;  %v3671_v56 = vmul.f32 %v7159_v34, %v6956_v14  ;;  %v3669_v14 = vmul.f32 %v7173_v55, %v6958_v61 }
 0xd64   :  { %v2005_v31 = vpop.permute.xlu1 %2004 }
 0xd65   :  { %v3694_v9 = vpack.c.bf16 %v3672_v44, %v3671_v56  ;;  %v3693_v44 = vpack.c.bf16 %v3670_v58, %v3669_v14  ;;  %v2041_v58 = vmul.f32 %v6997_v6, %v6974_v19  ;;  %v2054_v13 = vmul.f32 %v7017_v35, %v2005_v31  ;;  %v4952_v19 = vld [vmem:[%s7270_s3 + $0x4] ss:$8 sps:$4 sm:$0xff]  }
 0xd66   :  { %4158 = vmatpush3.bf16.msra.mxu1 %v3688_v63  ;;  %v1900_v63 = vpop.permute.xlu0 %1899  ;;  %v2053_v6 = vmul.f32 %v7043_v60, %v7006_v10  ;;  %v2035_v31 = vmul.f32 %v7092_v37, %v7096_v8 }
 0xd67   :  { %4159 = vmatprep.subr.bf16.mxu1 %v3695_v16  ;;  %v2058_v16 = vmul.f32 %v6985_v25, %v7004_v51  ;;  %v7404_v25 = vpack.c.bf16 %v6932_v15, %v6924_v43  ;;  %v2066_v50 = vpack.c.bf16 %v2042_v40, %v2041_v58  ;;  %v7199_v51 = vld [vmem:[%s7270_s3] ss:$8 sps:$4 sm:$0xff]   ;;  %v2039_v43 = vmul.f32 %v7035_v28, %v7002_v1 }
 0xd68   :  { %v1925_v52 = vpop.permute.xlu1 %1924  ;;  %v2072_v32 = vpack.c.bf16 %v2054_v13, %v2053_v6  ;;  %v2037_v1 = vmul.f32 %v7063_v39, %v7038_v27  ;;  %v2051_v28 = vmul.f32 %v7072_v29, %v7067_v33  ;;  %v2049_v27 = vmul.f32 %v7101_v7, %v7140_v18 }
 0xd69   :  { %v2074_v61 = vpack.c.bf16 %v2058_v16, %v2057_v5 }
 0xd6a   :  { %4160 = vmatpush3.bf16.msra.mxu1 %v3687_v17  ;;  %v1970_v56 = vpop.permute.xlu0 %1969 }
 0xd6b   :  { %4161 = vmatprep.subr.bf16.mxu1 %v3694_v9  ;;  %v2056_v9 = vmul.f32 %v7029_v54, %v2015_v11 }
 0xd6c   :  { %v1995_v24 = vpop.permute.xlu1 %1994 }
 0xd6d   :  { %v2073_v21 = vpack.c.bf16 %v2056_v9, %v2055_v30  ;;  %v2052_v54 = vmul.f32 %v7057_v53, %v1995_v24 }
 0xd6e   :  { %4162 = vmatpush3.bf16.msra.mxu1 %v3686_v2  ;;  %v2040_v2 = vmul.f32 %v7011_v38, %v1935_v4  ;;  %v1890_v15 = vpop.permute.xlu0 %1889  ;;  %v2038_v38 = vmul.f32 %v7049_v36, %v1925_v52  ;;  %v2033_v52 = vmul.f32 %v7122_v23, %v1900_v63 }
 0xd6f   :  { %4163 = vmatprep.subr.bf16.mxu1 %v3693_v44  ;;  %v2071_v4 = vpack.c.bf16 %v2052_v54, %v2051_v28 }
 0xd70   :  { %v1915_v17 = vpop.permute.xlu1 %1914  ;;  %v2065_v3 = vpack.c.bf16 %v2040_v2, %v2039_v43  ;;  %v2064_v26 = vpack.c.bf16 %v2038_v38, %v2037_v1 }
 0xd71   :  { %v2036_v11 = vmul.f32 %v7078_v49, %v1915_v17 }
 0xd72   :  { %4164 = vmatpush3.bf16.msra.mxu1 %v7404_v25  ;;  %v1960_v10 = vpop.permute.xlu0 %1959 }
 0xd73   :  { %4171 = vmatprep.subr.bf16.mxu1 %v2074_v61  ;;  %v2063_v53 = vpack.c.bf16 %v2036_v11, %v2035_v31  ;;  %v2045_v44 = vmul.f32 %v7159_v34, %v1960_v10 }
 0xd74   :  { %v1985_v47 = vpop.permute.xlu1 %1984 }
 0xd75   :  { %3734 = vmatmul.mubr.bf16.vlgmr.msra.gmra.mxu1 %v7199_v51  ;;  %v2050_v36 = vmul.f32 %v7085_v57, %v1985_v47  ;;  %v2047_v57 = vmul.f32 %v7129_v42, %v1970_v56 }
 0xd76   :  { %4172 = vmatpush3.bf16.msra.mxu1 %v2066_v50  ;;  %3774 = vmatprep.mubr.bf16.mxu1 %v4952_v19  ;;  %v1880_v14 = vpop.permute.xlu0 %1879 }
 0xd77   :  { %4173 = vmatprep.subr.bf16.mxu1 %v2073_v21  ;;  %v2070_v29 = vpack.c.bf16 %v2050_v36, %v2049_v27  ;;  %v2029_v16 = vmul.f32 %v6901_v12, %v1880_v14 }
 0xd78   :  { %v1905_v35 = vpop.permute.xlu1 %1904 }
 0xd79   :  { %v2034_v39 = vmul.f32 %v7108_v20, %v1905_v35  ;;  %v2031_v20 = vmul.f32 %v7152_v45, %v1890_v15 }
 0xd7a   :  { %4174 = vmatpush3.bf16.msra.mxu1 %v2065_v3 }
 0xd7b   :  { %4175 = vmatprep.subr.bf16.mxu1 %v2072_v32  ;;  %v2062_v37 = vpack.c.bf16 %v2034_v39, %v2033_v52 }
 0xd7c   :  { %v1975_v60 = vpop.permute.xlu1 %1974 }
 0xd7d   :  { %v2048_v49 = vmul.f32 %v7115_v59, %v1975_v60  ;;  %v1950_v59 = vpop.permute.xlu0 %1949 }
 0xd7e   :  { %4176 = vmatpush3.bf16.msra.mxu1 %v2064_v26 }
 0xd7f   :  { %4177 = vmatprep.subr.bf16.mxu1 %v2071_v4  ;;  %v2069_v7 = vpack.c.bf16 %v2048_v49, %v2047_v57 }
 0xd80   :  { %v1895_v33 = vpop.permute.xlu1 %1894 }
 0xd81   :  { %v2032_v8 = vmul.f32 %v7136_v22, %v1895_v33  ;;  %v1870_v56 = vpop.permute.xlu0 %1869  ;;  %v4063_v33 = vld [vmem:[%s7278_s24] ss:$0 sm:$0xff] }
 0xd82   :  { %4178 = vmatpush3.bf16.msra.mxu1 %v2063_v53  ;;  %v2027_v61 = vmul.f32 %v6921_v41, %v1870_v56  ;;  %v4062_v53 = vld [vmem:[%s7277_s23] ss:$0 sm:$0xff] }
 0xd83   :  { %4179 = vmatprep.subr.bf16.mxu1 %v2070_v29  ;;  %v2061_v23 = vpack.c.bf16 %v2032_v8, %v2031_v20 }
 0xd84   :  { %v1965_v24 = vpop.permute.xlu1 %1964 }
 0xd85   :  { %v2046_v18 = vmul.f32 %v7145_v62, %v1965_v24  ;;  %v2043_v62 = vmul.f32 %v7173_v55, %v1950_v59 }
 0xd86   :  { %4180 = vmatpush3.bf16.msra.mxu1 %v2062_v37 }
 0xd87   :  { %4181 = vmatprep.subr.bf16.mxu1 %v2069_v7  ;;  %v2068_v42 = vpack.c.bf16 %v2046_v18, %v2045_v44 }
 0xd88   :  { %v1885_v63 = vpop.permute.xlu1 %1884 }
 0xd89   :  { %v2030_v5 = vmul.f32 %v6909_v0, %v1885_v63 }
 0xd8a   :  { %4182 = vmatpush3.bf16.msra.mxu1 %v2061_v23 }
 0xd8b   :  { %v2060_v22 = vpack.c.bf16 %v2030_v5, %v2029_v16  ;;  %4183 = vmatprep.subr.bf16.mxu1 %v2068_v42 }
 0xd8c   :  { %v1955_v40 = vpop.permute.xlu1 %1954 }
 0xd8d   :  { %v2044_v45 = vmul.f32 %v7166_v48, %v1955_v40 }
 0xd8e   :  { %4184 = vmatpush3.bf16.msra.mxu1 %v2060_v22 }
 0xd8f   :  { %v2067_v34 = vpack.c.bf16 %v2044_v45, %v2043_v62 }
 0xd90   :  { %v1875_v17 = vpop.permute.xlu1 %1874 }
 0xd91   :  { %v2028_v9 = vmul.f32 %v6929_v46, %v1875_v17  ;;  %4185 = vmatprep.subr.bf16.mxu1 %v2067_v34 }
 0xd93   :  { %v2059_v12 = vpack.c.bf16 %v2028_v9, %v2027_v61 }
 0xd95   :  { %4186 = vmatpush3.bf16.msra.mxu1 %v2059_v12 }
 0xd98   :  { %3775 = vmatmul.mubr.bf16.vlgmr.msra.gmra.mxu1 %v7199_v51 }
 0xe35   :  { %v4165_v0 = vpop.f32.mrf.mxu1 }
 0xe37   :  { %v4166_v58 = vpop.f32.mrf.mxu1 }
 0xe38   :  { %v4167_v48 = vadd.f32 %v4166_v58, %v4165_v0 }
 0xe39   :  { %v4168_v25 = vpop.f32.mrf.mxu1 }
 0xe3b   :  { %v4169_v30 = vpop.f32.mrf.mxu1 }
 0xe3c   :  { %v4170_v43 = vadd.f32 %v4169_v30, %v4168_v25 }
 0xe58   :  { %v4187_v55 = vpop.f32.mrf.mxu1 }
 0xe5a   :  { %v4188_v50 = vpop.f32.mrf.mxu1 }
 0xe5b   :  { %v4189_v2 = vadd.f32 %v4188_v50, %v4187_v55 }
 0xe5c   :  { %v4190_v47 = vpop.f32.mrf.mxu1 }
 0xe5d   :  { %v3777_v21 = vadd.f32 %v4189_v2, %v4167_v48 }
 0xe5e   :  { %v4191_v13 = vpop.f32.mrf.mxu1 }
 0xe5f   :  { %v4192_v41 = vadd.f32 %v4191_v13, %v4190_v47  ;;  %v3783_v46 = vsel %vm472_vm4, %v3777_v21, 0.0 }
 0xe60   :  { %3784 = vadd.xlane.f32.xlu0 %v3783_v46 }
 0xe61   :  { %v3780_v15 = vadd.f32 %v4192_v41, %v4170_v43 }
 0xe63   :  { %v3786_v19 = vsel %vm472_vm4, %v3780_v15, 0.0 }
 0xe64   :  { %3787 = vadd.xlane.f32.xlu1 %v3786_v19 }
 0xee9   :  { %v3785_v51 = vpop.xlane.xlu0 %3784 }
 0xeea   :  { %v3790_v6 = vmul.f32 0.33333334, %v3785_v51 }
 0xeec   :  { %v3792_v3 = vsub.f32 %v3777_v21, %v3790_v6 }
 0xeed   :  { %v3788_v38 = vpop.xlane.xlu1 %3787 }
 0xeee   :  { %v3791_v35 = vmul.f32 0.33333334, %v3788_v38  ;;  %v3794_v32 = vmul.f32 %v3792_v3, %v3792_v3 }
 0xef0   :  { %v3793_v54 = vsub.f32 %v3780_v15, %v3791_v35  ;;  %v3796_v1 = vsel %vm472_vm4, %v3794_v32, 0.0 }
 0xef1   :  { %3797 = vadd.xlane.f32.xlu0 %v3796_v1 }
 0xef2   :  { %v3795_v28 = vmul.f32 %v3793_v54, %v3793_v54 }
 0xef4   :  { %v3799_v26 = vsel %vm472_vm4, %v3795_v28, 0.0 }
 0xef5   :  { %3800 = vadd.xlane.f32.xlu0 %v3799_v26 }
 0xf7a   :  { %v3798_v11 = vpop.xlane.xlu0 %3797 }
 0xf7b   :  { %v3802_v10 = vmul.f32 0.33333334, %v3798_v11 }
 0xf7d   :  { %v3804_v60 = vadd.f32 1e-05, %v3802_v10 }
 0xf7e   :  { %v3801_v4 = vpop.xlane.xlu0 %3800 }
 0xf7f   :  { %4915 = vrsqrt.f32 %v3804_v60  ;;  %v3803_v36 = vmul.f32 0.33333334, %v3801_v4 }
 0xf81   :  { %v3805_v31 = vadd.f32 1e-05, %v3803_v36 }
 0xf83   :  { %4917 = vrsqrt.f32 %v3805_v31 }
 0xf8c   :  { %v4916_v27 = vpop.eup %4915 }
 0xf8d   :  { %v3808_v39 = vmul.f32 %v4916_v27, %v3792_v3 }
 0xf8f   :  { %v3817_v29 = vmul.f32 %v4062_v53, %v3808_v39 }
 0xf90   :  { %v4918_v49 = vpop.eup %4917 }
 0xf91   :  { %v3826_v52 = vadd.f32 %v4063_v33, %v3817_v29  ;;  %v3809_v14 = vmul.f32 %v4918_v49, %v3793_v54 }
 0xf93   :  { %3828 = vst.msk [vmem:[%s7279_s25] sm:$0xff] %vm472_vm4, %v3826_v52  ;;  %v3818_v57 = vmul.f32 %v4062_v53, %v3809_v14 }
 0xf95   :  { %v3827_v37 = vadd.f32 %v4063_v33, %v3818_v57 }
 0xf97   :  { %3829 = vst.msk [vmem:[%s7279_s25 + $0x8] sm:$0xff] %vm472_vm4, %v3827_v37 }

</bundles_post_ra>
